<compile_context>
chip_gen: v7x
topology: tpu7x:2x2x1
jax: 0.10.0
libtpu: 0.0.40
codegen_flags: <defaults>
</compile_context>

<pallas_src>
import functools
import numpy as np
import jax
import jax.numpy as jnp
from jax.experimental import pallas as pl
from jax.experimental.pallas import tpu as pltpu

FP4_LIST_REAL = [
    [0.0, 0.5, 1.0, 1.5, 2.0, 3.0, 4.0, 6.0, 5.0, -0.5, -1.0, -1.5, -2.0, -3.0, -4.0, -6.0],
    [0.0, 0.5, 1.0, 1.5, 2.0, 3.0, 4.0, 6.0, 8.0, -0.5, -1.0, -1.5, -2.0, -3.0, -4.0, -6.0],
    [0.0, 0.5, 1.0, 1.5, 2.0, 3.0, 4.0, 6.0, -5.0, -0.5, -1.0, -1.5, -2.0, -3.0, -4.0, -6.0],
    [0.0, 0.5, 1.0, 1.5, 2.0, 3.0, 4.0, 6.0, -8.0, -0.5, -1.0, -1.5, -2.0, -3.0, -4.0, -6.0],
]
GROUP_SIZE = 128
PACK_CHUNK = 1024          # 8 nibble-slabs x 128 lanes: TPU repack granularity

# ----------------------------------------------------------------------------------
# Construction glue (equivalent of RazerLinear.construct) — plain JAX, done once.
# The reference does this in fp16 on CUDA; fp32 is fine for init-time glue.
# ----------------------------------------------------------------------------------

_FP4_VALUE_TO_CODE = [
    (0.0, 2), (0.5, 0), (1.0, 4), (1.5, 6), (2.0, 8), (3.0, 10), (4.0, 12), (6.0, 14),
    (-0.5, 1), (-1.0, 5), (-1.5, 7), (-2.0, 9), (-3.0, 11), (-4.0, 13), (-6.0, 15),
]


def map_to_fp4int(x):
    result = jnp.full(x.shape, 3, dtype=jnp.int32)   # default (special value) -> code 3
    for v, c in _FP4_VALUE_TO_CODE:
        result = jnp.where(x == v, jnp.int32(c), result)
    return result


def _pack_nibbles_last_axis(codes):
    """[..., 8] int32 nibbles -> [...] int32 packed word (nibble j at bits 4j..4j+3)."""
    shifts = (jnp.arange(8, dtype=jnp.int32) * 4)
    return jnp.sum((codes & 15) << shifts, axis=-1).astype(jnp.int32)


def pack_int4(B):
    """Reference layout: [N, K] int32 in [0,15] -> [N, ceil(K/8)] int32 (8 per word)."""
    n, k = B.shape
    pad = (-k) % 8
    if pad:
        # NOTE: zero-padding packs nibble code 0 (decodes to 0.5); padded nibbles are
        # never read because K and G are multiples of 8 in the supported configs.
        B = jnp.concatenate([B, jnp.zeros((n, pad), jnp.int32)], axis=1)
    return _pack_nibbles_last_axis(B.reshape(n, -1, 8))


def nonuniform_round(x, levels):
    levels = jnp.sort(levels)
    x = jnp.clip(x, levels[0], levels[-1])
    idx = jnp.searchsorted(levels, x, side="left")
    idx = jnp.clip(idx, 1, levels.shape[0] - 1)
    left = levels[idx - 1]
    right = levels[idx]
    return jnp.where(jnp.abs(x - right) < jnp.abs(x - left), right, left)


def construct_razer(W, group_size=GROUP_SIZE):
    """Quantize weight [out_features, in_features]; returns buffers like construct()."""
    out_features, in_features = W.shape
    x = W.reshape(-1, group_size).astype(jnp.float32)
    L = x.shape[0]
    xmin = jnp.min(x, axis=-1, keepdims=True)
    xmax = jnp.max(x, axis=-1, keepdims=True)

    Wqs, scores, mods, scales = [], [], [], []
    for i, levels in enumerate(FP4_LIST_REAL):
        lv = jnp.array(levels, jnp.float32)
        fp_max = float(max(levels))
        fp_min = float(min(levels))
        scale = jnp.maximum(xmax / fp_max, xmin / fp_min)
        scale = jnp.where(scale > 0, scale, jnp.float32(1.0))   # guard all-zero groups
        Wq = nonuniform_round(x / scale, lv)
        x_dq = Wq * scale
        Wqs.append(Wq)
        scales.append(scale)
        mods.append(jnp.full((L, 1), i, jnp.int32))
        scores.append(jnp.sum((x - x_dq) ** 2, axis=1, keepdims=True))

    score_mat = jnp.concatenate(scores, axis=1)          # [L, 4]
    best = jnp.argmin(score_mat, axis=1)                 # [L]
    rows = jnp.arange(L)
    Wq_best = jnp.stack(Wqs, 0)[best, rows, :]           # [L, group]
    mod_best = jnp.stack(mods, 0)[best, rows, :]         # [L, 1]
    scale_best = jnp.stack(scales, 0)[best, rows, :]     # [L, 1]

    Wq_best = Wq_best.reshape(out_features, in_features)
    mod_best = mod_best.reshape(out_features, in_features // group_size)
    scale_best = scale_best.reshape(out_features, in_features // group_size)

    quantized_weight_packed = pack_int4(map_to_fp4int(Wq_best))
    bitmod_packed = pack_int4(mod_best)
    scaling_factors = scale_best.astype(jnp.float16)
    return quantized_weight_packed, scaling_factors, bitmod_packed, Wq_best


# ----------------------------------------------------------------------------------
# One-time (init) repacking of the module's buffers into the TPU kernel layout.
# ----------------------------------------------------------------------------------

def prepare_razer_weights_for_tpu(wq_packed, scales, mod_packed, *,
                                  in_features, out_features, group_size=GROUP_SIZE):
    """Repack reference buffers once (hoisted out of forward).

    Returns:
      wq_tpu      [N, K//8]  int32 : within each 1024-col chunk, nibble j of word w
                                     holds original column j*128 + w.
      scale_tpu   [K//1024, N, 8] fp32 : per-group scale, chunk-major / slab-minor.
      special_tpu [K//1024, N, 8] fp32 : per-group value of code 3 (+-5 / +-8).
    """
    N, K = out_features, in_features
    assert K % PACK_CHUNK == 0, "TPU path needs in_features % 1024 == 0"
    # TODO(synk): add 256/512-granularity repack paths (razer_gpu_symmetric_{256,512}).
    G = K // group_size
    C = K // PACK_CHUNK

    # Unpack the reference nibble layout (word p holds original columns 8p..8p+7).
    col = jnp.arange(K, dtype=jnp.int32)
    codes = (wq_packed[:, col // 8] >> (4 * (col % 8))) & 15             # [N, K]
    # Repack: chunk c, slab j, lane w  <-  original column c*1024 + j*128 + w.
    codes = codes.reshape(N, C, 8, 128).transpose(0, 1, 3, 2).reshape(N, K // 8, 8)
    wq_tpu = _pack_nibbles_last_axis(codes)                               # [N, K//8]

    # Per-group fp32 scales, chunk-major: scale_tpu[c, r, j] = scale of group c*8+j.
    scale_tpu = scales.astype(jnp.float32).reshape(N, C, 8).transpose(1, 0, 2)

    # Per-group special value (the value FP4 code 3 decodes to for that group's mod).
    g = jnp.arange(G, dtype=jnp.int32)
    mods = (mod_packed[:, g // 8] >> (4 * (g % 8))) & 15                  # [N, G] in {0..3}
    special = ((5.0 + 3.0 * (mods & 1).astype(jnp.float32))
               * (1.0 - 2.0 * (mods >> 1).astype(jnp.float32)))           # 0->5 1->8 2->-5 3->-8
    special_tpu = special.reshape(N, C, 8).transpose(1, 0, 2)
    return wq_tpu, scale_tpu, special_tpu


# ----------------------------------------------------------------------------------
# Pallas kernel: fused int4 unpack + RaZeR FP4 decode + per-group scale + matmul.
# y = x @ dequant(W).T   (bf16 MXU operands, fp32 accumulation, bf16 kernel output)
# ----------------------------------------------------------------------------------

def razer_matmul_kernel(x_ref, wq_ref, scale_ref, special_ref, o_ref,
                        acc_ref, wcache_ref, *, n_chunks, multi_m):
    i = pl.program_id(1)          # M tile
    k = pl.program_id(2)          # K tile (reduction, innermost)
    nk = pl.num_programs(2)
    slot = k if multi_m else 0    # decoded-weight cache slot

    @pl.when(k == 0)
    def _init_acc():
        acc_ref[...] = jnp.zeros_like(acc_ref)

    # Decode this (N-tile, K-tile) packed block once per N tile (at M tile i == 0)
    # into a bf16 VMEM cache reused by every M tile.  Requires the M grid axis to
    # stay "arbitrary"/unsharded.
    @pl.when(i == 0)
    def _decode():
        for c in range(n_chunks):                      # one chunk = 8 slabs x 128 lanes
            for j in range(8):
                # Re-load the packed words per slab to keep vreg liveness bounded
                # (vld slots have slack; the decode is VALU-bound).
                packed = wq_ref[:, c * 128:(c + 1) * 128]           # [tn, 128] int32
                codes = (packed >> (4 * j)) & 15                    # [tn, 128] in 0..15
                # Bit-assembled RaZeR-FP4 decode: sign = bit0, mantissa-MSB = bit1,
                # exponent = (code>>2) + 126   ->   value = (1 + 0.5*m) * 2^(e-127).
                bits = (((codes & 0xE) << 21) + 0x3F000000) | (codes << 31)
                vals = pltpu.bitcast(bits, jnp.float32)
                scale_g = scale_ref[c, :, j:j + 1]                  # [tn, 1] fp32
                special_g = special_ref[c, :, j:j + 1]              # [tn, 1] fp32
                # code 2 -> 0.0 ; code 3 -> per-(row, group) special value (+-5 / +-8)
                vals = jnp.where(codes == 2, 0.0,
                                 jnp.where(codes == 3, special_g, vals))
                col = c * PACK_CHUNK + j * 128
                wcache_ref[slot, :, col:col + 128] = (vals * scale_g).astype(jnp.bfloat16)

    # Wide bf16 x bf16 -> f32 MXU contraction over the whole K tile.
    # TODO(synk): verify no per-step vxpose is emitted for the transposed-RHS contraction;
    #             if it is, decode into a (tk, tn) cache layout instead (once per N tile).
    acc_ref[...] += jax.lax.dot_general(
        x_ref[...], wcache_ref[slot],
        dimension_numbers=(((1,), (1,)), ((), ())),
        preferred_element_type=jnp.float32)

    @pl.when(k == nk - 1)
    def _store():
        o_ref[...] = acc_ref[...].astype(o_ref.dtype)


def razer_linear_forward(x, wq_tpu, scale_tpu, special_tpu, *,
                         in_features, out_features, group_size=GROUP_SIZE,
                         tm=None, tn=None, tk=None):
    """y = x @ dequant(W).T, fp16 output.  Hot path: no per-call weight/scale prep."""
    K, N = in_features, out_features
    assert K % PACK_CHUNK == 0 and K % group_size == 0
    lead = x.shape[:-1]
    M = int(np.prod(lead)) if lead else 1

    # ---- tile selection (defaults safe for v5e/v6e/v7x; override to tune) ----
    #   v6e prefill: tn up to 768-1024 reaches the ~650 flop/byte ridge (128 MiB VMEM)
    #   v7x: tn 384-512 is enough (3.2 TB/s HBM) and respects 64 MiB physical VMEM
    #   v5e: tn~256 is roofline-adequate; vmem_limit below lifts its 16 MiB default
    if tn is None:
        cands = [t for t in (512, 256, 128) if N % t == 0 and N // t >= 2]
        tn = cands[0] if cands else N
    assert N % tn == 0 and tn % 128 == 0, "out_features tile must be a multiple of 128"
    if tk is None:
        tk = 2048 if K % 2048 == 0 else PACK_CHUNK
    assert K % tk == 0 and tk % PACK_CHUNK == 0
    nk = K // tk
    n_chunks = tk // PACK_CHUNK
    if tm is None:
        tm = 512 if M > 512 else max(16, ((M + 15) // 16) * 16)
    assert tm % 16 == 0, "keep 16-bit output tiles sublane-dense"
    Mp = ((M + tm - 1) // tm) * tm
    multi_m = (Mp // tm) > 1
    cache_slots = nk if multi_m else 1        # single-M-tile calls skip the full cache

    # ---- activations: flatten, pad M; no K permutation needed (weights are repacked) ----
    x2 = x.reshape(M, K)
    if Mp != M:
        x2 = jnp.concatenate([x2, jnp.zeros((Mp - M, K), x2.dtype)], axis=0)
    xb = x2.astype(jnp.bfloat16)

    # Frozen index for weight/scale/special blocks when i > 0 (kernel only reads them at
    # i == 0); consecutive equal block indices suppress the DMA -> packed weights are
    # streamed ~once per N tile instead of once per (M tile, K tile).
    def wq_index(j, i, k):
        return (j, jnp.where(i == 0, k, nk - 1))

    def sc_index(j, i, k):
        return (jnp.where(i == 0, k, nk - 1), j, 0)

    kernel = functools.partial(razer_matmul_kernel, n_chunks=n_chunks, multi_m=multi_m)

    # VMEM footprint estimate -> scoped-VMEM limit (v5e default is only 16 MiB).
    est_vmem = (cache_slots * tn * tk * 2            # decoded-weight cache
                + tm * tn * 4                        # fp32 accumulator
                + 2 * tm * tk * 2                    # x double buffer
                + 2 * tn * (tk // 8) * 4             # packed-weight double buffer
                + 2 * tm * tn * 2                    # output double buffer
                + 4 * n_chunks * tn * 8 * 4)         # scale / special buffers
    try:
        vmem_cap = int(pltpu.get_tpu_info().vmem_capacity_bytes)
    except Exception:
        vmem_cap = 64 << 20                          # conservative (v7x physical)
    vmem_limit = max(16 << 20, min(vmem_cap - (8 << 20),
                                   max(32 << 20, int(est_vmem * 1.5) + (4 << 20))))

    flops = 2 * Mp * N * K
    bytes_accessed = (N * (K // 2)          # packed int4 weights
                      + Mp * K * 2          # bf16 activations
                      + Mp * N * 2          # bf16 output
                      + 2 * N * (K // group_size) * 4)   # scales + specials

    out = pl.pallas_call(
        kernel,
        out_shape=jax.ShapeDtypeStruct((Mp, N), jnp.bfloat16),
        grid_spec=pltpu.PrefetchScalarGridSpec(
            num_scalar_prefetch=0,
            grid=(N // tn, Mp // tm, nk),             # (j: N tiles, i: M tiles, k: K tiles)
            in_specs=[
                pl.BlockSpec((tm, tk), lambda j, i, k: (i, k)),        # activations (bf16)
                pl.BlockSpec((tn, tk // 8), wq_index),                 # packed int4 weights
                pl.BlockSpec((n_chunks, tn, 8), sc_index),             # per-group fp32 scales
                pl.BlockSpec((n_chunks, tn, 8), sc_index),             # per-group specials
            ],
            out_specs=pl.BlockSpec((tm, tn), lambda j, i, k: (i, j)),
            scratch_shapes=[
                pltpu.VMEM((tm, tn), jnp.float32),                     # fp32 accumulator
                pltpu.VMEM((cache_slots, tn, tk), jnp.bfloat16),       # decoded-weight cache
            ],
        ),
        compiler_params=pltpu.CompilerParams(
            # i / k stay "arbitrary": the decode cache is filled at i == 0 and the
            # accumulator carries across k; only the N axis is megacore-shardable.
            dimension_semantics=("parallel", "arbitrary", "arbitrary"),
            vmem_limit_bytes=vmem_limit),
        cost_estimate=pl.CostEstimate(flops=flops, transcendentals=0,
                                      bytes_accessed=bytes_accessed),
    )(xb, wq_tpu, scale_tpu, special_tpu)

    # Module semantics: fp16 result (kernel emits TPU-native bf16, cast outside).
    return out[:M].astype(jnp.float16).reshape(*lead, N)


if __name__ == "__main__":
    key = jax.random.PRNGKey(0)
    B, S = 2, 24
    in_features, out_features = 2048, 256

    kw, kx = jax.random.split(key)
    W = jax.random.normal(kw, (out_features, in_features), jnp.float32) * 0.05
    x = jax.random.normal(kx, (B, S, in_features), jnp.float32).astype(jnp.float16)

    # init-time: quantize + repack to the TPU layout (done once, outside forward)
    wq_packed, scales, mod_packed, Wq_best = construct_razer(W)
    wq_tpu, scale_tpu, special_tpu = prepare_razer_weights_for_tpu(
        wq_packed, scales, mod_packed,
        in_features=in_features, out_features=out_features)

    # small tiles so the demo exercises N-, M- and K-tiling: 2 N tiles x 3 M tiles x
    # 2 K tiles -> covers the decode-once cache and the frozen packed-weight DMA path
    y = razer_linear_forward(
        x, wq_tpu, scale_tpu, special_tpu,
        in_features=in_features, out_features=out_features,
        tm=16, tn=128, tk=1024)
    y = jax.block_until_ready(y)

    # plain-JAX reference: dequantize full weight and matmul in fp32
    scale_full = jnp.repeat(scales.astype(jnp.float32), GROUP_SIZE, axis=1)
    W_dq = Wq_best * scale_full
    y_ref = (x.reshape(-1, in_features).astype(jnp.float32) @ W_dq.T)
    y_ref = y_ref.reshape(B, S, out_features)

    assert y.shape == (B, S, out_features) and y.dtype == jnp.float16
    y_np = np.asarray(y, np.float32)
    yref_np = np.asarray(y_ref, np.float32)
    max_err = float(np.max(np.abs(y_np - yref_np)))
    # bf16 MXU operands -> looser tolerance than the fp16 CUDA reference pipeline
    assert np.allclose(y_np, yref_np, rtol=3e-2, atol=1e-1), max_err
    print("KERNEL_OK")
</pallas_src>

<mosaic_0001>
module attributes {stable_mosaic.version = 11 : i64} {
  func.func @razer_matmul_kernel(%arg0: i32, %arg1: i32, %arg2: i32, %arg3: memref<16x1024xbf16, #tpu.memory_space<vmem>>, %arg4: memref<128x128xi32, #tpu.memory_space<vmem>>, %arg5: memref<1x128x8xf32, #tpu.memory_space<vmem>>, %arg6: memref<1x128x8xf32, #tpu.memory_space<vmem>>, %arg7: memref<16x128xbf16, #tpu.memory_space<vmem>>, %arg8: memref<16x128xf32, #tpu.memory_space<vmem>>, %arg9: memref<2x128x1024xbf16, #tpu.memory_space<vmem>>) attributes {dimension_semantics = [#tpu.dimension_semantics<parallel>, #tpu.dimension_semantics<arbitrary>, #tpu.dimension_semantics<arbitrary>], iteration_bounds = array<i64: 2, 3, 2>, scalar_prefetch = 0 : i64, scratch_operands = 2 : i64, tpu.core_type = #tpu.core_type<tc>, window_params = [{transform_indices = @transform_0, window_bounds = array<i64: 16, 1024>}, {transform_indices = @transform_1, window_bounds = array<i64: 128, 128>}, {transform_indices = @transform_2, window_bounds = array<i64: 1, 128, 8>}, {transform_indices = @transform_3, window_bounds = array<i64: 1, 128, 8>}, {transform_indices = @transform_4, window_bounds = array<i64: 16, 128>}]} {
    %c0_i32 = arith.constant 0 : i32
    %0 = arith.cmpi eq, %arg2, %c0_i32 : i32
    %1 = arith.extui %0 : i1 to i32
    %c0_i32_0 = arith.constant 0 : i32
    %2 = arith.cmpi ne, %1, %c0_i32_0 : i32
    scf.if %2 {
      %cst_11 = arith.constant 0.000000e+00 : f32
      %17 = vector.broadcast %cst_11 : f32 to vector<16x128xf32>
      %c0_12 = arith.constant 0 : index
      %c0_13 = arith.constant 0 : index
      %18 = vector.load %arg8[%c0_12, %c0_13] : memref<16x128xf32, #tpu.memory_space<vmem>>, vector<16x128xf32>
      tpu.vector_store %arg8[%c0_12, %c0_13], %17 {strides = array<i32>} : memref<16x128xf32, #tpu.memory_space<vmem>>, vector<16x128xf32>,
    } else {
    }
    %c0_i32_1 = arith.constant 0 : i32
    %3 = arith.cmpi eq, %arg1, %c0_i32_1 : i32
    %4 = arith.extui %3 : i1 to i32
    %c0_i32_2 = arith.constant 0 : i32
    %5 = arith.cmpi ne, %4, %c0_i32_2 : i32
    scf.if %5 {
      %c0_11 = arith.constant 0 : index
      %c0_12 = arith.constant 0 : index
      %17 = vector.load %arg4[%c0_11, %c0_12] : memref<128x128xi32, #tpu.memory_space<vmem>>, vector<128x128xi32>
      %c0_i32_13 = arith.constant 0 : i32
      %18 = vector.broadcast %c0_i32_13 : i32 to vector<128x128xi32>
      %19 = arith.shrsi %17, %18 : vector<128x128xi32>
      %c15_i32 = arith.constant 15 : i32
      %20 = vector.broadcast %c15_i32 : i32 to vector<128x128xi32>
      %21 = arith.andi %19, %20 : vector<128x128xi32>
      %c14_i32 = arith.constant 14 : i32
      %22 = vector.broadcast %c14_i32 : i32 to vector<128x128xi32>
      %23 = arith.andi %21, %22 : vector<128x128xi32>
      %c21_i32 = arith.constant 21 : i32
      %24 = vector.broadcast %c21_i32 : i32 to vector<128x128xi32>
      %25 = arith.shli %23, %24 : vector<128x128xi32>
      %c1056964608_i32 = arith.constant 1056964608 : i32
      %26 = vector.broadcast %c1056964608_i32 : i32 to vector<128x128xi32>
      %27 = arith.addi %25, %26 : vector<128x128xi32>
      %c31_i32 = arith.constant 31 : i32
      %28 = vector.broadcast %c31_i32 : i32 to vector<128x128xi32>
      %29 = arith.shli %21, %28 : vector<128x128xi32>
      %30 = arith.ori %27, %29 : vector<128x128xi32>
      %31 = tpu.bitcast %30 : vector<128x128xi32> -> vector<128x128xf32>
      %c0_14 = arith.constant 0 : index
      %c0_15 = arith.constant 0 : index
      %c0_16 = arith.constant 0 : index
      %32 = vector.load %arg5[%c0_14, %c0_15, %c0_16] : memref<1x128x8xf32, #tpu.memory_space<vmem>>, vector<1x128x1xf32>
      %33 = vector.shape_cast %32 : vector<1x128x1xf32> to vector<128x1xf32>
      %c0_17 = arith.constant 0 : index
      %c0_18 = arith.constant 0 : index
      %c0_19 = arith.constant 0 : index
      %34 = vector.load %arg6[%c0_17, %c0_18, %c0_19] : memref<1x128x8xf32, #tpu.memory_space<vmem>>, vector<1x128x1xf32>
      %35 = vector.shape_cast %34 : vector<1x128x1xf32> to vector<128x1xf32>
      %c2_i32 = arith.constant 2 : i32
      %36 = vector.broadcast %c2_i32 : i32 to vector<128x128xi32>
      %37 = arith.cmpi eq, %21, %36 : vector<128x128xi32>
      %c3_i32 = arith.constant 3 : i32
      %38 = vector.broadcast %c3_i32 : i32 to vector<128x128xi32>
      %39 = arith.cmpi eq, %21, %38 : vector<128x128xi32>
      %40 = vector.shape_cast %35 : vector<128x1xf32> to vector<128x1xf32>
      %41 = vector.broadcast %40 : vector<128x1xf32> to vector<128x128xf32>
      %42 = arith.select %39, %41, %31 : vector<128x128xi1>, vector<128x128xf32>
      %cst_20 = arith.constant 0.000000e+00 : f32
      %43 = vector.broadcast %cst_20 : f32 to vector<128x128xf32>
      %44 = arith.select %37, %43, %42 : vector<128x128xi1>, vector<128x128xf32>
      %45 = vector.broadcast %33 : vector<128x1xf32> to vector<128x128xf32>
      %46 = arith.mulf %44, %45 : vector<128x128xf32>
      %47 = arith.truncf %46 : vector<128x128xf32> to vector<128x128xbf16>
      %48 = arith.index_cast %arg2 : i32 to index
      %c0_21 = arith.constant 0 : index
      %c0_22 = arith.constant 0 : index
      %49 = vector.load %arg9[%48, %c0_21, %c0_22] : memref<2x128x1024xbf16, #tpu.memory_space<vmem>>, vector<1x128x128xbf16>
      %50 = vector.shape_cast %49 : vector<1x128x128xbf16> to vector<128x128xbf16>
      %51 = vector.shape_cast %47 : vector<128x128xbf16> to vector<1x128x128xbf16>
      tpu.vector_store %arg9[%48, %c0_21, %c0_22], %51 {strides = array<i32>} : memref<2x128x1024xbf16, #tpu.memory_space<vmem>>, vector<1x128x128xbf16>,
      %c0_23 = arith.constant 0 : index
      %c0_24 = arith.constant 0 : index
      %52 = vector.load %arg4[%c0_23, %c0_24] : memref<128x128xi32, #tpu.memory_space<vmem>>, vector<128x128xi32>
      %c4_i32 = arith.constant 4 : i32
      %53 = vector.broadcast %c4_i32 : i32 to vector<128x128xi32>
      %54 = arith.shrsi %52, %53 : vector<128x128xi32>
      %c15_i32_25 = arith.constant 15 : i32
      %55 = vector.broadcast %c15_i32_25 : i32 to vector<128x128xi32>
      %56 = arith.andi %54, %55 : vector<128x128xi32>
      %c14_i32_26 = arith.constant 14 : i32
      %57 = vector.broadcast %c14_i32_26 : i32 to vector<128x128xi32>
      %58 = arith.andi %56, %57 : vector<128x128xi32>
      %c21_i32_27 = arith.constant 21 : i32
      %59 = vector.broadcast %c21_i32_27 : i32 to vector<128x128xi32>
      %60 = arith.shli %58, %59 : vector<128x128xi32>
      %c1056964608_i32_28 = arith.constant 1056964608 : i32
      %61 = vector.broadcast %c1056964608_i32_28 : i32 to vector<128x128xi32>
      %62 = arith.addi %60, %61 : vector<128x128xi32>
      %c31_i32_29 = arith.constant 31 : i32
      %63 = vector.broadcast %c31_i32_29 : i32 to vector<128x128xi32>
      %64 = arith.shli %56, %63 : vector<128x128xi32>
      %65 = arith.ori %62, %64 : vector<128x128xi32>
      %66 = tpu.bitcast %65 : vector<128x128xi32> -> vector<128x128xf32>
      %c0_30 = arith.constant 0 : index
      %c0_31 = arith.constant 0 : index
      %c1 = arith.constant 1 : index
      %67 = vector.load %arg5[%c0_30, %c0_31, %c1] : memref<1x128x8xf32, #tpu.memory_space<vmem>>, vector<1x128x1xf32>
      %68 = vector.shape_cast %67 : vector<1x128x1xf32> to vector<128x1xf32>
      %c0_32 = arith.constant 0 : index
      %c0_33 = arith.constant 0 : index
      %c1_34 = arith.constant 1 : index
      %69 = vector.load %arg6[%c0_32, %c0_33, %c1_34] : memref<1x128x8xf32, #tpu.memory_space<vmem>>, vector<1x128x1xf32>
      %70 = vector.shape_cast %69 : vector<1x128x1xf32> to vector<128x1xf32>
      %c2_i32_35 = arith.constant 2 : i32
      %71 = vector.broadcast %c2_i32_35 : i32 to vector<128x128xi32>
      %72 = arith.cmpi eq, %56, %71 : vector<128x128xi32>
      %c3_i32_36 = arith.constant 3 : i32
      %73 = vector.broadcast %c3_i32_36 : i32 to vector<128x128xi32>
      %74 = arith.cmpi eq, %56, %73 : vector<128x128xi32>
      %75 = vector.shape_cast %70 : vector<128x1xf32> to vector<128x1xf32>
      %76 = vector.broadcast %75 : vector<128x1xf32> to vector<128x128xf32>
      %77 = arith.select %74, %76, %66 : vector<128x128xi1>, vector<128x128xf32>
      %cst_37 = arith.constant 0.000000e+00 : f32
      %78 = vector.broadcast %cst_37 : f32 to vector<128x128xf32>
      %79 = arith.select %72, %78, %77 : vector<128x128xi1>, vector<128x128xf32>
      %80 = vector.broadcast %68 : vector<128x1xf32> to vector<128x128xf32>
      %81 = arith.mulf %79, %80 : vector<128x128xf32>
      %82 = arith.truncf %81 : vector<128x128xf32> to vector<128x128xbf16>
      %83 = arith.index_cast %arg2 : i32 to index
      %c0_38 = arith.constant 0 : index
      %c128 = arith.constant 128 : index
      %84 = vector.load %arg9[%83, %c0_38, %c128] : memref<2x128x1024xbf16, #tpu.memory_space<vmem>>, vector<1x128x128xbf16>
      %85 = vector.shape_cast %84 : vector<1x128x128xbf16> to vector<128x128xbf16>
      %86 = vector.shape_cast %82 : vector<128x128xbf16> to vector<1x128x128xbf16>
      tpu.vector_store %arg9[%83, %c0_38, %c128], %86 {strides = array<i32>} : memref<2x128x1024xbf16, #tpu.memory_space<vmem>>, vector<1x128x128xbf16>,
      %c0_39 = arith.constant 0 : index
      %c0_40 = arith.constant 0 : index
      %87 = vector.load %arg4[%c0_39, %c0_40] : memref<128x128xi32, #tpu.memory_space<vmem>>, vector<128x128xi32>
      %c8_i32 = arith.constant 8 : i32
      %88 = vector.broadcast %c8_i32 : i32 to vector<128x128xi32>
      %89 = arith.shrsi %87, %88 : vector<128x128xi32>
      %c15_i32_41 = arith.constant 15 : i32
      %90 = vector.broadcast %c15_i32_41 : i32 to vector<128x128xi32>
      %91 = arith.andi %89, %90 : vector<128x128xi32>
      %c14_i32_42 = arith.constant 14 : i32
      %92 = vector.broadcast %c14_i32_42 : i32 to vector<128x128xi32>
      %93 = arith.andi %91, %92 : vector<128x128xi32>
      %c21_i32_43 = arith.constant 21 : i32
      %94 = vector.broadcast %c21_i32_43 : i32 to vector<128x128xi32>
      %95 = arith.shli %93, %94 : vector<128x128xi32>
      %c1056964608_i32_44 = arith.constant 1056964608 : i32
      %96 = vector.broadcast %c1056964608_i32_44 : i32 to vector<128x128xi32>
      %97 = arith.addi %95, %96 : vector<128x128xi32>
      %c31_i32_45 = arith.constant 31 : i32
      %98 = vector.broadcast %c31_i32_45 : i32 to vector<128x128xi32>
      %99 = arith.shli %91, %98 : vector<128x128xi32>
      %100 = arith.ori %97, %99 : vector<128x128xi32>
      %101 = tpu.bitcast %100 : vector<128x128xi32> -> vector<128x128xf32>
      %c0_46 = arith.constant 0 : index
      %c0_47 = arith.constant 0 : index
      %c2 = arith.constant 2 : index
      %102 = vector.load %arg5[%c0_46, %c0_47, %c2] : memref<1x128x8xf32, #tpu.memory_space<vmem>>, vector<1x128x1xf32>
      %103 = vector.shape_cast %102 : vector<1x128x1xf32> to vector<128x1xf32>
      %c0_48 = arith.constant 0 : index
      %c0_49 = arith.constant 0 : index
      %c2_50 = arith.constant 2 : index
      %104 = vector.load %arg6[%c0_48, %c0_49, %c2_50] : memref<1x128x8xf32, #tpu.memory_space<vmem>>, vector<1x128x1xf32>
      %105 = vector.shape_cast %104 : vector<1x128x1xf32> to vector<128x1xf32>
      %c2_i32_51 = arith.constant 2 : i32
      %106 = vector.broadcast %c2_i32_51 : i32 to vector<128x128xi32>
      %107 = arith.cmpi eq, %91, %106 : vector<128x128xi32>
      %c3_i32_52 = arith.constant 3 : i32
      %108 = vector.broadcast %c3_i32_52 : i32 to vector<128x128xi32>
      %109 = arith.cmpi eq, %91, %108 : vector<128x128xi32>
      %110 = vector.shape_cast %105 : vector<128x1xf32> to vector<128x1xf32>
      %111 = vector.broadcast %110 : vector<128x1xf32> to vector<128x128xf32>
      %112 = arith.select %109, %111, %101 : vector<128x128xi1>, vector<128x128xf32>
      %cst_53 = arith.constant 0.000000e+00 : f32
      %113 = vector.broadcast %cst_53 : f32 to vector<128x128xf32>
      %114 = arith.select %107, %113, %112 : vector<128x128xi1>, vector<128x128xf32>
      %115 = vector.broadcast %103 : vector<128x1xf32> to vector<128x128xf32>
      %116 = arith.mulf %114, %115 : vector<128x128xf32>
      %117 = arith.truncf %116 : vector<128x128xf32> to vector<128x128xbf16>
      %118 = arith.index_cast %arg2 : i32 to index
      %c0_54 = arith.constant 0 : index
      %c256 = arith.constant 256 : index
      %119 = vector.load %arg9[%118, %c0_54, %c256] : memref<2x128x1024xbf16, #tpu.memory_space<vmem>>, vector<1x128x128xbf16>
      %120 = vector.shape_cast %119 : vector<1x128x128xbf16> to vector<128x128xbf16>
      %121 = vector.shape_cast %117 : vector<128x128xbf16> to vector<1x128x128xbf16>
      tpu.vector_store %arg9[%118, %c0_54, %c256], %121 {strides = array<i32>} : memref<2x128x1024xbf16, #tpu.memory_space<vmem>>, vector<1x128x128xbf16>,
      %c0_55 = arith.constant 0 : index
      %c0_56 = arith.constant 0 : index
      %122 = vector.load %arg4[%c0_55, %c0_56] : memref<128x128xi32, #tpu.memory_space<vmem>>, vector<128x128xi32>
      %c12_i32 = arith.constant 12 : i32
      %123 = vector.broadcast %c12_i32 : i32 to vector<128x128xi32>
      %124 = arith.shrsi %122, %123 : vector<128x128xi32>
      %c15_i32_57 = arith.constant 15 : i32
      %125 = vector.broadcast %c15_i32_57 : i32 to vector<128x128xi32>
      %126 = arith.andi %124, %125 : vector<128x128xi32>
      %c14_i32_58 = arith.constant 14 : i32
      %127 = vector.broadcast %c14_i32_58 : i32 to vector<128x128xi32>
      %128 = arith.andi %126, %127 : vector<128x128xi32>
      %c21_i32_59 = arith.constant 21 : i32
      %129 = vector.broadcast %c21_i32_59 : i32 to vector<128x128xi32>
      %130 = arith.shli %128, %129 : vector<128x128xi32>
      %c1056964608_i32_60 = arith.constant 1056964608 : i32
      %131 = vector.broadcast %c1056964608_i32_60 : i32 to vector<128x128xi32>
      %132 = arith.addi %130, %131 : vector<128x128xi32>
      %c31_i32_61 = arith.constant 31 : i32
      %133 = vector.broadcast %c31_i32_61 : i32 to vector<128x128xi32>
      %134 = arith.shli %126, %133 : vector<128x128xi32>
      %135 = arith.ori %132, %134 : vector<128x128xi32>
      %136 = tpu.bitcast %135 : vector<128x128xi32> -> vector<128x128xf32>
      %c0_62 = arith.constant 0 : index
      %c0_63 = arith.constant 0 : index
      %c3 = arith.constant 3 : index
      %137 = vector.load %arg5[%c0_62, %c0_63, %c3] : memref<1x128x8xf32, #tpu.memory_space<vmem>>, vector<1x128x1xf32>
      %138 = vector.shape_cast %137 : vector<1x128x1xf32> to vector<128x1xf32>
      %c0_64 = arith.constant 0 : index
      %c0_65 = arith.constant 0 : index
      %c3_66 = arith.constant 3 : index
      %139 = vector.load %arg6[%c0_64, %c0_65, %c3_66] : memref<1x128x8xf32, #tpu.memory_space<vmem>>, vector<1x128x1xf32>
      %140 = vector.shape_cast %139 : vector<1x128x1xf32> to vector<128x1xf32>
      %c2_i32_67 = arith.constant 2 : i32
      %141 = vector.broadcast %c2_i32_67 : i32 to vector<128x128xi32>
      %142 = arith.cmpi eq, %126, %141 : vector<128x128xi32>
      %c3_i32_68 = arith.constant 3 : i32
      %143 = vector.broadcast %c3_i32_68 : i32 to vector<128x128xi32>
      %144 = arith.cmpi eq, %126, %143 : vector<128x128xi32>
      %145 = vector.shape_cast %140 : vector<128x1xf32> to vector<128x1xf32>
      %146 = vector.broadcast %145 : vector<128x1xf32> to vector<128x128xf32>
      %147 = arith.select %144, %146, %136 : vector<128x128xi1>, vector<128x128xf32>
      %cst_69 = arith.constant 0.000000e+00 : f32
      %148 = vector.broadcast %cst_69 : f32 to vector<128x128xf32>
      %149 = arith.select %142, %148, %147 : vector<128x128xi1>, vector<128x128xf32>
      %150 = vector.broadcast %138 : vector<128x1xf32> to vector<128x128xf32>
      %151 = arith.mulf %149, %150 : vector<128x128xf32>
      %152 = arith.truncf %151 : vector<128x128xf32> to vector<128x128xbf16>
      %153 = arith.index_cast %arg2 : i32 to index
      %c0_70 = arith.constant 0 : index
      %c384 = arith.constant 384 : index
      %154 = vector.load %arg9[%153, %c0_70, %c384] : memref<2x128x1024xbf16, #tpu.memory_space<vmem>>, vector<1x128x128xbf16>
      %155 = vector.shape_cast %154 : vector<1x128x128xbf16> to vector<128x128xbf16>
      %156 = vector.shape_cast %152 : vector<128x128xbf16> to vector<1x128x128xbf16>
      tpu.vector_store %arg9[%153, %c0_70, %c384], %156 {strides = array<i32>} : memref<2x128x1024xbf16, #tpu.memory_space<vmem>>, vector<1x128x128xbf16>,
      %c0_71 = arith.constant 0 : index
      %c0_72 = arith.constant 0 : index
      %157 = vector.load %arg4[%c0_71, %c0_72] : memref<128x128xi32, #tpu.memory_space<vmem>>, vector<128x128xi32>
      %c16_i32 = arith.constant 16 : i32
      %158 = vector.broadcast %c16_i32 : i32 to vector<128x128xi32>
      %159 = arith.shrsi %157, %158 : vector<128x128xi32>
      %c15_i32_73 = arith.constant 15 : i32
      %160 = vector.broadcast %c15_i32_73 : i32 to vector<128x128xi32>
      %161 = arith.andi %159, %160 : vector<128x128xi32>
      %c14_i32_74 = arith.constant 14 : i32
      %162 = vector.broadcast %c14_i32_74 : i32 to vector<128x128xi32>
      %163 = arith.andi %161, %162 : vector<128x128xi32>
      %c21_i32_75 = arith.constant 21 : i32
      %164 = vector.broadcast %c21_i32_75 : i32 to vector<128x128xi32>
      %165 = arith.shli %163, %164 : vector<128x128xi32>
      %c1056964608_i32_76 = arith.constant 1056964608 : i32
      %166 = vector.broadcast %c1056964608_i32_76 : i32 to vector<128x128xi32>
      %167 = arith.addi %165, %166 : vector<128x128xi32>
      %c31_i32_77 = arith.constant 31 : i32
      %168 = vector.broadcast %c31_i32_77 : i32 to vector<128x128xi32>
      %169 = arith.shli %161, %168 : vector<128x128xi32>
      %170 = arith.ori %167, %169 : vector<128x128xi32>
      %171 = tpu.bitcast %170 : vector<128x128xi32> -> vector<128x128xf32>
      %c0_78 = arith.constant 0 : index
      %c0_79 = arith.constant 0 : index
      %c4 = arith.constant 4 : index
      %172 = vector.load %arg5[%c0_78, %c0_79, %c4] : memref<1x128x8xf32, #tpu.memory_space<vmem>>, vector<1x128x1xf32>
      %173 = vector.shape_cast %172 : vector<1x128x1xf32> to vector<128x1xf32>
      %c0_80 = arith.constant 0 : index
      %c0_81 = arith.constant 0 : index
      %c4_82 = arith.constant 4 : index
      %174 = vector.load %arg6[%c0_80, %c0_81, %c4_82] : memref<1x128x8xf32, #tpu.memory_space<vmem>>, vector<1x128x1xf32>
      %175 = vector.shape_cast %174 : vector<1x128x1xf32> to vector<128x1xf32>
      %c2_i32_83 = arith.constant 2 : i32
      %176 = vector.broadcast %c2_i32_83 : i32 to vector<128x128xi32>
      %177 = arith.cmpi eq, %161, %176 : vector<128x128xi32>
      %c3_i32_84 = arith.constant 3 : i32
      %178 = vector.broadcast %c3_i32_84 : i32 to vector<128x128xi32>
      %179 = arith.cmpi eq, %161, %178 : vector<128x128xi32>
      %180 = vector.shape_cast %175 : vector<128x1xf32> to vector<128x1xf32>
      %181 = vector.broadcast %180 : vector<128x1xf32> to vector<128x128xf32>
      %182 = arith.select %179, %181, %171 : vector<128x128xi1>, vector<128x128xf32>
      %cst_85 = arith.constant 0.000000e+00 : f32
      %183 = vector.broadcast %cst_85 : f32 to vector<128x128xf32>
      %184 = arith.select %177, %183, %182 : vector<128x128xi1>, vector<128x128xf32>
      %185 = vector.broadcast %173 : vector<128x1xf32> to vector<128x128xf32>
      %186 = arith.mulf %184, %185 : vector<128x128xf32>
      %187 = arith.truncf %186 : vector<128x128xf32> to vector<128x128xbf16>
      %188 = arith.index_cast %arg2 : i32 to index
      %c0_86 = arith.constant 0 : index
      %c512 = arith.constant 512 : index
      %189 = vector.load %arg9[%188, %c0_86, %c512] : memref<2x128x1024xbf16, #tpu.memory_space<vmem>>, vector<1x128x128xbf16>
      %190 = vector.shape_cast %189 : vector<1x128x128xbf16> to vector<128x128xbf16>
      %191 = vector.shape_cast %187 : vector<128x128xbf16> to vector<1x128x128xbf16>
      tpu.vector_store %arg9[%188, %c0_86, %c512], %191 {strides = array<i32>} : memref<2x128x1024xbf16, #tpu.memory_space<vmem>>, vector<1x128x128xbf16>,
      %c0_87 = arith.constant 0 : index
      %c0_88 = arith.constant 0 : index
      %192 = vector.load %arg4[%c0_87, %c0_88] : memref<128x128xi32, #tpu.memory_space<vmem>>, vector<128x128xi32>
      %c20_i32 = arith.constant 20 : i32
      %193 = vector.broadcast %c20_i32 : i32 to vector<128x128xi32>
      %194 = arith.shrsi %192, %193 : vector<128x128xi32>
      %c15_i32_89 = arith.constant 15 : i32
      %195 = vector.broadcast %c15_i32_89 : i32 to vector<128x128xi32>
      %196 = arith.andi %194, %195 : vector<128x128xi32>
      %c14_i32_90 = arith.constant 14 : i32
      %197 = vector.broadcast %c14_i32_90 : i32 to vector<128x128xi32>
      %198 = arith.andi %196, %197 : vector<128x128xi32>
      %c21_i32_91 = arith.constant 21 : i32
      %199 = vector.broadcast %c21_i32_91 : i32 to vector<128x128xi32>
      %200 = arith.shli %198, %199 : vector<128x128xi32>
      %c1056964608_i32_92 = arith.constant 1056964608 : i32
      %201 = vector.broadcast %c1056964608_i32_92 : i32 to vector<128x128xi32>
      %202 = arith.addi %200, %201 : vector<128x128xi32>
      %c31_i32_93 = arith.constant 31 : i32
      %203 = vector.broadcast %c31_i32_93 : i32 to vector<128x128xi32>
      %204 = arith.shli %196, %203 : vector<128x128xi32>
      %205 = arith.ori %202, %204 : vector<128x128xi32>
      %206 = tpu.bitcast %205 : vector<128x128xi32> -> vector<128x128xf32>
      %c0_94 = arith.constant 0 : index
      %c0_95 = arith.constant 0 : index
      %c5 = arith.constant 5 : index
      %207 = vector.load %arg5[%c0_94, %c0_95, %c5] : memref<1x128x8xf32, #tpu.memory_space<vmem>>, vector<1x128x1xf32>
      %208 = vector.shape_cast %207 : vector<1x128x1xf32> to vector<128x1xf32>
      %c0_96 = arith.constant 0 : index
      %c0_97 = arith.constant 0 : index
      %c5_98 = arith.constant 5 : index
      %209 = vector.load %arg6[%c0_96, %c0_97, %c5_98] : memref<1x128x8xf32, #tpu.memory_space<vmem>>, vector<1x128x1xf32>
      %210 = vector.shape_cast %209 : vector<1x128x1xf32> to vector<128x1xf32>
      %c2_i32_99 = arith.constant 2 : i32
      %211 = vector.broadcast %c2_i32_99 : i32 to vector<128x128xi32>
      %212 = arith.cmpi eq, %196, %211 : vector<128x128xi32>
      %c3_i32_100 = arith.constant 3 : i32
      %213 = vector.broadcast %c3_i32_100 : i32 to vector<128x128xi32>
      %214 = arith.cmpi eq, %196, %213 : vector<128x128xi32>
      %215 = vector.shape_cast %210 : vector<128x1xf32> to vector<128x1xf32>
      %216 = vector.broadcast %215 : vector<128x1xf32> to vector<128x128xf32>
      %217 = arith.select %214, %216, %206 : vector<128x128xi1>, vector<128x128xf32>
      %cst_101 = arith.constant 0.000000e+00 : f32
      %218 = vector.broadcast %cst_101 : f32 to vector<128x128xf32>
      %219 = arith.select %212, %218, %217 : vector<128x128xi1>, vector<128x128xf32>
      %220 = vector.broadcast %208 : vector<128x1xf32> to vector<128x128xf32>
      %221 = arith.mulf %219, %220 : vector<128x128xf32>
      %222 = arith.truncf %221 : vector<128x128xf32> to vector<128x128xbf16>
      %223 = arith.index_cast %arg2 : i32 to index
      %c0_102 = arith.constant 0 : index
      %c640 = arith.constant 640 : index
      %224 = vector.load %arg9[%223, %c0_102, %c640] : memref<2x128x1024xbf16, #tpu.memory_space<vmem>>, vector<1x128x128xbf16>
      %225 = vector.shape_cast %224 : vector<1x128x128xbf16> to vector<128x128xbf16>
      %226 = vector.shape_cast %222 : vector<128x128xbf16> to vector<1x128x128xbf16>
      tpu.vector_store %arg9[%223, %c0_102, %c640], %226 {strides = array<i32>} : memref<2x128x1024xbf16, #tpu.memory_space<vmem>>, vector<1x128x128xbf16>,
      %c0_103 = arith.constant 0 : index
      %c0_104 = arith.constant 0 : index
      %227 = vector.load %arg4[%c0_103, %c0_104] : memref<128x128xi32, #tpu.memory_space<vmem>>, vector<128x128xi32>
      %c24_i32 = arith.constant 24 : i32
      %228 = vector.broadcast %c24_i32 : i32 to vector<128x128xi32>
      %229 = arith.shrsi %227, %228 : vector<128x128xi32>
      %c15_i32_105 = arith.constant 15 : i32
      %230 = vector.broadcast %c15_i32_105 : i32 to vector<128x128xi32>
      %231 = arith.andi %229, %230 : vector<128x128xi32>
      %c14_i32_106 = arith.constant 14 : i32
      %232 = vector.broadcast %c14_i32_106 : i32 to vector<128x128xi32>
      %233 = arith.andi %231, %232 : vector<128x128xi32>
      %c21_i32_107 = arith.constant 21 : i32
      %234 = vector.broadcast %c21_i32_107 : i32 to vector<128x128xi32>
      %235 = arith.shli %233, %234 : vector<128x128xi32>
      %c1056964608_i32_108 = arith.constant 1056964608 : i32
      %236 = vector.broadcast %c1056964608_i32_108 : i32 to vector<128x128xi32>
      %237 = arith.addi %235, %236 : vector<128x128xi32>
      %c31_i32_109 = arith.constant 31 : i32
      %238 = vector.broadcast %c31_i32_109 : i32 to vector<128x128xi32>
      %239 = arith.shli %231, %238 : vector<128x128xi32>
      %240 = arith.ori %237, %239 : vector<128x128xi32>
      %241 = tpu.bitcast %240 : vector<128x128xi32> -> vector<128x128xf32>
      %c0_110 = arith.constant 0 : index
      %c0_111 = arith.constant 0 : index
      %c6 = arith.constant 6 : index
      %242 = vector.load %arg5[%c0_110, %c0_111, %c6] : memref<1x128x8xf32, #tpu.memory_space<vmem>>, vector<1x128x1xf32>
      %243 = vector.shape_cast %242 : vector<1x128x1xf32> to vector<128x1xf32>
      %c0_112 = arith.constant 0 : index
      %c0_113 = arith.constant 0 : index
      %c6_114 = arith.constant 6 : index
      %244 = vector.load %arg6[%c0_112, %c0_113, %c6_114] : memref<1x128x8xf32, #tpu.memory_space<vmem>>, vector<1x128x1xf32>
      %245 = vector.shape_cast %244 : vector<1x128x1xf32> to vector<128x1xf32>
      %c2_i32_115 = arith.constant 2 : i32
      %246 = vector.broadcast %c2_i32_115 : i32 to vector<128x128xi32>
      %247 = arith.cmpi eq, %231, %246 : vector<128x128xi32>
      %c3_i32_116 = arith.constant 3 : i32
      %248 = vector.broadcast %c3_i32_116 : i32 to vector<128x128xi32>
      %249 = arith.cmpi eq, %231, %248 : vector<128x128xi32>
      %250 = vector.shape_cast %245 : vector<128x1xf32> to vector<128x1xf32>
      %251 = vector.broadcast %250 : vector<128x1xf32> to vector<128x128xf32>
      %252 = arith.select %249, %251, %241 : vector<128x128xi1>, vector<128x128xf32>
      %cst_117 = arith.constant 0.000000e+00 : f32
      %253 = vector.broadcast %cst_117 : f32 to vector<128x128xf32>
      %254 = arith.select %247, %253, %252 : vector<128x128xi1>, vector<128x128xf32>
      %255 = vector.broadcast %243 : vector<128x1xf32> to vector<128x128xf32>
      %256 = arith.mulf %254, %255 : vector<128x128xf32>
      %257 = arith.truncf %256 : vector<128x128xf32> to vector<128x128xbf16>
      %258 = arith.index_cast %arg2 : i32 to index
      %c0_118 = arith.constant 0 : index
      %c768 = arith.constant 768 : index
      %259 = vector.load %arg9[%258, %c0_118, %c768] : memref<2x128x1024xbf16, #tpu.memory_space<vmem>>, vector<1x128x128xbf16>
      %260 = vector.shape_cast %259 : vector<1x128x128xbf16> to vector<128x128xbf16>
      %261 = vector.shape_cast %257 : vector<128x128xbf16> to vector<1x128x128xbf16>
      tpu.vector_store %arg9[%258, %c0_118, %c768], %261 {strides = array<i32>} : memref<2x128x1024xbf16, #tpu.memory_space<vmem>>, vector<1x128x128xbf16>,
      %c0_119 = arith.constant 0 : index
      %c0_120 = arith.constant 0 : index
      %262 = vector.load %arg4[%c0_119, %c0_120] : memref<128x128xi32, #tpu.memory_space<vmem>>, vector<128x128xi32>
      %c28_i32 = arith.constant 28 : i32
      %263 = vector.broadcast %c28_i32 : i32 to vector<128x128xi32>
      %264 = arith.shrsi %262, %263 : vector<128x128xi32>
      %c15_i32_121 = arith.constant 15 : i32
      %265 = vector.broadcast %c15_i32_121 : i32 to vector<128x128xi32>
      %266 = arith.andi %264, %265 : vector<128x128xi32>
      %c14_i32_122 = arith.constant 14 : i32
      %267 = vector.broadcast %c14_i32_122 : i32 to vector<128x128xi32>
      %268 = arith.andi %266, %267 : vector<128x128xi32>
      %c21_i32_123 = arith.constant 21 : i32
      %269 = vector.broadcast %c21_i32_123 : i32 to vector<128x128xi32>
      %270 = arith.shli %268, %269 : vector<128x128xi32>
      %c1056964608_i32_124 = arith.constant 1056964608 : i32
      %271 = vector.broadcast %c1056964608_i32_124 : i32 to vector<128x128xi32>
      %272 = arith.addi %270, %271 : vector<128x128xi32>
      %c31_i32_125 = arith.constant 31 : i32
      %273 = vector.broadcast %c31_i32_125 : i32 to vector<128x128xi32>
      %274 = arith.shli %266, %273 : vector<128x128xi32>
      %275 = arith.ori %272, %274 : vector<128x128xi32>
      %276 = tpu.bitcast %275 : vector<128x128xi32> -> vector<128x128xf32>
      %c0_126 = arith.constant 0 : index
      %c0_127 = arith.constant 0 : index
      %c7 = arith.constant 7 : index
      %277 = vector.load %arg5[%c0_126, %c0_127, %c7] : memref<1x128x8xf32, #tpu.memory_space<vmem>>, vector<1x128x1xf32>
      %278 = vector.shape_cast %277 : vector<1x128x1xf32> to vector<128x1xf32>
      %c0_128 = arith.constant 0 : index
      %c0_129 = arith.constant 0 : index
      %c7_130 = arith.constant 7 : index
      %279 = vector.load %arg6[%c0_128, %c0_129, %c7_130] : memref<1x128x8xf32, #tpu.memory_space<vmem>>, vector<1x128x1xf32>
      %280 = vector.shape_cast %279 : vector<1x128x1xf32> to vector<128x1xf32>
      %c2_i32_131 = arith.constant 2 : i32
      %281 = vector.broadcast %c2_i32_131 : i32 to vector<128x128xi32>
      %282 = arith.cmpi eq, %266, %281 : vector<128x128xi32>
      %c3_i32_132 = arith.constant 3 : i32
      %283 = vector.broadcast %c3_i32_132 : i32 to vector<128x128xi32>
      %284 = arith.cmpi eq, %266, %283 : vector<128x128xi32>
      %285 = vector.shape_cast %280 : vector<128x1xf32> to vector<128x1xf32>
      %286 = vector.broadcast %285 : vector<128x1xf32> to vector<128x128xf32>
      %287 = arith.select %284, %286, %276 : vector<128x128xi1>, vector<128x128xf32>
      %cst_133 = arith.constant 0.000000e+00 : f32
      %288 = vector.broadcast %cst_133 : f32 to vector<128x128xf32>
      %289 = arith.select %282, %288, %287 : vector<128x128xi1>, vector<128x128xf32>
      %290 = vector.broadcast %278 : vector<128x1xf32> to vector<128x128xf32>
      %291 = arith.mulf %289, %290 : vector<128x128xf32>
      %292 = arith.truncf %291 : vector<128x128xf32> to vector<128x128xbf16>
      %293 = arith.index_cast %arg2 : i32 to index
      %c0_134 = arith.constant 0 : index
      %c896 = arith.constant 896 : index
      %294 = vector.load %arg9[%293, %c0_134, %c896] : memref<2x128x1024xbf16, #tpu.memory_space<vmem>>, vector<1x128x128xbf16>
      %295 = vector.shape_cast %294 : vector<1x128x128xbf16> to vector<128x128xbf16>
      %296 = vector.shape_cast %292 : vector<128x128xbf16> to vector<1x128x128xbf16>
      tpu.vector_store %arg9[%293, %c0_134, %c896], %296 {strides = array<i32>} : memref<2x128x1024xbf16, #tpu.memory_space<vmem>>, vector<1x128x128xbf16>,
    } else {
    }
    %c0 = arith.constant 0 : index
    %c0_3 = arith.constant 0 : index
    %6 = vector.load %arg8[%c0, %c0_3] : memref<16x128xf32, #tpu.memory_space<vmem>>, vector<16x128xf32>
    %c0_4 = arith.constant 0 : index
    %c0_5 = arith.constant 0 : index
    %7 = vector.load %arg3[%c0_4, %c0_5] : memref<16x1024xbf16, #tpu.memory_space<vmem>>, vector<16x1024xbf16>
    %8 = arith.index_cast %arg2 : i32 to index
    %c0_6 = arith.constant 0 : index
    %c0_7 = arith.constant 0 : index
    %9 = vector.load %arg9[%8, %c0_6, %c0_7] : memref<2x128x1024xbf16, #tpu.memory_space<vmem>>, vector<1x128x1024xbf16>
    %10 = vector.shape_cast %9 : vector<1x128x1024xbf16> to vector<128x1024xbf16>
    %cst = arith.constant dense<0.000000e+00> : vector<16x128xf32>
    %11 = tpu.matmul %7, %10, %cst {dimension_numbers = #tpu.dot_dimension_numbers<[1], [1], [0], [0], [0, 0, 1, 0], [], []>} : vector<16x1024xbf16>, vector<128x1024xbf16>, vector<16x128xf32> -> vector<16x128xf32>
    %12 = arith.addf %6, %11 : vector<16x128xf32>
    %c0_8 = arith.constant 0 : index
    %c0_9 = arith.constant 0 : index
    %13 = vector.load %arg8[%c0_8, %c0_9] : memref<16x128xf32, #tpu.memory_space<vmem>>, vector<16x128xf32>
    tpu.vector_store %arg8[%c0_8, %c0_9], %12 {strides = array<i32>} : memref<16x128xf32, #tpu.memory_space<vmem>>, vector<16x128xf32>,
    %c1_i32 = arith.constant 1 : i32
    %14 = arith.cmpi eq, %arg2, %c1_i32 : i32
    %15 = arith.extui %14 : i1 to i32
    %c0_i32_10 = arith.constant 0 : i32
    %16 = arith.cmpi ne, %15, %c0_i32_10 : i32
    scf.if %16 {
      %c0_11 = arith.constant 0 : index
      %c0_12 = arith.constant 0 : index
      %17 = vector.load %arg8[%c0_11, %c0_12] : memref<16x128xf32, #tpu.memory_space<vmem>>, vector<16x128xf32>
      %18 = arith.truncf %17 : vector<16x128xf32> to vector<16x128xbf16>
      %c0_13 = arith.constant 0 : index
      %c0_14 = arith.constant 0 : index
      %19 = vector.load %arg7[%c0_13, %c0_14] : memref<16x128xbf16, #tpu.memory_space<vmem>>, vector<16x128xbf16>
      tpu.vector_store %arg7[%c0_13, %c0_14], %18 {strides = array<i32>} : memref<16x128xbf16, #tpu.memory_space<vmem>>, vector<16x128xbf16>,
    } else {
    }
    return
  }
  func.func @transform_0(%arg0: i32, %arg1: i32, %arg2: i32) -> (i32, i32) {
    %c0_i32 = arith.constant 0 : i32
    return %arg1, %arg2 : i32, i32
  }
  func.func @transform_1(%arg0: i32, %arg1: i32, %arg2: i32) -> (i32, i32) {
    %c0_i32 = arith.constant 0 : i32
    %0 = arith.cmpi eq, %arg1, %c0_i32 : i32
    %c1_i32 = arith.constant 1 : i32
    %1 = arith.select %0, %arg2, %c1_i32 : i32
    %c0_i32_0 = arith.constant 0 : i32
    return %arg0, %1 : i32, i32
  }
  func.func @transform_2(%arg0: i32, %arg1: i32, %arg2: i32) -> (i32, i32, i32) {
    %c0_i32 = arith.constant 0 : i32
    %0 = arith.cmpi eq, %arg1, %c0_i32 : i32
    %c1_i32 = arith.constant 1 : i32
    %1 = arith.select %0, %arg2, %c1_i32 : i32
    %c0_i32_0 = arith.constant 0 : i32
    %c0_i32_1 = arith.constant 0 : i32
    return %1, %arg0, %c0_i32_0 : i32, i32, i32
  }
  func.func @transform_3(%arg0: i32, %arg1: i32, %arg2: i32) -> (i32, i32, i32) {
    %c0_i32 = arith.constant 0 : i32
    %0 = arith.cmpi eq, %arg1, %c0_i32 : i32
    %c1_i32 = arith.constant 1 : i32
    %1 = arith.select %0, %arg2, %c1_i32 : i32
    %c0_i32_0 = arith.constant 0 : i32
    %c0_i32_1 = arith.constant 0 : i32
    return %1, %arg0, %c0_i32_0 : i32, i32, i32
  }
  func.func @transform_4(%arg0: i32, %arg1: i32, %arg2: i32) -> (i32, i32) {
    %c0_i32 = arith.constant 0 : i32
    return %arg1, %arg0 : i32, i32
  }
}

</mosaic_0001>

<bundles_post_ra>
// kernel: tpu_custom_call.1
= control target key start
LH: loop header
LB: loop body
LE: loop exit
PB: predicated region body
PF: predicated region fallthrough
CT: control target
= control target key end

     0   :  { %s7875_s0 = inlined_call_operand.vmem [shape: bf16[48,2048], index: 0, kind: input, shape index: {}]   ;;  %s7876_s1 = inlined_call_operand.vmem [shape: s32[256,256], index: 1, kind: input, shape index: {}]   ;;  %s7877_s2 = inlined_call_operand.vmem [shape: f32[2,256,8], index: 2, kind: input, shape index: {}]   ;;  %s7878_s3 = inlined_call_operand.vmem [shape: f32[2,256,8], index: 3, kind: input, shape index: {}]   ;;  %s7879_s4 = inlined_call_operand.hbm [shape: bf16[48,256], index: 4, kind: output, shape index: {}]  }
   0x1   :  { %7977 = sst [smem:[#allocation45_spill]] %s7875_s0 }
   0x2   :  { %7978 = sst [smem:[#allocation46_spill]] %s7876_s1 }
   0x3   :  { %7979 = sst [smem:[#allocation47_spill]] %s7877_s2 }
   0x4   :  { %7980 = sst [smem:[#allocation48_spill]] %s7878_s3 }
   0x5   :  { %7981 = sst [smem:[#allocation49_spill]] %s7879_s4 }
   0x6   :  { %9 = vsyncpa [#allocation7], 0 }
   0x7   :  { %11 = vsyncpa [#allocation7 + $0x1], 0  ;;  %s4811_s15 = smov 0   ;;  %s4813_s16 = smov 0  }
   0x8   :  { %s4815_s17 = smov 0   ;;  %s4817_s18 = smov 0  }
   0x9   :  { %s4819_s19 = smov 0   ;;  %s4821_s20 = smov 0  }
   0xa   :  { %s4823_s21 = smov 0   ;;  %s4825_s22 = smov 0  }
   0xb   :  { %s4827_s23 = smov 0   ;;  %s4829_s24 = smov 0  }
   0xc   :  { %s4831_s25 = smov 0   ;;  %s4833_s26 = smov 0  }
   0xd   :  { %s4835_s27 = smov 0   ;;  %s4837_s28 = smov 0  }
   0xe LB: > { %7982 = sst [smem:[#allocation9_spill]] %s4747_s22  ;;  %s29_s5 = sadd.s32 1, %s4759_s25  ;;  %s4771_s28 = sphi %s4837_s28, %s17_s28   ;;  %s4767_s27 = sphi %s4835_s27, %s8198_s27   ;;  %s4763_s26 = sphi %s4833_s26, %s8197_s26   ;;  %s4759_s25 = sphi %s4831_s25, %s8196_s25   ;;  %s4755_s24 = sphi %s4829_s24, %s8195_s24   ;;  %s4751_s23 = sphi %s4827_s23, %s8194_s23   ;;  %s4747_s22 = sphi %s4825_s22, %s8206_s22   ;;  %s4743_s21 = sphi %s4823_s21, %s8205_s21   ;;  %s4739_s20 = sphi %s4821_s20, %s8204_s20   ;;  %s4735_s19 = sphi %s4819_s19, %s8203_s19   ;;  %s4731_s18 = sphi %s4817_s18, %s8202_s18   ;;  %s4727_s17 = sphi %s4815_s17, %s8201_s17   ;;  %s4723_s16 = sphi %s4813_s16, %s8200_s16   ;;  %s4719_s15 = sphi %s4811_s15, %s8199_s15  }
   0xf   : > { %7983 = sst [smem:[#allocation10_spill]] %s4759_s25  ;;  %s32_s6 = sadd.s32 1, %s4763_s26 }
  0x10   : > { %7984 = sst [smem:[#allocation11_spill]] %s4763_s26  ;;  %p30_p0 = scmp.ge.s32.totalorder %s29_s5, 2 }
  0x11   : > { %7985 = sst [smem:[#allocation12_spill]] %s4767_s27  ;;  %s36_s7 = sadd.s32 1, %s4767_s27 }
  0x12   : > { %s45_s8 = sadd.s32 1, %s4743_s21  ;;  %p52_p1 = scmp.ne.s32.totalorder %s4743_s21, %s4739_s20 }
  0x13   : > { %s8208_s5 = smov (%p30_p0, %s29_s5), 0  ;;  %s8210_s6 = smov (!%p30_p0, %s32_s6), %s4763_s26 }
  0x14   : > { %7986 = sst [smem:[#allocation13_spill]] %s8208_s5  ;;  %s41_s9 = ssub.s32 %s4759_s25, %s8208_s5 }
  0x15   : > { %p53_p2 = scmp.eq.s32.totalorder %s4771_s28, 0  ;;  %p34_p3 = scmp.ge.s32.totalorder %s8210_s6, 3 }
  0x16   : > { %p68_p4 = scmp.eq.s32.totalorder %s4763_s26, 0  ;;  %s77_s11 = sadd.s32 1, %s4735_s19 }
  0x17   : > { %p4898_p5 = por %p53_p2, %p52_p1  ;;  %s8212_s6 = smov (%p34_p3, %s8210_s6), 0 }
  0x18   : > { %7988 = sst [smem:[#allocation14_spill]] %s8212_s6  ;;  %s8214_s7 = smov (!%p34_p3, %s36_s7), %s4767_s27 }
  0x19   : > { %s40_s12 = ssub.s32 %s4763_s26, %s8212_s6  ;;  %p70_p6 = scmp.eq.s32.totalorder %s8212_s6, 0 }
  0x1a   : > { %p38_p7 = scmp.ge.s32.totalorder %s8214_s7, 2  ;;  %s42_s13 = sor.u32 %s41_s9, %s40_s12 }
  0x1b   : > { %p43_p8 = scmp.eq.s32.totalorder %s42_s13, 0  ;;  %p84_p9 = scmp.ne.s32.totalorder %s4735_s19, %s4731_s18 }
  0x1c   : > { %s8216_s7 = smov (%p38_p7, %s8214_s7), 0  ;;  %s169_s2 = sadd.s32 1, %s4727_s17 }
  0x1d   : > { %7989 = sst [smem:[#allocation15_spill]] %s8216_s7  ;;  %s72_s6 = ssub.s32 %s4767_s27, %s8216_s7 }
  0x1e   : > { %s4914_s14 = scalar_select %p43_p8, %s4743_s21, %s45_s8  }
  0x1f   : > { %s4917_s30 = scalar_select %p68_p4, %s4759_s25, 1 }
  0x20   : > { %7990 = sst [smem:[#allocation16_spill]] %s4914_s14  ;;  %p4924_p10 = por %p84_p9, %p53_p2 }
  0x21   : > { %s71_s29 = scalar_select %p70_p6, %s8208_s5, 1 }
  0x22   : > { %s166_s4 = sor.u32 %s72_s6, %s40_s12  ;;  %p179_p13 = scmp.ne.s32.totalorder %s4727_s17, %s4723_s16 }
  0x23   : > { %s73_s13 = ssub.s32 %s4917_s30, %s71_s29  ;;  %p167_p11 = scmp.eq.s32.totalorder %s166_s4, 0 }
  0x24   : > { %s74_s3 = sor.u32 %s73_s13, %s72_s6  ;;  %s7993_s14 = sadd.s32 4294967295, %s4771_s28  }
  0x25   : > { %p75_p12 = scmp.eq.s32.totalorder %s74_s3, 0  ;;  %p180_p0 = scmp.eq.s32.totalorder %s7993_s14, 11 }
  0x26   : > { %s4931_s22 = scalar_select %p167_p11, %s4727_s17, %s169_s2  }
  0x27   : > { %s4934_s8 = scalar_select %p75_p12, %s4735_s19, %s77_s11  }
  0x28   : > { %p185_p1 = scmp.ne.s32.totalorder %s4723_s16, %s4719_s15  ;;  %s7994_s7 = sadd.s32 4294967294, %s4771_s28  }
  0x29   : > { %7992 = sst [smem:[#allocation17_spill]] %s4934_s8  ;;  %p186_p3 = scmp.eq.s32.totalorder %s7994_s7, 11 }
  0x2a   : > { %p4944_p2 = por %p180_p0, %p179_p13  ;;  %p4411_p6 = scmp.ge.s32.totalorder %s4771_s28, 12 }
  0x2b   : > { %p4948_p4 = por %p186_p3, %p185_p1 }
  0x2c   : > { %202 = sbr.rel (%p4411_p6) target bundleno = 83 (0x53), region = 16 }
  0x33   : > { %205 = sbr.rel (!%p4898_p5) target bundleno = 65 (0x41), region = 20  ;;  %s207_s2 = sand.u32 (%p4898_p5), 1, %s4743_s21  }
  0x34   : > { %s4414_s3 = sshll.u32 (%p4898_p5), %s4759_s25, 3  ;;  %s4412_s4 = sshll.u32 (%p4898_p5), %s207_s2, 6 }
  0x35   : > { %s4470_s6 = sshll.u32 (%p4898_p5), %s4763_s26, 5  ;;  %s7997_s0 = sld [smem:[#allocation45_spill]] (%p4898_p5) }
  0x36   : > { %s213_s7 = sadd.s32 (%p4898_p5), %s4470_s6, %s4414_s3  ;;  %s209_s8 = scalar_lea.vmem (%p4898_p5), [#allocation4], %s4412_s4 }
  0x37   : > { %s4416_s11 = sshll.u32 (%p4898_p5), %s213_s7, 2 }
  0x3b   : > { %s215_s13 = scalar_lea.vmem %s7997_s0, %s4416_s11 }
  0x3c   : > { %v228_v0 = vld [vmem:[%s215_s13] sm:$0xff]  ;;  %v230_v1 = vld [vmem:[%s215_s13 + $0x8] sm:$0xff]  ;;  %v232_v2 = vld [vmem:[%s215_s13 + $0x10] sm:$0xff] }
  0x3d   : > { %229 = vst [vmem:[%s209_s8] sm:$0xff] %v228_v0  ;;  %231 = vst [vmem:[%s209_s8 + $0x8] sm:$0xff] %v230_v1  ;;  %v234_v3 = vld [vmem:[%s215_s13 + $0x18] sm:$0xff]  ;;  %v236_v4 = vld [vmem:[%s215_s13 + $0x40] sm:$0xff] }
  0x3e   : > { %233 = vst [vmem:[%s209_s8 + $0x10] sm:$0xff] %v232_v2  ;;  %v238_v5 = vld [vmem:[%s215_s13 + $0x48] sm:$0xff]  ;;  %235 = vst [vmem:[%s209_s8 + $0x18] sm:$0xff] %v234_v3  ;;  %v240_v6 = vld [vmem:[%s215_s13 + $0x50] sm:$0xff] }
  0x3f   : > { %237 = vst [vmem:[%s209_s8 + $0x20] sm:$0xff] %v236_v4  ;;  %239 = vst [vmem:[%s209_s8 + $0x28] sm:$0xff] %v238_v5  ;;  %v242_v7 = vld [vmem:[%s215_s13 + $0x58] sm:$0xff] }
  0x40   : > { %241 = vst [vmem:[%s209_s8 + $0x30] sm:$0xff] %v240_v6  ;;  %243 = vst [vmem:[%s209_s8 + $0x38] sm:$0xff] %v242_v7 }
  0x41 PF: > { %249 = sbr.rel (!%p4924_p10) target bundleno = 83 (0x53), region = 43  ;;  %s251_s10 = sand.u32 (%p4924_p10), 1, %s4735_s19  }
  0x42   : > { %s4471_s2 = sshll.u32 (%p4924_p10), %s4767_s27, 5  ;;  %s4417_s3 = sshll.u32 (%p4924_p10), %s251_s10, 7 }
  0x43   : > { %s258_s4 = sadd.s32 (%p4924_p10), %s4471_s2, %s4917_s30  ;;  %s7998_s1 = sld [smem:[#allocation46_spill]] (%p4924_p10) }
  0x44   : > { %s4420_s6 = sshll.u32 (%p4924_p10), %s258_s4, 3  ;;  %s253_s9 = scalar_lea.vmem (%p4924_p10), [#allocation5], %s4417_s3 }
  0x49   : > { %s4969_s12 = scalar_lea.vmem %s7998_s1, %s4420_s6 }
  0x4a   : > { %v318_v8 = vld [vmem:[%s4969_s12] sm:$0xff]  ;;  %v320_v9 = vld [vmem:[%s4969_s12 + $0x10] sm:$0xff] }
  0x4b   : > { %v322_v10 = vld [vmem:[%s4969_s12 + $0x20] sm:$0xff]  ;;  %319 = vst [vmem:[%s253_s9] sm:$0xff] %v318_v8  ;;  %321 = vst [vmem:[%s253_s9 + $0x8] sm:$0xff] %v320_v9  ;;  %v324_v11 = vld [vmem:[%s4969_s12 + $0x30] sm:$0xff] }
  0x4c   : > { %323 = vst [vmem:[%s253_s9 + $0x10] sm:$0xff] %v322_v10  ;;  %v326_v12 = vld [vmem:[%s4969_s12 + $0x40] sm:$0xff]  ;;  %v328_v13 = vld [vmem:[%s4969_s12 + $0x50] sm:$0xff]  ;;  %325 = vst [vmem:[%s253_s9 + $0x18] sm:$0xff] %v324_v11 }
  0x4d   : > { %327 = vst [vmem:[%s253_s9 + $0x20] sm:$0xff] %v326_v12  ;;  %329 = vst [vmem:[%s253_s9 + $0x28] sm:$0xff] %v328_v13  ;;  %v330_v14 = vld [vmem:[%s4969_s12 + $0x60] sm:$0xff]  ;;  %v332_v15 = vld [vmem:[%s4969_s12 + $0x70] sm:$0xff] }
  0x4e   : > { %v334_v16 = vld [vmem:[%s4969_s12 + $0x80] sm:$0xff]  ;;  %331 = vst [vmem:[%s253_s9 + $0x30] sm:$0xff] %v330_v14  ;;  %333 = vst [vmem:[%s253_s9 + $0x38] sm:$0xff] %v332_v15  ;;  %v336_v17 = vld [vmem:[%s4969_s12 + $0x90] sm:$0xff] }
  0x4f   : > { %335 = vst [vmem:[%s253_s9 + $0x40] sm:$0xff] %v334_v16  ;;  %v338_v18 = vld [vmem:[%s4969_s12 + $0xa0] sm:$0xff]  ;;  %v340_v19 = vld [vmem:[%s4969_s12 + $0xb0] sm:$0xff]  ;;  %337 = vst [vmem:[%s253_s9 + $0x48] sm:$0xff] %v336_v17 }
  0x50   : > { %339 = vst [vmem:[%s253_s9 + $0x50] sm:$0xff] %v338_v18  ;;  %341 = vst [vmem:[%s253_s9 + $0x58] sm:$0xff] %v340_v19  ;;  %v342_v20 = vld [vmem:[%s4969_s12 + $0xc0] sm:$0xff]  ;;  %v344_v21 = vld [vmem:[%s4969_s12 + $0xd0] sm:$0xff] }
  0x51   : > { %v346_v22 = vld [vmem:[%s4969_s12 + $0xe0] sm:$0xff]  ;;  %343 = vst [vmem:[%s253_s9 + $0x60] sm:$0xff] %v342_v20  ;;  %345 = vst [vmem:[%s253_s9 + $0x68] sm:$0xff] %v344_v21  ;;  %v348_v23 = vld [vmem:[%s4969_s12 + $0xf0] sm:$0xff] }
  0x52   : > { %347 = vst [vmem:[%s253_s9 + $0x70] sm:$0xff] %v346_v22  ;;  %349 = vst [vmem:[%s253_s9 + $0x78] sm:$0xff] %v348_v23 }
  0x53 PF: > { %p4421_p5 = scmp.ge.s32.totalorder %s4771_s28, 1  ;;  %p388_p7 = scmp.lt.s32.totalorder %s4771_s28, 13 }
  0x55   : > { %p389_p8 = pnand %p4421_p5, %p388_p7 }
  0x56   : > { %s7999_s30 = sld [smem:[#allocation9_spill]] (!%p389_p8)  ;;  %s395_s8 = sand.u32 (!%p389_p8), 1, %s4739_s20  }
  0x57   : > { %392 = sbr.rel (%p389_p8) target bundleno = 1172 (0x494), region = 89  ;;  %s402_s14 = sand.u32 (!%p389_p8), 1, %s4731_s18  }
  0x58   : > { %s4422_s13 = sshll.u32 (!%p389_p8), %s395_s8, 6  ;;  %s4423_s10 = sshll.u32 (!%p389_p8), %s402_s14, 7 }
  0x59   : > { %s7887_s2 = sand.u32 (!%p389_p8), 1, %s4723_s16   ;;  %p458_p9 = scmp.eq.s32.totalorder (!%p389_p8), %s4751_s23, 0 }
  0x5a   : > { %s4995_s3 = sshll.u32 (!%p389_p8), %s7887_s2, 3  ;;  %s4425_s4 = sshll.u32 (!%p389_p8), %s4755_s24, 4 }
  0x5b   : > { %p463_p10 = scmp.lt.s32.totalorder (!%p389_p8), %s4425_s4, 31  ;;  %s8000_s18 = sld [smem:[#allocation47_spill]] (!%p389_p8) }
  0x5c   : > { %s8001_s1 = sld [smem:[#allocation48_spill]] (!%p389_p8)  ;;  %s5009_s27 = scalar_lea.vmem (!%p389_p8), [#allocation4], %s4422_s13 }
  0x5d   : > { %s5011_s26 = scalar_lea.vmem (!%p389_p8), [#allocation5], %s4423_s10  ;;  %s452_s25 = scalar_lea.vmem (!%p389_p8), [#allocation6], %s4995_s3 }
  0x5e   : > { %s459_s6 = scalar_select %p458_p9, %s7999_s30, 1 }
  0x5f   : > { %s8218_s4 = smov (!%p463_p10, %s4425_s4), 31  ;;  %p4431_p12 = scmp.ne.s32.totalorder %s7999_s30, 0 }
  0x60   : > { %p461_p11 = scmp.lt.s32.totalorder %s459_s6, 1  ;;  %v4773_v24 = vmov (!%p4431_p12), 0.0  }
  0x61   : > { %491 = sbr.rel (%p4431_p12) target bundleno = 104 (0x68), region = 101  ;;  %492 = vst [vmem:[#allocation2] sm:$0xff] (!%p4431_p12), %v4773_v24  ;;  %493 = vst [vmem:[#allocation2 + $0x8] sm:$0xff] (!%p4431_p12), %v4773_v24 }
  0x62   : > { %s8220_s6 = smov (!%p461_p11, %s459_s6), 1 }
  0x63   : > { %s4426_s7 = sshll.u32 %s8220_s6, 5 }
  0x64   : > { %s466_s11 = sadd.s32 %s4426_s7, %s8218_s4 }
  0x65   : > { %s4427_s12 = sshll.u32 %s466_s11, 3 }
  0x66   : > { %s5002_s8 = scalar_lea.vmem %s8000_s18, %s4427_s12  ;;  %s5007_s2 = scalar_lea.vmem %s8001_s1, %s4427_s12 }
  0x68 PF: > { %p4432_p13 = scmp.ne.s32.totalorder %s4751_s23, 0 }
  0x6a   : > { %497 = sbr.rel (%p4432_p13) target bundleno = 775 (0x307), region = 105 }
  0x71   : > { %v5017_v25 = vld [vmem:[%s5007_s2 + $0x10] sm:$0xff]  ;;  %v5020_v26 = vld [vmem:[%s5007_s2] sm:$0xff]  ;;  %v4774_v27 = vmov 0   ;;  %v5025_v28 = vld [vmem:[%s5007_s2 + $0x18] sm:$0xff]  ;;  %v4775_v58 = vmov 1   ;;  %v4776_v61 = vmov 2  }
  0x72   : > { %8002 = vst [vmem:[#allocation18_spill] sm:$0xff] %v5020_v26  ;;  %4614 = vset.pattern.permute.xlu1 %v4774_v27  ;;  %4613 = vset.pattern.permute.xlu0 %v4774_v27  ;;  %8003 = vst [vmem:[#allocation19_spill] sm:$0xff] %v5025_v28  ;;  %v5028_v29 = vld [vmem:[%s5007_s2 + $0x8] sm:$0xff]  ;;  %v5036_v31 = vld [vmem:[%s5007_s2 + $0x20] sm:$0xff]  ;;  %s8026_s0 = sld [smem:[#allocation9_spill]] }
  0x73   : > { %702 = vperm.xlu1 %4614, %v5017_v25   ;;  %692 = vperm.xlu0 %4613, %v5020_v26   ;;  %8004 = vst [vmem:[#allocation20_spill] sm:$0xff] %v5028_v29  ;;  %v5033_v30 = vld [vmem:[%s5007_s2 + $0x28] sm:$0xff]  ;;  %v5041_v32 = vld [vmem:[%s5007_s2 + $0x38] sm:$0xff]  ;;  %v5044_v33 = vld [vmem:[%s5007_s2 + $0x30] sm:$0xff] }
  0x74   : > { %8005 = vst [vmem:[#allocation21_spill] sm:$0xff] %v5033_v30  ;;  %8006 = vst [vmem:[#allocation22_spill] sm:$0xff] %v5041_v32  ;;  %v5049_v34 = vld [vmem:[%s5007_s2 + $0x48] sm:$0xff]  ;;  %v5052_v35 = vld [vmem:[%s5007_s2 + $0x40] sm:$0xff] }
  0x75   : > { %v5057_v36 = vld [vmem:[%s5007_s2 + $0x58] sm:$0xff]  ;;  %v5060_v37 = vld [vmem:[%s5007_s2 + $0x50] sm:$0xff]  ;;  %v5065_v38 = vld [vmem:[%s5007_s2 + $0x68] sm:$0xff] }
  0x76   : > { %v5068_v39 = vld [vmem:[%s5007_s2 + $0x60] sm:$0xff]  ;;  %v5073_v40 = vld [vmem:[%s5007_s2 + $0x78] sm:$0xff]  ;;  %v5076_v41 = vld [vmem:[%s5007_s2 + $0x70] sm:$0xff] }
  0x77   : > { %707 = vperm.xlu1 %4614, %v5025_v28   ;;  %697 = vperm.xlu0 %4613, %v5028_v29   ;;  %v5081_v42 = vld [vmem:[%s5002_s8 + $0x8] sm:$0xff]  ;;  %v5084_v43 = vld [vmem:[%s5002_s8] sm:$0xff]  ;;  %v5089_v44 = vld [vmem:[%s5002_s8 + $0x18] sm:$0xff] }
  0x78   : > { %v5092_v45 = vld [vmem:[%s5002_s8 + $0x10] sm:$0xff]  ;;  %v5097_v46 = vld [vmem:[%s5002_s8 + $0x28] sm:$0xff]  ;;  %v5100_v47 = vld [vmem:[%s5002_s8 + $0x20] sm:$0xff]  ;;  %s4472_s1 = sshll.u32 %s8026_s0, 9 }
  0x79   : > { %v5105_v48 = vld [vmem:[%s5002_s8 + $0x38] sm:$0xff]  ;;  %v5108_v49 = vld [vmem:[%s5002_s8 + $0x30] sm:$0xff]  ;;  %v5113_v50 = vld [vmem:[%s5002_s8 + $0x48] sm:$0xff]  ;;  %s5402_s30 = scalar_lea.vmem [#allocation3], %s4472_s1 }
  0x7a   : > { %8007 = vst [vmem:[#allocation23_spill] sm:$0xff] %v5105_v48  ;;  %8008 = vst [vmem:[#allocation24_spill] sm:$0xff] %v5113_v50  ;;  %v5116_v51 = vld [vmem:[%s5002_s8 + $0x40] sm:$0xff]  ;;  %v5121_v52 = vld [vmem:[%s5002_s8 + $0x58] sm:$0xff] }
  0x7b   : > { %717 = vperm.xlu1 %4614, %v5033_v30   ;;  %712 = vperm.xlu0 %4613, %v5036_v31   ;;  %8009 = vst [vmem:[#allocation25_spill] sm:$0xff] %v5121_v52  ;;  %v5124_v53 = vld [vmem:[%s5002_s8 + $0x50] sm:$0xff]  ;;  %v5129_v54 = vld [vmem:[%s5002_s8 + $0x68] sm:$0xff]  ;;  %v5132_v55 = vld [vmem:[%s5002_s8 + $0x60] sm:$0xff] }
  0x7c   : > { %8010 = vst [vmem:[#allocation26_spill] sm:$0xff] %v5124_v53  ;;  %8011 = vst [vmem:[#allocation27_spill] sm:$0xff] %v5129_v54  ;;  %v5137_v56 = vld [vmem:[%s5002_s8 + $0x78] sm:$0xff]  ;;  %v5140_v57 = vld [vmem:[%s5002_s8 + $0x70] sm:$0xff] }
  0x7d   : > { %8012 = vst [vmem:[#allocation28_spill] sm:$0xff] %v5132_v55  ;;  %8013 = vst [vmem:[#allocation29_spill] sm:$0xff] %v5137_v56  ;;  %v5187_v0 = vld [vmem:[%s5011_s26 + $0x10] sm:$0xff]  ;;  %v5190_v1 = vld [vmem:[%s5011_s26] sm:$0xff] }
  0x7e   : > { %8014 = vst [vmem:[#allocation30_spill] sm:$0xff] %v5140_v57  ;;  %8015 = vst [vmem:[#allocation31_spill] sm:$0xff] %v5187_v0  ;;  %v5193_v2 = vld [vmem:[%s5011_s26 + $0x18] sm:$0xff]  ;;  %v5196_v3 = vld [vmem:[%s5011_s26 + $0x8] sm:$0xff]  ;;  %v5208_v7 = vand.u32 15, %v5187_v0  ;;  %v5211_v8 = vand.u32 15, %v5190_v1 }
  0x7f   : > { %727 = vperm.xlu1 %4614, %v5041_v32   ;;  %722 = vperm.xlu0 %4613, %v5044_v33   ;;  %8016 = vst [vmem:[#allocation32_spill] sm:$0xff] %v5190_v1  ;;  %8017 = vst [vmem:[#allocation33_spill] sm:$0xff] %v5193_v2  ;;  %v5201_v4 = vld [vmem:[%s5011_s26 + $0x28] sm:$0xff]  ;;  %v5214_v9 = vand.u32 15, %v5193_v2  ;;  %v5217_v10 = vand.u32 15, %v5196_v3  ;;  %v5220_v11 = vld [vmem:[%s5011_s26 + $0x20] sm:$0xff] }
  0x80   : > { %8018 = vst [vmem:[#allocation34_spill] sm:$0xff] %v5196_v3  ;;  %8019 = vst [vmem:[#allocation35_spill] sm:$0xff] %v5201_v4  ;;  %v5223_v12 = vld [vmem:[%s5011_s26 + $0x38] sm:$0xff]  ;;  %v5226_v13 = vand.u32 15, %v5201_v4  ;;  %v5231_v14 = vand.u32 15, %v5220_v11  ;;  %v5241_v18 = vld [vmem:[%s5011_s26 + $0x30] sm:$0xff] }
  0x81   : > { %8020 = vst [vmem:[#allocation36_spill] sm:$0xff] %v5220_v11  ;;  %8021 = vst [vmem:[#allocation37_spill] sm:$0xff] %v5223_v12  ;;  %v5236_v16 = vand.u32 15, %v5223_v12  ;;  %v5244_v19 = vld [vmem:[%s5011_s26 + $0x48] sm:$0xff]  ;;  %v532_v20 = vand.u32 14, %v5208_v7  ;;  %v530_v21 = vand.u32 14, %v5211_v8 }
  0x82   : > { %8022 = vst [vmem:[#allocation38_spill] sm:$0xff] %v5241_v18  ;;  %8023 = vst [vmem:[#allocation39_spill] sm:$0xff] %v5244_v19  ;;  %v533_v22 = vand.u32 14, %v5214_v9  ;;  %v531_v23 = vand.u32 14, %v5217_v10  ;;  %v535_v24 = vand.u32 14, %v5226_v13  ;;  %v5257_v27 = vand.u32 15, %v5244_v19 }
  0x83   : > { %737 = vperm.xlu1 %4614, %v5049_v34   ;;  %732 = vperm.xlu0 %4613, %v5052_v35   ;;  %v548_v4 = vshll.u32 %v532_v20, 21  ;;  %v580_v19 = vshll.u32 %v5208_v7, 31  ;;  %v578_v1 = vshll.u32 %v5211_v8, 31  ;;  %v581_v20 = vshll.u32 %v5214_v9, 31 }
  0x84   : > { %v549_v2 = vshll.u32 %v533_v22, 21  ;;  %vm676_vm0 = vcmp.eq.s32.totalorder %v5208_v7, 3  ;;  %vm674_vm1 = vcmp.eq.s32.totalorder %v5211_v8, 3  ;;  %vm677_vm2 = vcmp.eq.s32.totalorder %v5214_v9, 3 }
  0x85   : > { %vm675_vm3 = vcmp.eq.s32.totalorder %v5217_v10, 3  ;;  %vm679_vm4 = vcmp.eq.s32.totalorder %v5226_v13, 3  ;;  %vm678_vm5 = vcmp.eq.s32.totalorder %v5231_v14, 3  ;;  %vm659_vm6 = vcmp.eq.s32.totalorder %v5217_v10, 2 }
  0x86   : > { %vm658_vm7 = vcmp.eq.s32.totalorder %v5211_v8, 2  ;;  %vm681_vm8 = vcmp.eq.s32.totalorder %v5236_v16, 3  ;;  %vm661_vm10 = vcmp.eq.s32.totalorder %v5214_v9, 2  ;;  %vm660_vm11 = vcmp.eq.s32.totalorder %v5208_v7, 2 }
  0x87   : > { %747 = vperm.xlu1 %4614, %v5057_v36   ;;  %742 = vperm.xlu0 %4613, %v5060_v37   ;;  %vm683_vm12 = vcmp.eq.s32.totalorder %v5257_v27, 3  ;;  %vm663_vm14 = vcmp.eq.s32.totalorder %v5226_v13, 2  ;;  %vm662_vm15 = vcmp.eq.s32.totalorder %v5231_v14, 2 }
  0x8b   : > { %757 = vperm.xlu1 %4614, %v5065_v38   ;;  %752 = vperm.xlu0 %4613, %v5068_v39  }
  0x8f   : > { %767 = vperm.xlu1 %4614, %v5073_v40   ;;  %762 = vperm.xlu0 %4613, %v5076_v41  }
  0x93   : > { %809 = vperm.xlu1 %4614, %v5081_v42   ;;  %804 = vperm.xlu0 %4613, %v5084_v43  }
  0x97   : > { %819 = vperm.xlu1 %4614, %v5089_v44   ;;  %814 = vperm.xlu0 %4613, %v5092_v45  }
  0x9b   : > { %829 = vperm.xlu1 %4614, %v5097_v46   ;;  %824 = vperm.xlu0 %4613, %v5100_v47  }
  0x9f   : > { %839 = vperm.xlu1 %4614, %v5105_v48   ;;  %834 = vperm.xlu0 %4613, %v5108_v49  }
  0xa3   : > { %849 = vperm.xlu1 %4614, %v5113_v50   ;;  %844 = vperm.xlu0 %4613, %v5116_v51  }
  0xa7   : > { %859 = vperm.xlu1 %4614, %v5121_v52   ;;  %854 = vperm.xlu0 %4613, %v5124_v53  }
  0xab   : > { %869 = vperm.xlu1 %4614, %v5129_v54   ;;  %864 = vperm.xlu0 %4613, %v5132_v55  }
  0xaf   : > { %879 = vperm.xlu1 %4614, %v5137_v56   ;;  %874 = vperm.xlu0 %4613, %v5140_v57  }
  0xb3   : > { %4616 = vset.pattern.permute.xlu1 %v4775_v58  ;;  %4615 = vset.pattern.permute.xlu0 %v4775_v58  ;;  %v537_v58 = vand.u32 14, %v5236_v16 }
  0xb4   : > { %1132 = vperm.xlu1 %4616, %v5028_v29   ;;  %1127 = vperm.xlu0 %4615, %v5020_v26  }
  0xb8   : > { %1137 = vperm.xlu1 %4616, %v5017_v25   ;;  %1142 = vperm.xlu0 %4615, %v5025_v28  }
  0xbc   : > { %1147 = vperm.xlu1 %4616, %v5036_v31   ;;  %1152 = vperm.xlu0 %4615, %v5033_v30  }
  0xc0   : > { %1157 = vperm.xlu1 %4616, %v5044_v33   ;;  %1162 = vperm.xlu0 %4615, %v5041_v32  }
  0xc4   : > { %1167 = vperm.xlu1 %4616, %v5052_v35   ;;  %1172 = vperm.xlu0 %4615, %v5049_v34  }
  0xc8   : > { %1177 = vperm.xlu1 %4616, %v5060_v37   ;;  %1182 = vperm.xlu0 %4615, %v5057_v36  }
  0xcc   : > { %1187 = vperm.xlu1 %4616, %v5068_v39   ;;  %1192 = vperm.xlu0 %4615, %v5065_v38  }
  0xd0   : > { %1197 = vperm.xlu1 %4616, %v5076_v41   ;;  %1202 = vperm.xlu0 %4615, %v5073_v40  }
  0xd4   : > { %1239 = vperm.xlu1 %4616, %v5084_v43   ;;  %1244 = vperm.xlu0 %4615, %v5081_v42  }
  0xd8   : > { %1249 = vperm.xlu1 %4616, %v5092_v45   ;;  %1254 = vperm.xlu0 %4615, %v5089_v44  }
  0xdc   : > { %1259 = vperm.xlu1 %4616, %v5100_v47   ;;  %1264 = vperm.xlu0 %4615, %v5097_v46  }
  0xe0   : > { %1269 = vperm.xlu1 %4616, %v5108_v49   ;;  %1274 = vperm.xlu0 %4615, %v5105_v48   ;;  %v5304_v48 = vld [vmem:[%s5011_s26 + $0x68] sm:$0xff] }
  0xe4   : > { %1279 = vperm.xlu1 %4616, %v5116_v51   ;;  %1284 = vperm.xlu0 %4615, %v5113_v50  }
  0xe8   : > { %1289 = vperm.xlu1 %4616, %v5124_v53   ;;  %1294 = vperm.xlu0 %4615, %v5121_v52  }
  0xec   : > { %1299 = vperm.xlu1 %4616, %v5132_v55   ;;  %1304 = vperm.xlu0 %4615, %v5129_v54  }
  0xf0   : > { %1309 = vperm.xlu1 %4616, %v5140_v57   ;;  %1314 = vperm.xlu0 %4615, %v5137_v56   ;;  %v564_v56 = vadd.s32 1056964608, %v548_v4  ;;  %v5290_v4 = vld [vmem:[%s5011_s26 + $0x58] sm:$0xff]  ;;  %v585_v57 = vshll.u32 %v5236_v16, 31 }
  0xf2   : > { %v5176_v59 = vpop.permute.xlu1 %702  ;;  %v5178_v60 = vpop.permute.xlu0 %692 }
  0xf4   : > { %4617 = vset.pattern.permute.xlu1 %v4776_v61  ;;  %4618 = vset.pattern.permute.xlu0 %v4776_v61 }
  0xf5   : > { %1559 = vperm.xlu1 %4617, %v5020_v26   ;;  %1564 = vperm.xlu0 %4618, %v5028_v29   ;;  %v546_v29 = vshll.u32 %v530_v21, 21  ;;  %v579_v21 = vshll.u32 %v5217_v10, 31  ;;  %v565_v26 = vadd.s32 1056964608, %v549_v2  ;;  %v582_v2 = vshll.u32 %v5231_v14, 31 }
  0xf6   : > { %v5182_v62 = vpop.permute.xlu1 %707  ;;  %v5184_v63 = vpop.permute.xlu0 %697 }
  0xf7   : > { %v562_v0 = vadd.s32 1056964608, %v546_v29  ;;  %v5293_v29 = vld [vmem:[%s5011_s26 + $0x50] sm:$0xff]  ;;  %v597_v50 = vor.u32 %v581_v20, %v565_v26  ;;  %v5324_v20 = vand.u32 15, %v5304_v48 }
  0xf9   : > { %1569 = vperm.xlu1 %4617, %v5017_v25   ;;  %1579 = vperm.xlu0 %4618, %v5036_v31   ;;  %v5252_v25 = vand.u32 15, %v5241_v18  ;;  %v5260_v31 = vld [vmem:[%s5011_s26 + $0x40] sm:$0xff]  ;;  %v547_v18 = vshll.u32 %v531_v23, 21  ;;  %v553_v23 = vshll.u32 %v537_v58, 21 }
  0xfa   : > { %v5203_v5 = vpop.permute.xlu1 %717  ;;  %v5205_v6 = vpop.permute.xlu0 %712  ;;  %8024 = vst [vmem:[#allocation40_spill] sm:$0xff] %v5260_v31 }
  0xfb   : > { %v536_v11 = vand.u32 14, %v5252_v25  ;;  %v563_v3 = vadd.s32 1056964608, %v547_v18  ;;  %v569_v18 = vadd.s32 1056964608, %v553_v23  ;;  %v584_v26 = vshll.u32 %v5252_v25, 31 }
  0xfc   : > { %vm680_vm9 = vcmp.eq.s32.totalorder %v5252_v25, 3 }
  0xfd   : > { %1574 = vperm.xlu1 %4617, %v5025_v28   ;;  %1589 = vperm.xlu0 %4618, %v5044_v33   ;;  %v534_v33 = vand.u32 14, %v5231_v14  ;;  %v539_v28 = vand.u32 14, %v5257_v27  ;;  %v552_v58 = vshll.u32 %v536_v11, 21  ;;  %v596_v11 = vor.u32 %v580_v19, %v564_v56 }
  0xfe   : > { %v5233_v15 = vpop.permute.xlu1 %727  ;;  %v5238_v17 = vpop.permute.xlu0 %722  ;;  %v595_v53 = vor.u32 %v579_v21, %v563_v3  ;;  %v5320_v3 = vor.u32 %v585_v57, %v569_v18  ;;  %v5327_v21 = vld [vmem:[%s5011_s26 + $0x60] sm:$0xff]  ;;  %v5359_v18 = vld [vmem:[%s5011_s26 + $0x70] sm:$0xff] }
  0xff   : > { %v550_v22 = vshll.u32 %v534_v33, 21  ;;  %v555_v54 = vshll.u32 %v539_v28, 21  ;;  %v594_v28 = vor.u32 %v578_v1, %v562_v0  ;;  %v568_v56 = vadd.s32 1056964608, %v552_v58 }
 0x100   : > { %v587_v1 = vshll.u32 %v5257_v27, 31 }
 0x101   : > { %1584 = vperm.xlu1 %4617, %v5033_v30   ;;  %1599 = vperm.xlu0 %4618, %v5052_v35   ;;  %v551_v30 = vshll.u32 %v535_v24, 21  ;;  %v5269_v35 = vand.u32 15, %v5260_v31  ;;  %v571_v0 = vadd.s32 1056964608, %v555_v54  ;;  %v600_v58 = vor.u32 %v584_v26, %v568_v56 }
 0x102   : > { %v5264_v61 = vpop.permute.xlu1 %737  ;;  %v5266_v12 = vpop.permute.xlu0 %732 }
 0x103   : > { %v538_v33 = vand.u32 14, %v5269_v35  ;;  %v586_v19 = vshll.u32 %v5269_v35, 31  ;;  %vm682_vm13 = vcmp.eq.s32.totalorder %v5269_v35, 3 }
 0x105   : > { %1594 = vperm.xlu1 %4617, %v5041_v32   ;;  %1609 = vperm.xlu0 %4618, %v5060_v37   ;;  %v567_v37 = vadd.s32 1056964608, %v551_v30  ;;  %v583_v32 = vshll.u32 %v5226_v13, 31  ;;  %v566_v30 = vadd.s32 1056964608, %v550_v22  ;;  %v5314_v22 = vand.u32 15, %v5293_v29 }
 0x106   : > { %v5279_v24 = vpop.permute.xlu1 %747  ;;  %v5281_v31 = vpop.permute.xlu0 %742 }
 0x107   : > { %8025 = vst [vmem:[#allocation41_spill] sm:$0xff] %v5281_v31  ;;  %v5306_v31 = vor.u32 %v583_v32, %v567_v37  ;;  %v598_v32 = vor.u32 %v582_v2, %v566_v30  ;;  %v5346_v30 = vor.u32 %v587_v1, %v571_v0  ;;  %v5356_v2 = vld [vmem:[%s5011_s26 + $0x78] sm:$0xff] }
 0x109   : > { %1604 = vperm.xlu1 %4617, %v5049_v34   ;;  %1619 = vperm.xlu0 %4618, %v5068_v39   ;;  %v554_v34 = vshll.u32 %v538_v33, 21  ;;  %v5311_v39 = vand.u32 15, %v5290_v4  ;;  %v540_v33 = vand.u32 14, %v5314_v22 }
 0x10a   : > { %v5299_v52 = vpop.permute.xlu1 %757  ;;  %v5301_v55 = vpop.permute.xlu0 %752 }
 0x10b   : > { %v570_v54 = vadd.s32 1056964608, %v554_v34  ;;  %v541_v57 = vand.u32 14, %v5311_v39 }
 0x10d   : > { %1614 = vperm.xlu1 %4617, %v5057_v36   ;;  %1629 = vperm.xlu0 %4618, %v5076_v41   ;;  %v770_v36 = vsel %vm674_vm1, %v5178_v60, %v594_v28  ;;  %v771_v41 = vsel %vm675_vm3, %v5184_v63, %v595_v53  ;;  %v589_v60 = vshll.u32 %v5311_v39, 31  ;;  %v5350_v63 = vand.u32 15, %v5327_v21 }
 0x10e   : > { %v5329_v23 = vpop.permute.xlu1 %767  ;;  %v5331_v37 = vpop.permute.xlu0 %762  ;;  %v787_v34 = vsel %vm659_vm6, 0.0, %v771_v41  ;;  %v786_v26 = vsel %vm658_vm7, 0.0, %v770_v36  ;;  %v5374_v10 = vor.u32 %v586_v19, %v570_v54  ;;  %v557_v8 = vshll.u32 %v541_v57, 21 }
 0x10f   : > { %v556_v36 = vshll.u32 %v540_v33, 21  ;;  %v543_v41 = vand.u32 14, %v5324_v20  ;;  %v542_v53 = vand.u32 14, %v5350_v63  ;;  %v775_v33 = vsel %vm679_vm4, %v5203_v5, %v5306_v31 }
 0x110   : > { %v573_v9 = vadd.s32 1056964608, %v557_v8  ;;  %vm665_vm1 = vcmp.eq.s32.totalorder %v5236_v16, 2  ;;  %vm667_vm3 = vcmp.eq.s32.totalorder %v5257_v27, 2  ;;  %vm666_vm4 = vcmp.eq.s32.totalorder %v5269_v35, 2 }
 0x111   : > { %1624 = vperm.xlu1 %4617, %v5065_v38   ;;  %1671 = vperm.xlu0 %4618, %v5084_v43   ;;  %v772_v38 = vsel %vm676_vm0, %v5176_v59, %v596_v11  ;;  %v773_v43 = vsel %vm677_vm2, %v5182_v62, %v597_v50  ;;  %v5380_v59 = vand.u32 15, %v5356_v2  ;;  %v5383_v50 = vand.u32 15, %v5359_v18 }
 0x112   : > { %v810_v28 = vpop.permute.xlu1 %809  ;;  %v805_v56 = vpop.permute.xlu0 %804  ;;  %v789_v19 = vsel %vm661_vm10, 0.0, %v773_v43  ;;  %v788_v57 = vsel %vm660_vm11, 0.0, %v772_v38  ;;  %vm685_vm0 = vcmp.eq.s32.totalorder %v5311_v39, 3  ;;  %v558_v5 = vshll.u32 %v542_v53, 21 }
 0x113   : > { %v883_v0 = vmul.f32 %v810_v28, %v787_v34  ;;  %v882_v1 = vmul.f32 %v805_v56, %v786_v26  ;;  %v572_v28 = vadd.s32 1056964608, %v556_v36  ;;  %v559_v34 = vshll.u32 %v543_v41, 21 }
 0x114   : > { %v591_v56 = vshll.u32 %v5324_v20, 31  ;;  %v545_v31 = vand.u32 14, %v5380_v59  ;;  %v791_v38 = vsel %vm663_vm14, 0.0, %v775_v33  ;;  %vm664_vm2 = vcmp.eq.s32.totalorder %v5252_v25, 2 }
 0x115   : > { %v898_v62 = vpack.c.bf16 %v883_v0, %v882_v1  ;;  %1634 = vperm.xlu1 %4617, %v5073_v40   ;;  %1681 = vperm.xlu0 %4618, %v5092_v45   ;;  %v774_v40 = vsel %vm678_vm5, %v5205_v6, %v598_v32  ;;  %v544_v6 = vand.u32 14, %v5383_v50  ;;  %v777_v53 = vsel %vm681_vm8, %v5233_v15, %v5320_v3 }
 0x116   : > { %v820_v11 = vpop.permute.xlu1 %819  ;;  %v815_v54 = vpop.permute.xlu0 %814  ;;  %v790_v0 = vsel %vm662_vm15, 0.0, %v774_v40  ;;  %v605_v14 = vor.u32 %v589_v60, %v573_v9  ;;  %v8027_v1 = vshll.u32 %v5314_v22, 31  ;;  %v575_v36 = vadd.s32 1056964608, %v559_v34  ;;  %v8028_v34 = vld [vmem:[#allocation41_spill] sm:$0xff] }
 0x117   : > { %909 = vst [vmem:[%s5402_s30] sm:$0xff] %v898_v62  ;;  %v885_v45 = vmul.f32 %v820_v11, %v789_v19  ;;  %v884_v7 = vmul.f32 %v815_v54, %v788_v57  ;;  %v590_v41 = vshll.u32 %v5350_v63, 31  ;;  %v574_v62 = vadd.s32 1056964608, %v558_v5  ;;  %v8029_v5 = vld [vmem:[#allocation23_spill] sm:$0xff] }
 0x118   : > { %v604_v8 = vor.u32 %v8027_v1, %v572_v28  ;;  %v561_v11 = vshll.u32 %v545_v31, 21  ;;  %v560_v15 = vshll.u32 %v544_v6, 21  ;;  %v779_v54 = vsel %vm683_vm12, %v5264_v61, %v5346_v30  ;;  %v8030_v31 = vld [vmem:[#allocation26_spill] sm:$0xff] }
 0x119   : > { %v899_v32 = vpack.c.bf16 %v885_v45, %v884_v7  ;;  %1676 = vperm.xlu1 %4617, %v5081_v42   ;;  %1691 = vperm.xlu0 %4618, %v5100_v47   ;;  %v776_v42 = vsel %vm680_vm9, %v5238_v17, %v600_v58  ;;  %v793_v58 = vsel %vm665_vm1, 0.0, %v777_v53  ;;  %vm684_vm5 = vcmp.eq.s32.totalorder %v5314_v22, 3 }
 0x11a   : > { %v830_v26 = vpop.permute.xlu1 %829  ;;  %v825_v43 = vpop.permute.xlu0 %824  ;;  %v792_v19 = vsel %vm664_vm2, 0.0, %v776_v42  ;;  %v607_v25 = vor.u32 %v591_v56, %v575_v36  ;;  %v593_v57 = vshll.u32 %v5380_v59, 31  ;;  %v592_v33 = vshll.u32 %v5383_v50, 31 }
 0x11b   : > { %910 = vst [vmem:[%s5402_s30 + $0x40] sm:$0xff] %v899_v32  ;;  %v887_v47 = vmul.f32 %v830_v26, %v791_v38  ;;  %v886_v13 = vmul.f32 %v825_v43, %v790_v0  ;;  %v606_v40 = vor.u32 %v590_v41, %v574_v62  ;;  %v577_v45 = vadd.s32 1056964608, %v561_v11  ;;  %v8033_v62 = vld [vmem:[#allocation25_spill] sm:$0xff]  ;;  %v8034_v11 = vld [vmem:[#allocation30_spill] sm:$0xff] }
 0x11c   : > { %v576_v7 = vadd.s32 1056964608, %v560_v15  ;;  %v795_v30 = vsel %vm667_vm3, 0.0, %v779_v54  ;;  %vm669_vm6 = vcmp.eq.s32.totalorder %v5311_v39, 2  ;;  %vm668_vm7 = vcmp.eq.s32.totalorder %v5314_v22, 2  ;;  %v8037_v54 = vld [vmem:[#allocation18_spill] sm:$0xff] }
 0x11d   : > { %v900_v3 = vpack.c.bf16 %v887_v47, %v886_v13  ;;  %1686 = vperm.xlu1 %4617, %v5089_v44   ;;  %1701 = vperm.xlu0 %4618, %v5108_v49   ;;  %v778_v44 = vsel %vm682_vm13, %v5266_v12, %v5374_v10  ;;  %v781_v28 = vsel %vm685_vm0, %v5279_v24, %v605_v14  ;;  %vm687_vm8 = vcmp.eq.s32.totalorder %v5324_v20, 3  ;;  %v8031_v47 = vld [vmem:[#allocation24_spill] sm:$0xff] }
 0x11e   : > { %v840_v17 = vpop.permute.xlu1 %839  ;;  %v835_v60 = vpop.permute.xlu0 %834  ;;  %v794_v9 = vsel %vm666_vm4, 0.0, %v778_v44  ;;  %vm686_vm9 = vcmp.eq.s32.totalorder %v5350_v63, 3  ;;  %v609_v35 = vor.u32 %v593_v57, %v577_v45  ;;  %vm671_vm10 = vcmp.eq.s32.totalorder %v5324_v20, 2  ;;  %v8032_v13 = vld [vmem:[#allocation28_spill] sm:$0xff]  ;;  %v8038_v44 = vld [vmem:[#allocation31_spill] sm:$0xff] }
 0x11f   : > { %911 = vst [vmem:[%s5402_s30 + $0x80] sm:$0xff] %v900_v3  ;;  %v889_v49 = vmul.f32 %v840_v17, %v793_v58  ;;  %v888_v16 = vmul.f32 %v835_v60, %v792_v19  ;;  %v608_v24 = vor.u32 %v592_v33, %v576_v7  ;;  %v797_v32 = vsel %vm669_vm6, 0.0, %v781_v28  ;;  %v8036_v60 = vld [vmem:[#allocation34_spill] sm:$0xff]  ;;  %v8039_v33 = vld [vmem:[#allocation29_spill] sm:$0xff] }
 0x120   : > { %vm670_vm11 = vcmp.eq.s32.totalorder %v5350_v63, 2  ;;  %v783_v43 = vsel %vm687_vm8, %v5299_v52, %v607_v25  ;;  %v782_v0 = vsel %vm686_vm9, %v5301_v55, %v606_v40  ;;  %vm689_vm12 = vcmp.eq.s32.totalorder %v5380_v59, 3  ;;  %v8040_v40 = vld [vmem:[#allocation19_spill] sm:$0xff]  ;;  %v8043_v28 = vld [vmem:[#allocation38_spill] sm:$0xff] }
 0x121   : > { %v901_v61 = vpack.c.bf16 %v889_v49, %v888_v16  ;;  %1696 = vperm.xlu1 %4617, %v5097_v46   ;;  %1711 = vperm.xlu0 %4618, %v5116_v51   ;;  %v780_v46 = vsel %vm684_vm5, %v8028_v34, %v604_v8  ;;  %vm688_vm13 = vcmp.eq.s32.totalorder %v5383_v50, 3  ;;  %v799_v63 = vsel %vm671_vm10, 0.0, %v783_v43 }
 0x122   : > { %v850_v12 = vpop.permute.xlu1 %849  ;;  %v845_v10 = vpop.permute.xlu0 %844  ;;  %v796_v38 = vsel %vm668_vm7, 0.0, %v780_v46  ;;  %v798_v55 = vsel %vm670_vm11, 0.0, %v782_v0  ;;  %vm673_vm14 = vcmp.eq.s32.totalorder %v5380_v59, 2  ;;  %vm672_vm15 = vcmp.eq.s32.totalorder %v5383_v50, 2 }
 0x123   : > { %912 = vst [vmem:[%s5402_s30 + $0xc0] sm:$0xff] %v901_v61  ;;  %v891_v51 = vmul.f32 %v850_v12, %v795_v30  ;;  %v890_v27 = vmul.f32 %v845_v10, %v794_v9  ;;  %v785_v14 = vsel %vm689_vm12, %v5329_v23, %v609_v35  ;;  %v784_v1 = vsel %vm688_vm13, %v5331_v37, %v608_v24  ;;  %v8035_v23 = vld [vmem:[#allocation27_spill] sm:$0xff]  ;;  %v8041_v12 = vld [vmem:[#allocation36_spill] sm:$0xff] }
 0x124   : > { %v801_v15 = vsel %vm673_vm14, 0.0, %v785_v14  ;;  %v800_v17 = vsel %vm672_vm15, 0.0, %v784_v1  ;;  %v4777_v37 = vmov 3   ;;  %v934_v19 = vshra.s32 %v8036_v60, 4  ;;  %v8042_v10 = vld [vmem:[#allocation32_spill] sm:$0xff]  ;;  %v5544_v14 = vld [vmem:[%s5007_s2 + $0x20] sm:$0xff] }
 0x125   : > { %v902_v56 = vpack.c.bf16 %v891_v51, %v890_v27  ;;  %1706 = vperm.xlu1 %4617, %v8029_v5   ;;  %1721 = vperm.xlu0 %4618, %v8030_v31   ;;  %v935_v49 = vshra.s32 %v8038_v44, 4  ;;  %v937_v30 = vshra.s32 %v8041_v12, 4  ;;  %v933_v9 = vshra.s32 %v8042_v10, 4  ;;  %v8044_v27 = vld [vmem:[#allocation33_spill] sm:$0xff]  ;;  %v5547_v1 = vld [vmem:[%s5007_s2 + $0x48] sm:$0xff]  ;;  %v5568_v44 = vld [vmem:[%s5007_s2 + $0x30] sm:$0xff] }
 0x126   : > { %v860_v6 = vpop.permute.xlu1 %859  ;;  %v855_v26 = vpop.permute.xlu0 %854  ;;  %v5501_v57 = vand.u32 15, %v934_v19  ;;  %v939_v34 = vshra.s32 %v8043_v28, 4  ;;  %v936_v35 = vshra.s32 %v8044_v27, 4  ;;  %v8046_v5 = vld [vmem:[#allocation21_spill] sm:$0xff]  ;;  %v8051_v60 = vld [vmem:[#allocation39_spill] sm:$0xff]  ;;  %v943_v10 = vshra.s32 %v5293_v29, 4 }
 0x127   : > { %913 = vst [vmem:[%s5402_s30 + $0x100] sm:$0xff] %v902_v56  ;;  %v893_v53 = vmul.f32 %v860_v6, %v797_v32  ;;  %v892_v42 = vmul.f32 %v855_v26, %v796_v38  ;;  %v5505_v45 = vand.u32 15, %v935_v49  ;;  %v8045_v56 = vld [vmem:[#allocation20_spill] sm:$0xff]  ;;  %v5519_v31 = vand.u32 15, %v937_v30  ;;  %v5571_v49 = vld [vmem:[%s5007_s2 + $0x58] sm:$0xff] }
 0x128   : > { %v966_v46 = vand.u32 14, %v5501_v57  ;;  %v5526_v32 = vld [vmem:[%s5007_s2 + $0x10] sm:$0xff]  ;;  %v5529_v43 = vand.u32 15, %v933_v9  ;;  %v5531_v0 = vand.u32 15, %v939_v34  ;;  %v942_v19 = vshra.s32 %v8051_v60, 4 }
 0x129   : > { %v903_v39 = vpack.c.bf16 %v893_v53, %v892_v42  ;;  %1716 = vperm.xlu1 %4617, %v8031_v47   ;;  %1731 = vperm.xlu0 %4618, %v8032_v13   ;;  %v967_v51 = vand.u32 14, %v5505_v45  ;;  %v8047_v26 = vld [vmem:[#allocation40_spill] sm:$0xff]  ;;  %v8048_v42 = vld [vmem:[#allocation35_spill] sm:$0xff]  ;;  %v5534_v13 = vand.u32 15, %v936_v35  ;;  %vm1110_vm0 = vcmp.eq.s32.totalorder %v5501_v57, 3 }
 0x12a   : > { %v870_v22 = vpop.permute.xlu1 %869  ;;  %v865_v52 = vpop.permute.xlu0 %864  ;;  %v941_v38 = vshra.s32 %v8047_v26, 4  ;;  %v982_v53 = vshll.u32 %v966_v46, 21  ;;  %v5585_v35 = vand.u32 15, %v942_v19  ;;  %v5595_v26 = vld [vmem:[%s5007_s2 + $0x68] sm:$0xff]  ;;  %vm1094_vm1 = vcmp.eq.s32.totalorder %v5501_v57, 2 }
 0x12b   : > { %914 = vst [vmem:[%s5402_s30 + $0x140] sm:$0xff] %v903_v39  ;;  %v895_v8 = vmul.f32 %v870_v22, %v799_v63  ;;  %v894_v36 = vmul.f32 %v865_v52, %v798_v55  ;;  %v938_v39 = vshra.s32 %v8048_v42, 4  ;;  %v983_v47 = vshll.u32 %v967_v51, 21  ;;  %v8049_v22 = vld [vmem:[#allocation22_spill] sm:$0xff] }
 0x12c   : > { %v969_v63 = vand.u32 14, %v5519_v31  ;;  %v1017_v51 = vshll.u32 %v5519_v31, 31  ;;  %vm1111_vm2 = vcmp.eq.s32.totalorder %v5505_v45, 3  ;;  %vm1109_vm3 = vcmp.eq.s32.totalorder %v5529_v43, 3 }
 0x12d   : > { %v904_v41 = vpack.c.bf16 %v895_v8, %v894_v36  ;;  %1726 = vperm.xlu1 %4617, %v8033_v62   ;;  %1741 = vperm.xlu0 %4618, %v8034_v11   ;;  %v5549_v8 = vand.u32 15, %v941_v38  ;;  %v965_v36 = vand.u32 14, %v5529_v43  ;;  %v998_v62 = vadd.s32 1056964608, %v982_v53 }
 0x12e   : > { %v880_v20 = vpop.permute.xlu1 %879  ;;  %v875_v3 = vpop.permute.xlu0 %874  ;;  %v1014_v11 = vshll.u32 %v5501_v57, 31  ;;  %v1013_v53 = vshll.u32 %v5529_v43, 31  ;;  %vm1112_vm4 = vcmp.eq.s32.totalorder %v5534_v13, 3  ;;  %vm1095_vm5 = vcmp.eq.s32.totalorder %v5505_v45, 2 }
 0x12f   : > { %915 = vst [vmem:[%s5402_s30 + $0x180] sm:$0xff] %v904_v41  ;;  %v897_v59 = vmul.f32 %v880_v20, %v801_v15  ;;  %v896_v50 = vmul.f32 %v875_v3, %v800_v17  ;;  %v971_v41 = vand.u32 14, %v5531_v0  ;;  %v5554_v20 = vand.u32 15, %v938_v39 }
 0x130   : > { %v999_v15 = vadd.s32 1056964608, %v983_v47  ;;  %v1015_v3 = vshll.u32 %v5505_v45, 31  ;;  %v968_v17 = vand.u32 14, %v5534_v13  ;;  %v5573_v12 = vor.u32 %v1014_v11, %v998_v62 }
 0x131   : > { %v905_v58 = vpack.c.bf16 %v897_v59, %v896_v50  ;;  %1736 = vperm.xlu1 %4617, %v8035_v23   ;;  %4619 = vset.pattern.permute.xlu0 %v4777_v37  ;;  %v8050_v59 = vld [vmem:[#allocation37_spill] sm:$0xff]  ;;  %v973_v23 = vand.u32 14, %v5549_v8  ;;  %v970_v30 = vand.u32 14, %v5554_v20  ;;  %v1019_v39 = vshll.u32 %v5531_v0, 31 }
 0x132   : > { %1991 = vperm.xlu0 %4619, %v8037_v54   ;;  %v940_v50 = vshra.s32 %v8050_v59, 4  ;;  %v5578_v9 = vor.u32 %v1015_v3, %v999_v15  ;;  %v984_v28 = vshll.u32 %v968_v17, 21  ;;  %v1021_v3 = vshll.u32 %v5549_v8, 31 }
 0x133   : > { %916 = vst [vmem:[%s5402_s30 + $0x1c0] sm:$0xff] %v905_v58  ;;  %v5497_v16 = vpop.permute.xlu1 %1132  ;;  %v5499_v25 = vpop.permute.xlu0 %1127  ;;  %v985_v58 = vshll.u32 %v969_v63, 21  ;;  %v989_v27 = vshll.u32 %v973_v23, 21  ;;  %v986_v47 = vshll.u32 %v970_v30, 21  ;;  %v944_v63 = vshra.s32 %v5290_v4, 4 }
 0x134   : > { %v5580_v34 = vand.u32 15, %v940_v50  ;;  %v974_v17 = vand.u32 14, %v5585_v35  ;;  %v5618_v50 = vld [vmem:[%s5007_s2 + $0x50] sm:$0xff]  ;;  %v1018_v60 = vshll.u32 %v5554_v20, 31  ;;  %vm1113_vm6 = vcmp.eq.s32.totalorder %v5519_v31, 3 }
 0x135   : > { %1746 = vperm.xlu1 %4617, %v8039_v33   ;;  %v981_v33 = vshll.u32 %v965_v36, 21  ;;  %v1001_v46 = vadd.s32 1056964608, %v985_v58  ;;  %v1000_v36 = vadd.s32 1056964608, %v984_v28  ;;  %v1005_v15 = vadd.s32 1056964608, %v989_v27  ;;  %v5621_v58 = vld [vmem:[%s5007_s2 + $0x78] sm:$0xff] }
 0x136   : > { %2006 = vperm.xlu0 %4619, %v8040_v40   ;;  %v987_v40 = vshll.u32 %v971_v41, 21  ;;  %v1016_v41 = vshll.u32 %v5534_v13, 31  ;;  %v972_v62 = vand.u32 14, %v5580_v34  ;;  %8052 = vst [vmem:[#allocation41_spill] sm:$0xff] %v5621_v58  ;;  %vm1114_vm7 = vcmp.eq.s32.totalorder %v5554_v20, 3 }
 0x137   : > { %v5507_v7 = vpop.permute.xlu1 %1137  ;;  %v5509_v61 = vpop.permute.xlu0 %1142  ;;  %v997_v38 = vadd.s32 1056964608, %v981_v33  ;;  %v5609_v11 = vor.u32 %v1017_v51, %v1001_v46  ;;  %v1002_v33 = vadd.s32 1056964608, %v986_v47  ;;  %v5631_v30 = vand.u32 15, %v944_v63  ;;  %v5646_v63 = vld [vmem:[%s5007_s2 + $0x60] sm:$0xff] }
 0x138   : > { %v1003_v42 = vadd.s32 1056964608, %v987_v40  ;;  %v988_v28 = vshll.u32 %v972_v62, 21  ;;  %v945_v46 = vshra.s32 %v5327_v21, 4  ;;  %v946_v51 = vshra.s32 %v5304_v48, 4  ;;  %v5649_v21 = vld [vmem:[%s5002_s8 + $0x8] sm:$0xff] }
 0x139   : > { %4620 = vset.pattern.permute.xlu1 %v4777_v37  ;;  %v1029_v23 = vor.u32 %v1013_v53, %v997_v38  ;;  %v1020_v27 = vshll.u32 %v5580_v34, 31  ;;  %v5638_v38 = vor.u32 %v1021_v3, %v1005_v15  ;;  %v990_v53 = vshll.u32 %v974_v17, 21  ;;  %8053 = vst [vmem:[#allocation23_spill] sm:$0xff] %v5649_v21 }
 0x13a   : > { %1996 = vperm.xlu1 %4620, %v8045_v56   ;;  %2016 = vperm.xlu0 %4619, %v8046_v5   ;;  %v5592_v5 = vld [vmem:[%s5007_s2 + $0x40] sm:$0xff]  ;;  %v5625_v19 = vor.u32 %v1019_v39, %v1003_v42  ;;  %v1022_v42 = vshll.u32 %v5585_v35, 31  ;;  %v1206_v48 = vsel %vm1110_vm0, %v5497_v16, %v5573_v12  ;;  %vm1093_vm8 = vcmp.eq.s32.totalorder %v5529_v43, 2 }
 0x13b   : > { %v5521_v24 = vpop.permute.xlu1 %1147  ;;  %v5523_v6 = vpop.permute.xlu0 %1152  ;;  %vm1097_vm9 = vcmp.eq.s32.totalorder %v5519_v31, 2  ;;  %v1034_v62 = vor.u32 %v1018_v60, %v1002_v33  ;;  %vm1115_vm10 = vcmp.eq.s32.totalorder %v5531_v0, 3  ;;  %vm1116_vm11 = vcmp.eq.s32.totalorder %v5580_v34, 3 }
 0x13c   : > { %v976_v16 = vand.u32 14, %v5631_v30  ;;  %v947_v12 = vshra.s32 %v5359_v18, 4  ;;  %v1004_v3 = vadd.s32 1056964608, %v988_v28  ;;  %v5667_v17 = vand.u32 15, %v946_v51  ;;  %v5677_v28 = vld [vmem:[%s5007_s2 + $0x70] sm:$0xff] }
 0x13d   : > { %v1006_v60 = vadd.s32 1056964608, %v990_v53  ;;  %vm1096_vm12 = vcmp.eq.s32.totalorder %v5534_v13, 2  ;;  %vm1117_vm13 = vcmp.eq.s32.totalorder %v5549_v8, 3  ;;  %vm1118_vm14 = vcmp.eq.s32.totalorder %v5585_v35, 3 }
 0x13e   : > { %2001 = vperm.xlu1 %4620, %v5526_v32   ;;  %2026 = vperm.xlu0 %4619, %v8049_v22   ;;  %v5601_v22 = vand.u32 15, %v943_v10  ;;  %v1032_v10 = vor.u32 %v1016_v41, %v1000_v36  ;;  %v1205_v36 = vsel %vm1109_vm3, %v5499_v25, %v1029_v23  ;;  %v5665_v25 = vand.u32 15, %v945_v46  ;;  %v5680_v46 = vld [vmem:[%s5002_s8 + $0x18] sm:$0xff] }
 0x13f   : > { %v5539_v52 = vpop.permute.xlu1 %1157  ;;  %v5541_v55 = vpop.permute.xlu0 %1162  ;;  %v948_v23 = vshra.s32 %v5356_v2, 4  ;;  %8054 = vst [vmem:[#allocation26_spill] sm:$0xff] %v5680_v46  ;;  %v1207_v2 = vsel %vm1111_vm2, %v5507_v7, %v5578_v9  ;;  %v978_v9 = vand.u32 14, %v5667_v17  ;;  %vm1098_vm15 = vcmp.eq.s32.totalorder %v5554_v20, 2 }
 0x140   : > { %v975_v40 = vand.u32 14, %v5601_v22  ;;  %v1023_v41 = vshll.u32 %v5601_v22, 31  ;;  %v1208_v43 = vsel %vm1112_vm4, %v5509_v61, %v1032_v10  ;;  %v977_v7 = vand.u32 14, %v5665_v25 }
 0x141   : > { %v5697_v61 = vand.u32 15, %v948_v23  ;;  %v1036_v10 = vor.u32 %v1020_v27, %v1004_v3  ;;  %v1209_v23 = vsel %vm1113_vm6, %v5521_v24, %v5609_v11  ;;  %v1210_v45 = vsel %vm1114_vm7, %v5523_v6, %v1034_v62 }
 0x142   : > { %2011 = vperm.xlu1 %4620, %v5544_v14   ;;  %2036 = vperm.xlu0 %4619, %v5547_v1   ;;  %v991_v15 = vshll.u32 %v975_v40, 21  ;;  %v1221_v40 = vsel %vm1093_vm8, 0.0, %v1205_v36  ;;  %v1024_v36 = vshll.u32 %v5631_v30, 31  ;;  %v1038_v3 = vor.u32 %v1022_v42, %v1006_v60  ;;  %v5732_v60 = vld [vmem:[%s5002_s8 + $0x10] sm:$0xff] }
 0x143   : > { %v5562_v37 = vpop.permute.xlu1 %1167  ;;  %v5565_v54 = vpop.permute.xlu0 %1172  ;;  %vm1119_vm0 = vcmp.eq.s32.totalorder %v5601_v22, 3  ;;  %v994_v24 = vshll.u32 %v978_v9, 21  ;;  %v980_v11 = vand.u32 14, %v5697_v61  ;;  %v1225_v6 = vsel %vm1097_vm9, 0.0, %v1209_v23 }
 0x144   : > { %v1007_v57 = vadd.s32 1056964608, %v991_v15  ;;  %v1223_v15 = vsel %vm1095_vm5, 0.0, %v1207_v2  ;;  %vm1100_vm2 = vcmp.eq.s32.totalorder %v5580_v34, 2  ;;  %v1212_v31 = vsel %vm1116_vm11, %v5541_v55, %v1036_v10  ;;  %v5756_v10 = vld [vmem:[%s5002_s8 + $0x20] sm:$0xff] }
 0x145   : > { %v996_v23 = vshll.u32 %v980_v11, 21  ;;  %vm1101_vm3 = vcmp.eq.s32.totalorder %v5549_v8, 2  ;;  %vm1102_vm4 = vcmp.eq.s32.totalorder %v5585_v35, 2  ;;  %vm1120_vm5 = vcmp.eq.s32.totalorder %v5631_v30, 3 }
 0x146   : > { %2021 = vperm.xlu1 %4620, %v5568_v44   ;;  %2046 = vperm.xlu0 %4619, %v5571_v49   ;;  %v5720_v2 = vor.u32 %v1023_v41, %v1007_v57  ;;  %v1226_v41 = vsel %vm1098_vm15, 0.0, %v1210_v45  ;;  %v5735_v57 = vld [vmem:[%s5002_s8 + $0x38] sm:$0xff]  ;;  %v5759_v45 = vld [vmem:[%s5002_s8 + $0x48] sm:$0xff]  ;;  %vm1103_vm6 = vcmp.eq.s32.totalorder %v5601_v22, 2  ;;  %vm1104_vm7 = vcmp.eq.s32.totalorder %v5631_v30, 2 }
 0x147   : > { %v5587_v56 = vpop.permute.xlu1 %1177  ;;  %v5589_v29 = vpop.permute.xlu0 %1182  ;;  %8055 = vst [vmem:[#allocation24_spill] sm:$0xff] %v5759_v45  ;;  %vm1121_vm8 = vcmp.eq.s32.totalorder %v5665_v25, 3  ;;  %vm1122_vm9 = vcmp.eq.s32.totalorder %v5667_v17, 3  ;;  %vm1106_vm11 = vcmp.eq.s32.totalorder %v5667_v17, 2  ;;  %vm1108_vm15 = vcmp.eq.s32.totalorder %v5697_v61, 2 }
 0x14a   : > { %2031 = vperm.xlu1 %4620, %v5592_v5   ;;  %2056 = vperm.xlu0 %4619, %v5595_v26  }
 0x14b   : > { %v5613_v59 = vpop.permute.xlu1 %1187  ;;  %v5615_v4 = vpop.permute.xlu0 %1192 }
 0x14e   : > { %2041 = vperm.xlu1 %4620, %v5618_v50   ;;  %2066 = vperm.xlu0 %4619, %v5621_v58   ;;  %v1222_v58 = vsel %vm1094_vm1, 0.0, %v1206_v48  ;;  %v992_v48 = vshll.u32 %v976_v16, 21  ;;  %vm1099_vm1 = vcmp.eq.s32.totalorder %v5531_v0, 2  ;;  %v1214_v0 = vsel %vm1118_vm14, %v5565_v54, %v1038_v3 }
 0x14f   : > { %v5641_v39 = vpop.permute.xlu1 %1197  ;;  %v5643_v47 = vpop.permute.xlu0 %1202  ;;  %v1012_v54 = vadd.s32 1056964608, %v996_v23 }
 0x152   : > { %2051 = vperm.xlu1 %4620, %v5646_v63   ;;  %2108 = vperm.xlu0 %4619, %v5649_v21   ;;  %v5693_v21 = vand.u32 15, %v947_v12  ;;  %v1224_v12 = vsel %vm1096_vm12, 0.0, %v1208_v43  ;;  %v1008_v43 = vadd.s32 1056964608, %v992_v48  ;;  %v1211_v48 = vsel %vm1115_vm10, %v5539_v52, %v5625_v19 }
 0x153   : > { %v1240_v33 = vpop.permute.xlu1 %1239  ;;  %v1245_v18 = vpop.permute.xlu0 %1244  ;;  %v1227_v55 = vsel %vm1099_vm1, 0.0, %v1211_v48  ;;  %v1215_v48 = vsel %vm1119_vm0, %v5587_v56, %v5720_v2  ;;  %vm1105_vm10 = vcmp.eq.s32.totalorder %v5665_v25, 2 }
 0x154   : > { %v1317_v51 = vmul.f32 %v1240_v33, %v1221_v40  ;;  %v1318_v53 = vmul.f32 %v1245_v18, %v1222_v58  ;;  %v5706_v40 = vld [vmem:[%s5002_s8] sm:$0xff]  ;;  %v5709_v18 = vld [vmem:[%s5002_s8 + $0x28] sm:$0xff]  ;;  %v1040_v9 = vor.u32 %v1024_v36, %v1008_v43  ;;  %vm1123_vm12 = vcmp.eq.s32.totalorder %v5693_v21, 3 }
 0x155   : > { %vm1107_vm14 = vcmp.eq.s32.totalorder %v5693_v21, 2 }
 0x156   : > { %v1333_v58 = vpack.c.bf16 %v1318_v53, %v1317_v51  ;;  %2061 = vperm.xlu1 %4620, %v5677_v28   ;;  %2118 = vperm.xlu0 %4619, %v5680_v46   ;;  %v979_v51 = vand.u32 14, %v5693_v21  ;;  %v993_v53 = vshll.u32 %v977_v7, 21  ;;  %v1216_v8 = vsel %vm1120_vm5, %v5589_v29, %v1040_v9 }
 0x157   : > { %v1250_v16 = vpop.permute.xlu1 %1249  ;;  %v1255_v33 = vpop.permute.xlu0 %1254  ;;  %v1231_v29 = vsel %vm1103_vm6, 0.0, %v1215_v48  ;;  %v1232_v9 = vsel %vm1104_vm7, 0.0, %v1216_v8 }
 0x158   : > { %1341 = vst [vmem:[%s5402_s30 + $0x8] sm:$0xff] %v1333_v58  ;;  %v1319_v27 = vmul.f32 %v1250_v16, %v1223_v15  ;;  %v1320_v13 = vmul.f32 %v1255_v33, %v1224_v12  ;;  %v1025_v58 = vshll.u32 %v5665_v25, 31  ;;  %v1026_v15 = vshll.u32 %v5667_v17, 31 }
 0x159   : > { %v995_v16 = vshll.u32 %v979_v51, 21  ;;  %v1009_v12 = vadd.s32 1056964608, %v993_v53  ;;  %v1010_v33 = vadd.s32 1056964608, %v994_v24  ;;  %v1027_v51 = vshll.u32 %v5693_v21, 31 }
 0x15a   : > { %v1334_v46 = vpack.c.bf16 %v1320_v13, %v1319_v27  ;;  %2103 = vperm.xlu1 %4620, %v5706_v40   ;;  %2128 = vperm.xlu0 %4619, %v5709_v18   ;;  %v1213_v27 = vsel %vm1117_vm13, %v5562_v37, %v5638_v38  ;;  %v1028_v53 = vshll.u32 %v5697_v61, 31  ;;  %vm1124_vm13 = vcmp.eq.s32.totalorder %v5697_v61, 3 }
 0x15b   : > { %v1260_v42 = vpop.permute.xlu1 %1259  ;;  %v1265_v62 = vpop.permute.xlu0 %1264  ;;  %v1011_v43 = vadd.s32 1056964608, %v995_v16  ;;  %v1041_v24 = vor.u32 %v1025_v58, %v1009_v12  ;;  %v1042_v11 = vor.u32 %v1026_v15, %v1010_v33  ;;  %v1229_v38 = vsel %vm1101_vm3, 0.0, %v1213_v27  ;;  %v5806_v15 = vld [vmem:[%s5002_s8 + $0x40] sm:$0xff]  ;;  %v5809_v16 = vld [vmem:[%s5002_s8 + $0x68] sm:$0xff] }
 0x15c   : > { %1342 = vst [vmem:[%s5402_s30 + $0x48] sm:$0xff] %v1334_v46  ;;  %v1321_v20 = vmul.f32 %v1260_v42, %v1225_v6  ;;  %v1322_v7 = vmul.f32 %v1265_v62, %v1226_v41  ;;  %v1228_v46 = vsel %vm1100_vm2, 0.0, %v1212_v31  ;;  %v1230_v6 = vsel %vm1102_vm4, 0.0, %v1214_v0  ;;  %v5782_v41 = vld [vmem:[%s5002_s8 + $0x30] sm:$0xff]  ;;  %v5785_v62 = vld [vmem:[%s5002_s8 + $0x58] sm:$0xff]  ;;  %8057 = vst [vmem:[#allocation25_spill] sm:$0xff] %v5809_v16 }
 0x15d   : > { %8056 = vst [vmem:[#allocation28_spill] sm:$0xff] %v5785_v62  ;;  %v1044_v56 = vor.u32 %v1028_v53, %v1012_v54  ;;  %v1217_v12 = vsel %vm1121_vm8, %v5613_v59, %v1041_v24  ;;  %v1218_v33 = vsel %vm1122_vm9, %v5615_v4, %v1042_v11  ;;  %v5822_v4 = vld [vmem:[%s5002_s8 + $0x50] sm:$0xff]  ;;  %v4778_v24 = vmov 4  }
 0x15e   : > { %v1335_v52 = vpack.c.bf16 %v1322_v7, %v1321_v20  ;;  %2113 = vperm.xlu1 %4620, %v5732_v60   ;;  %2138 = vperm.xlu0 %4619, %v5735_v57   ;;  %v1043_v20 = vor.u32 %v1027_v51, %v1011_v43  ;;  %v1233_v17 = vsel %vm1105_vm10, 0.0, %v1217_v12  ;;  %v1234_v59 = vsel %vm1106_vm11, 0.0, %v1218_v33  ;;  %v5839_v51 = vld [vmem:[%s5007_s2 + $0x8] sm:$0xff]  ;;  %v5844_v11 = vld [vmem:[%s5011_s26] sm:$0xff]  ;;  %v5890_v12 = vld [vmem:[%s5011_s26 + $0x30] sm:$0xff] }
 0x15f   : > { %v1270_v19 = vpop.permute.xlu1 %1269  ;;  %v1275_v36 = vpop.permute.xlu0 %1274  ;;  %8059 = vst [vmem:[#allocation27_spill] sm:$0xff] %v5839_v51  ;;  %8060 = vst [vmem:[#allocation34_spill] sm:$0xff] %v5844_v11  ;;  %v5893_v33 = vld [vmem:[%s5011_s26 + $0x28] sm:$0xff] }
 0x160   : > { %1343 = vst [vmem:[%s5402_s30 + $0x88] sm:$0xff] %v1335_v52  ;;  %v1323_v34 = vmul.f32 %v1270_v19, %v1227_v55  ;;  %v1324_v13 = vmul.f32 %v1275_v36, %v1228_v46  ;;  %v5825_v19 = vld [vmem:[%s5002_s8 + $0x78] sm:$0xff]  ;;  %v1219_v46 = vsel %vm1123_vm12, %v5641_v39, %v1043_v20  ;;  %v1220_v36 = vsel %vm1124_vm13, %v5643_v47, %v1044_v56  ;;  %v5835_v39 = vld [vmem:[%s5002_s8 + $0x60] sm:$0xff] }
 0x161   : > { %8058 = vst [vmem:[#allocation30_spill] sm:$0xff] %v5825_v19  ;;  %v5871_v20 = vld [vmem:[%s5011_s26 + $0x8] sm:$0xff]  ;;  %8066 = vst [vmem:[#allocation32_spill] sm:$0xff] %v5890_v12 }
 0x162   : > { %v1336_v37 = vpack.c.bf16 %v1324_v13, %v1323_v34  ;;  %2123 = vperm.xlu1 %4620, %v5756_v10   ;;  %2148 = vperm.xlu0 %4619, %v5759_v45   ;;  %v1235_v34 = vsel %vm1107_vm14, 0.0, %v1219_v46  ;;  %v1236_v13 = vsel %vm1108_vm15, 0.0, %v1220_v36  ;;  %8063 = vst [vmem:[#allocation29_spill] sm:$0xff] %v5871_v20  ;;  %8067 = vst [vmem:[#allocation38_spill] sm:$0xff] %v5893_v33  ;;  %v5913_v36 = vld [vmem:[%s5007_s2 + $0x18] sm:$0xff] }
 0x163   : > { %v1280_v3 = vpop.permute.xlu1 %1279  ;;  %v1285_v42 = vpop.permute.xlu0 %1284  ;;  %8070 = vst [vmem:[#allocation21_spill] sm:$0xff] %v5913_v36 }
 0x164   : > { %1344 = vst [vmem:[%s5402_s30 + $0xc8] sm:$0xff] %v1336_v37  ;;  %v1325_v35 = vmul.f32 %v1280_v3, %v1229_v38  ;;  %v1326_v31 = vmul.f32 %v1285_v42, %v1230_v6  ;;  %v5847_v37 = vld [vmem:[%s5002_s8 + $0x70] sm:$0xff]  ;;  %v5855_v3 = vld [vmem:[%s5011_s26 + $0x10] sm:$0xff]  ;;  %v1365_v6 = vshra.s32 %v5844_v11, 8 }
 0x165   : > { %8061 = vst [vmem:[#allocation18_spill] sm:$0xff] %v5855_v3  ;;  %v1367_v42 = vshra.s32 %v5855_v3, 8 }
 0x166   : > { %v1337_v7 = vpack.c.bf16 %v1326_v31, %v1325_v35  ;;  %2133 = vperm.xlu1 %4620, %v5782_v41   ;;  %2158 = vperm.xlu0 %4619, %v5785_v62   ;;  %v5866_v35 = vld [vmem:[%s5007_s2] sm:$0xff]  ;;  %v5868_v31 = vand.u32 15, %v1365_v6 }
 0x167   : > { %v1290_v2 = vpop.permute.xlu1 %1289  ;;  %v1295_v58 = vpop.permute.xlu0 %1294  ;;  %8062 = vst [vmem:[#allocation31_spill] sm:$0xff] %v5866_v35  ;;  %v5876_v56 = vand.u32 15, %v1367_v42 }
 0x168   : > { %1345 = vst [vmem:[%s5402_s30 + $0x108] sm:$0xff] %v1337_v7  ;;  %v1327_v22 = vmul.f32 %v1290_v2, %v1231_v29  ;;  %v1328_v23 = vmul.f32 %v1295_v58, %v1232_v9  ;;  %v5874_v7 = vld [vmem:[%s5011_s26 + $0x18] sm:$0xff]  ;;  %v1366_v9 = vshra.s32 %v5871_v20, 8  ;;  %vm1541_vm0 = vcmp.eq.s32.totalorder %v5868_v31, 3 }
 0x169   : > { %8064 = vst [vmem:[#allocation19_spill] sm:$0xff] %v5874_v7  ;;  %v1368_v58 = vshra.s32 %v5874_v7, 8  ;;  %vm1525_vm2 = vcmp.eq.s32.totalorder %v5868_v31, 2  ;;  %vm1543_vm3 = vcmp.eq.s32.totalorder %v5876_v56, 3  ;;  %vm1527_vm5 = vcmp.eq.s32.totalorder %v5876_v56, 2 }
 0x16a   : > { %v1338_v30 = vpack.c.bf16 %v1328_v23, %v1327_v22  ;;  %2143 = vperm.xlu1 %4620, %v5806_v15   ;;  %2168 = vperm.xlu0 %4619, %v5809_v16   ;;  %v1397_v22 = vand.u32 14, %v5868_v31  ;;  %v5897_v23 = vld [vmem:[%s5011_s26 + $0x38] sm:$0xff] }
 0x16b   : > { %v1300_v52 = vpop.permute.xlu1 %1299  ;;  %v1305_v55 = vpop.permute.xlu0 %1304  ;;  %8068 = vst [vmem:[#allocation33_spill] sm:$0xff] %v5897_v23 }
 0x16c   : > { %1346 = vst [vmem:[%s5402_s30 + $0x148] sm:$0xff] %v1338_v30  ;;  %v1329_v25 = vmul.f32 %v1300_v52, %v1233_v17  ;;  %v1330_v27 = vmul.f32 %v1305_v55, %v1234_v59  ;;  %v5904_v17 = vld [vmem:[%s5011_s26 + $0x40] sm:$0xff]  ;;  %v1371_v52 = vshra.s32 %v5890_v12, 8  ;;  %v1370_v59 = vshra.s32 %v5893_v33, 8 }
 0x16d   : > { %8069 = vst [vmem:[#allocation20_spill] sm:$0xff] %v5904_v17 }
 0x16e   : > { %v1339_v0 = vpack.c.bf16 %v1330_v27, %v1329_v25  ;;  %2153 = vperm.xlu1 %4620, %v5822_v4   ;;  %2178 = vperm.xlu0 %4619, %v5825_v19   ;;  %v5915_v25 = vand.u32 15, %v1366_v9  ;;  %v5917_v27 = vand.u32 15, %v1368_v58  ;;  %v1445_v58 = vshll.u32 %v5868_v31, 31 }
 0x16f   : > { %v1310_v21 = vpop.permute.xlu1 %1309  ;;  %v1315_v61 = vpop.permute.xlu0 %1314 }
 0x170   : > { %1347 = vst [vmem:[%s5402_s30 + $0x188] sm:$0xff] %v1339_v0  ;;  %v1331_v47 = vmul.f32 %v1310_v21, %v1235_v34  ;;  %v1332_v43 = vmul.f32 %v1315_v61, %v1236_v13  ;;  %v1373_v0 = vshra.s32 %v5904_v17, 8  ;;  %v5925_v13 = vand.u32 15, %v1371_v52  ;;  %v5946_v52 = vld [vmem:[%s5011_s26 + $0x50] sm:$0xff] }
 0x171   : > { %v5927_v61 = vand.u32 15, %v1370_v59  ;;  %v1400_v6 = vand.u32 14, %v5917_v27  ;;  %8072 = vst [vmem:[#allocation35_spill] sm:$0xff] %v5946_v52  ;;  %v5951_v59 = vld [vmem:[%s5011_s26 + $0x48] sm:$0xff]  ;;  %vm1542_vm1 = vcmp.eq.s32.totalorder %v5915_v25, 3  ;;  %vm1544_vm4 = vcmp.eq.s32.totalorder %v5917_v27, 3 }
 0x172   : > { %v1340_v53 = vpack.c.bf16 %v1332_v43, %v1331_v47  ;;  %2163 = vperm.xlu1 %4620, %v5835_v39   ;;  %4622 = vset.pattern.permute.xlu0 %v4778_v24  ;;  %8073 = vst [vmem:[#allocation22_spill] sm:$0xff] %v5951_v59  ;;  %v1374_v33 = vshra.s32 %v5951_v59, 8  ;;  %v1451_v20 = vshll.u32 %v5925_v13, 31  ;;  %vm1526_vm8 = vcmp.eq.s32.totalorder %v5915_v25, 2 }
 0x173   : > { %2428 = vperm.xlu0 %4622, %v5839_v51   ;;  %vm1546_vm7 = vcmp.eq.s32.totalorder %v5927_v61, 3  ;;  %vm1547_vm9 = vcmp.eq.s32.totalorder %v5925_v13, 3  ;;  %vm1528_vm11 = vcmp.eq.s32.totalorder %v5917_v27, 2  ;;  %vm1530_vm15 = vcmp.eq.s32.totalorder %v5927_v61, 2 }
 0x174   : > { %1348 = vst [vmem:[%s5402_s30 + $0x1c8] sm:$0xff] %v1340_v53  ;;  %v5850_v54 = vpop.permute.xlu1 %1559  ;;  %v5852_v38 = vpop.permute.xlu0 %1564  ;;  %v5934_v53 = vld [vmem:[%s5007_s2 + $0x28] sm:$0xff] }
 0x175   : > { %8071 = vst [vmem:[#allocation40_spill] sm:$0xff] %v5934_v53 }
 0x176   : > { %2173 = vperm.xlu1 %4620, %v5847_v37  }
 0x177   : > { %2443 = vperm.xlu0 %4622, %v5544_v14   ;;  %v5881_v14 = vld [vmem:[%s5011_s26 + $0x20] sm:$0xff] }
 0x178   : > { %v5861_v48 = vpop.permute.xlu1 %1569  ;;  %v5863_v8 = vpop.permute.xlu0 %1579  ;;  %8065 = vst [vmem:[#allocation36_spill] sm:$0xff] %v5881_v14  ;;  %v1369_v30 = vshra.s32 %v5881_v14, 8 }
 0x17a   : > { %4621 = vset.pattern.permute.xlu1 %v4778_v24  ;;  %v5921_v21 = vand.u32 15, %v1369_v30  ;;  %v1398_v24 = vand.u32 14, %v5915_v25 }
 0x17b   : > { %2423 = vperm.xlu1 %4621, %v5866_v35   ;;  %2453 = vperm.xlu0 %4622, %v5568_v44   ;;  %v1399_v44 = vand.u32 14, %v5876_v56 }
 0x17c   : > { %v5883_v29 = vpop.permute.xlu1 %1574  ;;  %v5885_v2 = vpop.permute.xlu0 %1589  ;;  %v1401_v30 = vand.u32 14, %v5921_v21  ;;  %v1414_v12 = vshll.u32 %v1398_v24, 21  ;;  %v1446_v24 = vshll.u32 %v5915_v25, 31  ;;  %vm1545_vm6 = vcmp.eq.s32.totalorder %v5921_v21, 3 }
 0x17d   : > { %v1415_v34 = vshll.u32 %v1399_v44, 21  ;;  %v1447_v44 = vshll.u32 %v5876_v56, 31  ;;  %vm1529_vm14 = vcmp.eq.s32.totalorder %v5921_v21, 2 }
 0x17e   : > { %v1417_v3 = vshll.u32 %v1401_v30, 21  ;;  %v5982_v30 = vld [vmem:[%s5011_s26 + $0x60] sm:$0xff] }
 0x17f   : > { %2433 = vperm.xlu1 %4621, %v5526_v32   ;;  %2463 = vperm.xlu0 %4622, %v5592_v5   ;;  %v1372_v32 = vshra.s32 %v5897_v23, 8  ;;  %v1413_v5 = vshll.u32 %v1397_v22, 21  ;;  %v1431_v22 = vadd.s32 1056964608, %v1415_v34  ;;  %v5960_v34 = vld [vmem:[%s5007_s2 + $0x38] sm:$0xff]  ;;  %v1416_v23 = vshll.u32 %v1400_v6, 21  ;;  %8077 = vst [vmem:[#allocation43_spill] sm:$0xff] %v5982_v30 }
 0x180   : > { %v5908_v55 = vpop.permute.xlu1 %1584  ;;  %v5910_v46 = vpop.permute.xlu0 %1599  ;;  %8074 = vst [vmem:[#allocation37_spill] sm:$0xff] %v5960_v34  ;;  %v1448_v6 = vshll.u32 %v5917_v27, 31 }
 0x181   : > { %v5938_v42 = vand.u32 15, %v1372_v32  ;;  %v1429_v9 = vadd.s32 1056964608, %v1413_v5  ;;  %v1403_v32 = vand.u32 14, %v5925_v13  ;;  %v1402_v5 = vand.u32 14, %v5927_v61 }
 0x182   : > { %v5967_v11 = vor.u32 %v1447_v44, %v1431_v22  ;;  %v1432_v22 = vadd.s32 1056964608, %v1416_v23  ;;  %v1450_v23 = vshll.u32 %v5927_v61, 31 }
 0x183   : > { %2438 = vperm.xlu1 %4621, %v5913_v36   ;;  %2473 = vperm.xlu0 %4622, %v5618_v50   ;;  %v5940_v50 = vand.u32 15, %v1373_v0  ;;  %v1404_v14 = vand.u32 14, %v5938_v42  ;;  %v1461_v7 = vor.u32 %v1445_v58, %v1429_v9  ;;  %v1419_v19 = vshll.u32 %v1403_v32, 21 }
 0x184   : > { %v5929_v47 = vpop.permute.xlu1 %1594  ;;  %v5931_v43 = vpop.permute.xlu0 %1609  ;;  %v1430_v58 = vadd.s32 1056964608, %v1414_v12  ;;  %v1449_v12 = vshll.u32 %v5921_v21, 31  ;;  %vm1548_vm10 = vcmp.eq.s32.totalorder %v5938_v42, 3 }
 0x185   : > { %v1405_v51 = vand.u32 14, %v5940_v50  ;;  %v1420_v44 = vshll.u32 %v1404_v14, 21  ;;  %v1435_v16 = vadd.s32 1056964608, %v1419_v19  ;;  %vm1549_vm12 = vcmp.eq.s32.totalorder %v5940_v50, 3 }
 0x186   : > { %v1462_v62 = vor.u32 %v1446_v24, %v1430_v58 }
 0x187   : > { %2448 = vperm.xlu1 %4621, %v5934_v53   ;;  %2483 = vperm.xlu0 %4622, %v5646_v63   ;;  %v1375_v63 = vshra.s32 %v5946_v52, 8  ;;  %v1418_v53 = vshll.u32 %v1402_v5, 21  ;;  %v5974_v52 = vld [vmem:[%s5011_s26 + $0x58] sm:$0xff]  ;;  %v5989_v5 = vand.u32 15, %v1374_v33  ;;  %v1436_v35 = vadd.s32 1056964608, %v1420_v44 }
 0x188   : > { %v5955_v0 = vpop.permute.xlu1 %1604  ;;  %v5957_v17 = vpop.permute.xlu0 %1619  ;;  %8075 = vst [vmem:[#allocation39_spill] sm:$0xff] %v5974_v52  ;;  %v1376_v14 = vshra.s32 %v5974_v52, 8  ;;  %v1452_v52 = vshll.u32 %v5938_v42, 31 }
 0x189   : > { %v5987_v32 = vand.u32 15, %v1375_v63  ;;  %v1434_v36 = vadd.s32 1056964608, %v1418_v53  ;;  %v5999_v63 = vld [vmem:[%s5011_s26 + $0x68] sm:$0xff]  ;;  %v1406_v53 = vand.u32 14, %v5989_v5  ;;  %vm1550_vm13 = vcmp.eq.s32.totalorder %v5989_v5, 3 }
 0x18a   : > { %8078 = vst [vmem:[#allocation44_spill] sm:$0xff] %v5999_v63  ;;  %v6010_v24 = vand.u32 15, %v1376_v14  ;;  %v1378_v58 = vshra.s32 %v5999_v63, 8  ;;  %v1637_v63 = vsel %vm1541_vm0, %v5850_v54, %v1461_v7  ;;  %v1454_v54 = vshll.u32 %v5989_v5, 31 }
 0x18b   : > { %2458 = vperm.xlu1 %4621, %v5960_v34   ;;  %2493 = vperm.xlu0 %4622, %v5677_v28   ;;  %v1421_v28 = vshll.u32 %v1405_v51, 21  ;;  %v1433_v34 = vadd.s32 1056964608, %v1417_v3  ;;  %v1377_v51 = vshra.s32 %v5982_v30, 8  ;;  %v1407_v19 = vand.u32 14, %v5987_v32 }
 0x18c   : > { %v5976_v59 = vpop.permute.xlu1 %1614  ;;  %v5978_v9 = vpop.permute.xlu0 %1629  ;;  %v1466_v44 = vor.u32 %v1450_v23, %v1434_v36  ;;  %v1422_v36 = vshll.u32 %v1406_v53, 21  ;;  %v1408_v7 = vand.u32 14, %v6010_v24  ;;  %vm1551_vm0 = vcmp.eq.s32.totalorder %v5987_v32, 3 }
 0x18d   : > { %8076 = vst [vmem:[#allocation42_spill] sm:$0xff] %v5978_v9  ;;  %v1464_v9 = vor.u32 %v1448_v6, %v1432_v22  ;;  %v1465_v30 = vor.u32 %v1449_v12, %v1433_v34  ;;  %v6013_v6 = vld [vmem:[%s5011_s26 + $0x70] sm:$0xff]  ;;  %v6018_v22 = vor.u32 %v1451_v20, %v1435_v16  ;;  %v6021_v45 = vand.u32 15, %v1377_v51  ;;  %v6024_v34 = vld [vmem:[%s5011_s26 + $0x78] sm:$0xff] }
 0x18e   : > { %v1423_v20 = vshll.u32 %v1407_v19, 21  ;;  %v1379_v23 = vshra.s32 %v6013_v6, 8  ;;  %v6044_v51 = vand.u32 15, %v1378_v58  ;;  %v1639_v19 = vsel %vm1543_vm3, %v5861_v48, %v5967_v11 }
 0x18f   : > { %2468 = vperm.xlu1 %4621, %v5547_v1   ;;  %2535 = vperm.xlu0 %4622, %v5706_v40   ;;  %v1437_v1 = vadd.s32 1056964608, %v1421_v28  ;;  %v1453_v40 = vshll.u32 %v5940_v50, 31  ;;  %v1457_v25 = vshll.u32 %v6021_v45, 31  ;;  %v8081_v61 = vshll.u32 %v5987_v32, 31 }
 0x190   : > { %v6001_v3 = vpop.permute.xlu1 %1624  ;;  %v1672_v33 = vpop.permute.xlu0 %1671  ;;  %v1439_v31 = vadd.s32 1056964608, %v1423_v20  ;;  %v6065_v58 = vand.u32 15, %v1379_v23  ;;  %v1410_v11 = vand.u32 14, %v6044_v51  ;;  %v1641_v23 = vsel %vm1545_vm6, %v5863_v8, %v1465_v30 }
 0x191   : > { %v6038_v16 = vor.u32 %v1453_v40, %v1437_v1  ;;  %vm1533_vm3 = vcmp.eq.s32.totalorder %v5940_v50, 2  ;;  %vm1535_vm6 = vcmp.eq.s32.totalorder %v5987_v32, 2  ;;  %v4779_v32 = vmov 5  }
 0x193   : > { %2478 = vperm.xlu1 %4621, %v5571_v49   ;;  %2545 = vperm.xlu0 %4622, %v5732_v60   ;;  %v1638_v49 = vsel %vm1542_vm1, %v5852_v38, %v1462_v62  ;;  %v6034_v60 = vor.u32 %v1452_v52, %v1436_v35  ;;  %v1380_v62 = vshra.s32 %v6024_v34, 8  ;;  %v1409_v38 = vand.u32 14, %v6021_v45 }
 0x194   : > { %v6026_v12 = vpop.permute.xlu1 %1634  ;;  %v1682_v14 = vpop.permute.xlu0 %1681  ;;  %v1653_v35 = vsel %vm1525_vm2, 0.0, %v1637_v63  ;;  %v1654_v1 = vsel %vm1526_vm8, 0.0, %v1638_v49  ;;  %v1438_v63 = vadd.s32 1056964608, %v1422_v36  ;;  %v1424_v49 = vshll.u32 %v1408_v7, 21 }
 0x195   : > { %v6068_v48 = vand.u32 15, %v1380_v62  ;;  %v1425_v27 = vshll.u32 %v1409_v38, 21  ;;  %vm1531_vm1 = vcmp.eq.s32.totalorder %v5925_v13, 2  ;;  %vm1532_vm2 = vcmp.eq.s32.totalorder %v5938_v42, 2 }
 0x196   : > { %v1470_v62 = vor.u32 %v1454_v54, %v1438_v63  ;;  %v1643_v54 = vsel %vm1547_vm9, %v5885_v2, %v6018_v22  ;;  %v8082_v22 = vld [vmem:[#allocation26_spill] sm:$0xff]  ;;  %v1459_v42 = vshll.u32 %v6065_v58, 31  ;;  %vm1553_vm8 = vcmp.eq.s32.totalorder %v6021_v45, 3 }
 0x197   : > { %2488 = vperm.xlu1 %4621, %v5595_v26   ;;  %2555 = vperm.xlu0 %4622, %v5756_v10   ;;  %v1640_v26 = vsel %vm1544_vm4, %v5883_v29, %v1464_v9  ;;  %v1749_v10 = vmul.f32 %v1672_v33, %v1653_v35  ;;  %v8079_v29 = vld [vmem:[#allocation41_spill] sm:$0xff]  ;;  %v1655_v9 = vsel %vm1527_vm5, 0.0, %v1639_v19  ;;  %v1456_v35 = vshll.u32 %v6010_v24, 31 }
 0x198   : > { %v1677_v52 = vpop.permute.xlu1 %1676  ;;  %v1692_v40 = vpop.permute.xlu0 %1691  ;;  %v1656_v33 = vsel %vm1528_vm11, 0.0, %v1640_v26  ;;  %v1751_v7 = vmul.f32 %v1682_v14, %v1655_v9  ;;  %v1426_v19 = vshll.u32 %v1410_v11, 21  ;;  %v1412_v8 = vand.u32 14, %v6068_v48  ;;  %v8080_v26 = vld [vmem:[#allocation23_spill] sm:$0xff] }
 0x199   : > { %v1750_v53 = vmul.f32 %v1677_v52, %v1654_v1  ;;  %v1411_v52 = vand.u32 14, %v6065_v58  ;;  %v1440_v1 = vadd.s32 1056964608, %v1424_v49  ;;  %v1458_v49 = vshll.u32 %v6044_v51, 31 }
 0x19a   : > { %v1428_v9 = vshll.u32 %v1412_v8, 21  ;;  %vm1534_vm4 = vcmp.eq.s32.totalorder %v5989_v5, 2  ;;  %vm1552_vm5 = vcmp.eq.s32.totalorder %v6010_v24, 3  ;;  %vm1554_vm9 = vcmp.eq.s32.totalorder %v6044_v51, 3 }
 0x19b   : > { %v1765_v28 = vpack.c.bf16 %v1750_v53, %v1749_v10  ;;  %2498 = vperm.xlu1 %4621, %v8079_v29   ;;  %2565 = vperm.xlu0 %4622, %v5782_v41   ;;  %v1642_v41 = vsel %vm1546_vm7, %v5908_v55, %v1466_v44  ;;  %v1657_v55 = vsel %vm1529_vm14, 0.0, %v1641_v23  ;;  %v1471_v10 = vor.u32 %v8081_v61, %v1439_v31 }
 0x19c   : > { %v1687_v20 = vpop.permute.xlu1 %1686  ;;  %v1702_v36 = vpop.permute.xlu0 %1701  ;;  %v1658_v44 = vsel %vm1530_vm15, 0.0, %v1642_v41  ;;  %v1753_v21 = vmul.f32 %v1692_v40, %v1657_v55  ;;  %v1441_v53 = vadd.s32 1056964608, %v1425_v27  ;;  %v1427_v63 = vshll.u32 %v1411_v52, 21  ;;  %v8084_v55 = vld [vmem:[#allocation31_spill] sm:$0xff] }
 0x19d   : > { %1773 = vst [vmem:[%s5402_s30 + $0x10] sm:$0xff] %v1765_v28  ;;  %v1752_v56 = vmul.f32 %v1687_v20, %v1656_v33  ;;  %v1472_v11 = vor.u32 %v1456_v35, %v1440_v1  ;;  %v1442_v29 = vadd.s32 1056964608, %v1426_v19  ;;  %v1645_v33 = vsel %vm1549_vm12, %v5910_v46, %v6038_v16 }
 0x19e   : > { %v1473_v23 = vor.u32 %v1457_v25, %v1441_v53  ;;  %v1460_v41 = vshll.u32 %v6068_v48, 31  ;;  %v1444_v27 = vadd.s32 1056964608, %v1428_v9  ;;  %v1661_v46 = vsel %vm1533_vm3, 0.0, %v1645_v33  ;;  %v8087_v53 = vld [vmem:[#allocation21_spill] sm:$0xff] }
 0x19f   : > { %v1766_v30 = vpack.c.bf16 %v1752_v56, %v1751_v7  ;;  %2540 = vperm.xlu1 %4621, %v8080_v26   ;;  %2575 = vperm.xlu0 %4622, %v5806_v15   ;;  %v1644_v15 = vsel %vm1548_vm10, %v5929_v47, %v6034_v60  ;;  %v1659_v47 = vsel %vm1531_vm1, 0.0, %v1643_v54  ;;  %v1443_v7 = vadd.s32 1056964608, %v1427_v63  ;;  %v8089_v9 = vld [vmem:[#allocation25_spill] sm:$0xff] }
 0x1a0   : > { %v1697_v28 = vpop.permute.xlu1 %1696  ;;  %v1712_v14 = vpop.permute.xlu0 %1711  ;;  %v1660_v60 = vsel %vm1532_vm2, 0.0, %v1644_v15  ;;  %v1755_v13 = vmul.f32 %v1702_v36, %v1659_v47  ;;  %v1474_v56 = vor.u32 %v1458_v49, %v1442_v29  ;;  %vm1536_vm7 = vcmp.eq.s32.totalorder %v6010_v24, 2 }
 0x1a1   : > { %1774 = vst [vmem:[%s5402_s30 + $0x50] sm:$0xff] %v1766_v30  ;;  %v1754_v38 = vmul.f32 %v1697_v28, %v1658_v44  ;;  %v1647_v36 = vsel %vm1551_vm0, %v5931_v43, %v1471_v10  ;;  %v1475_v5 = vor.u32 %v1459_v42, %v1443_v7  ;;  %vm1537_vm10 = vcmp.eq.s32.totalorder %v6021_v45, 2  ;;  %v8085_v44 = vld [vmem:[#allocation42_spill] sm:$0xff]  ;;  %v8095_v7 = vld [vmem:[#allocation19_spill] sm:$0xff] }
 0x1a2   : > { %v1663_v43 = vsel %vm1535_vm6, 0.0, %v1647_v36  ;;  %vm1538_vm11 = vcmp.eq.s32.totalorder %v6044_v51, 2  ;;  %v1649_v19 = vsel %vm1553_vm8, %v5957_v17, %v1473_v23  ;;  %v1650_v8 = vsel %vm1554_vm9, %v6001_v3, %v1474_v56 }
 0x1a3   : > { %v1767_v2 = vpack.c.bf16 %v1754_v38, %v1753_v21  ;;  %2550 = vperm.xlu1 %4621, %v8082_v22   ;;  %2585 = vperm.xlu0 %4622, %v5822_v4   ;;  %v1646_v4 = vsel %vm1550_vm13, %v5955_v0, %v1470_v62  ;;  %v1476_v62 = vor.u32 %v1460_v41, %v1444_v27  ;;  %vm1555_vm12 = vcmp.eq.s32.totalorder %v6065_v58, 3  ;;  %v8086_v38 = vld [vmem:[#allocation28_spill] sm:$0xff]  ;;  %v6191_v41 = vld [vmem:[%s5007_s2 + $0x48] sm:$0xff] }
 0x1a4   : > { %v1707_v40 = vpop.permute.xlu1 %1706  ;;  %v1722_v31 = vpop.permute.xlu0 %1721  ;;  %v1662_v0 = vsel %vm1534_vm4, 0.0, %v1646_v4  ;;  %vm1556_vm13 = vcmp.eq.s32.totalorder %v6068_v48, 3  ;;  %v1665_v51 = vsel %vm1537_vm10, 0.0, %v1649_v19  ;;  %vm1539_vm14 = vcmp.eq.s32.totalorder %v6065_v58, 2  ;;  %v8093_v4 = vld [vmem:[#allocation37_spill] sm:$0xff] }
 0x1a5   : > { %1775 = vst [vmem:[%s5402_s30 + $0x90] sm:$0xff] %v1767_v2  ;;  %v1756_v20 = vmul.f32 %v1707_v40, %v1660_v60  ;;  %v1759_v30 = vmul.f32 %v1722_v31, %v1663_v43  ;;  %v1666_v17 = vsel %vm1538_vm11, 0.0, %v1650_v8  ;;  %vm1540_vm15 = vcmp.eq.s32.totalorder %v6068_v48, 2  ;;  %v8090_v2 = vld [vmem:[#allocation40_spill] sm:$0xff]  ;;  %v8091_v40 = vld [vmem:[#allocation30_spill] sm:$0xff] }
 0x1a6   : > { %v1651_v28 = vsel %vm1555_vm12, %v8085_v44, %v1475_v5  ;;  %v8092_v31 = vld [vmem:[#allocation18_spill] sm:$0xff]  ;;  %v1800_v56 = vshra.s32 %v8095_v7, 12  ;;  %v8105_v7 = vld [vmem:[#allocation20_spill] sm:$0xff] }
 0x1a7   : > { %v1768_v35 = vpack.c.bf16 %v1756_v20, %v1755_v13  ;;  %2560 = vperm.xlu1 %4621, %v5709_v18   ;;  %2595 = vperm.xlu0 %4622, %v5835_v39   ;;  %v1648_v18 = vsel %vm1552_vm5, %v5976_v59, %v1472_v11  ;;  %v1757_v39 = vmul.f32 %v1712_v14, %v1661_v46  ;;  %v1667_v58 = vsel %vm1539_vm14, 0.0, %v1651_v28  ;;  %v8094_v13 = vld [vmem:[#allocation34_spill] sm:$0xff]  ;;  %v6238_v28 = vld [vmem:[%s5007_s2 + $0x68] sm:$0xff] }
 0x1a8   : > { %v1717_v16 = vpop.permute.xlu1 %1716  ;;  %v1732_v25 = vpop.permute.xlu0 %1731  ;;  %v1664_v59 = vsel %vm1536_vm7, 0.0, %v1648_v18  ;;  %v1652_v14 = vsel %vm1556_vm13, %v6026_v12, %v1476_v62  ;;  %v8088_v12 = vld [vmem:[#allocation29_spill] sm:$0xff]  ;;  %v1799_v33 = vshra.s32 %v8092_v31, 12  ;;  %v1797_v20 = vshra.s32 %v8094_v13, 12  ;;  %v8100_v62 = vld [vmem:[#allocation22_spill] sm:$0xff]  ;;  %8102 = vst [vmem:[#allocation41_spill] sm:$0xff] %v6238_v28 }
 0x1a9   : > { %1776 = vst [vmem:[%s5402_s30 + $0xd0] sm:$0xff] %v1768_v35  ;;  %v1758_v50 = vmul.f32 %v1717_v16, %v1662_v0  ;;  %v1761_v54 = vmul.f32 %v1732_v25, %v1665_v51  ;;  %v1668_v61 = vsel %vm1540_vm15, 0.0, %v1652_v14  ;;  %v1798_v11 = vshra.s32 %v8088_v12, 12  ;;  %v8096_v35 = vld [vmem:[#allocation38_spill] sm:$0xff]  ;;  %v8097_v16 = vld [vmem:[#allocation27_spill] sm:$0xff]  ;;  %v8098_v25 = vld [vmem:[#allocation36_spill] sm:$0xff] }
 0x1aa   : > { %v1802_v46 = vshra.s32 %v8096_v35, 12  ;;  %v6196_v0 = vand.u32 15, %v1799_v33  ;;  %v1801_v36 = vshra.s32 %v8098_v25, 12  ;;  %v6201_v18 = vand.u32 15, %v1797_v20  ;;  %v6235_v44 = vld [vmem:[%s5007_s2 + $0x20] sm:$0xff] }
 0x1ab   : > { %v1769_v52 = vpack.c.bf16 %v1758_v50, %v1757_v39  ;;  %2570 = vperm.xlu1 %4621, %v5735_v57   ;;  %2605 = vperm.xlu0 %4622, %v5847_v37   ;;  %v8083_v37 = vld [vmem:[#allocation24_spill] sm:$0xff]  ;;  %v6180_v60 = vand.u32 15, %v1798_v11  ;;  %v8099_v39 = vld [vmem:[#allocation33_spill] sm:$0xff] }
 0x1ac   : > { %v1727_v24 = vpop.permute.xlu1 %1726  ;;  %v1742_v1 = vpop.permute.xlu0 %1741  ;;  %v1804_v50 = vshra.s32 %v8099_v39, 12  ;;  %v6217_v8 = vand.u32 15, %v1802_v46  ;;  %v1879_v13 = vshll.u32 %v6196_v0, 31  ;;  %vm1973_vm0 = vcmp.eq.s32.totalorder %v6201_v18, 3 }
 0x1ad   : > { %1777 = vst [vmem:[%s5402_s30 + $0x110] sm:$0xff] %v1769_v52  ;;  %v1760_v26 = vmul.f32 %v1727_v24, %v1664_v59  ;;  %v1763_v63 = vmul.f32 %v1742_v1, %v1667_v58  ;;  %v1830_v27 = vand.u32 14, %v6180_v60  ;;  %v1806_v52 = vshra.s32 %v8100_v62, 12  ;;  %v6210_v59 = vld [vmem:[%s5007_s2 + $0x10] sm:$0xff]  ;;  %v6213_v24 = vld [vmem:[%s5007_s2 + $0x58] sm:$0xff]  ;;  %v6278_v62 = vld [vmem:[%s5007_s2 + $0x40] sm:$0xff] }
 0x1ae   : > { %v6215_v1 = vand.u32 15, %v1800_v56  ;;  %v6226_v51 = vand.u32 15, %v1804_v50  ;;  %v1805_v56 = vshra.s32 %v8105_v7, 12  ;;  %vm1974_vm1 = vcmp.eq.s32.totalorder %v6180_v60, 3 }
 0x1af   : > { %v1770_v57 = vpack.c.bf16 %v1760_v26, %v1759_v30  ;;  %2580 = vperm.xlu1 %4621, %v8083_v37   ;;  %4623 = vset.pattern.permute.xlu0 %v4779_v32  ;;  %v1846_v19 = vshll.u32 %v1830_v27, 21  ;;  %v1831_v30 = vand.u32 14, %v6196_v0  ;;  %v8101_v26 = vld [vmem:[#allocation32_spill] sm:$0xff]  ;;  %v6221_v37 = vand.u32 15, %v1801_v36 }
 0x1b0   : > { %v1737_v3 = vpop.permute.xlu1 %1736  ;;  %2855 = vperm.xlu0 %4623, %v8084_v55   ;;  %v1832_v14 = vand.u32 14, %v6215_v1  ;;  %v1877_v27 = vshll.u32 %v6201_v18, 31  ;;  %vm1976_vm2 = vcmp.eq.s32.totalorder %v6215_v1, 3  ;;  %vm1975_vm3 = vcmp.eq.s32.totalorder %v6196_v0, 3 }
 0x1b1   : > { %1778 = vst [vmem:[%s5402_s30 + $0x150] sm:$0xff] %v1770_v57  ;;  %v1762_v15 = vmul.f32 %v1737_v3, %v1666_v17  ;;  %v6165_v21 = vpop.permute.xlu0 %1991  ;;  %v1803_v57 = vshra.s32 %v8101_v26, 12  ;;  %v6228_v17 = vand.u32 15, %v1806_v52  ;;  %v6281_v52 = vld [vmem:[%s5002_s8 + $0x8] sm:$0xff]  ;;  %vm1978_vm4 = vcmp.eq.s32.totalorder %v6217_v8, 3 }
 0x1b2   : > { %8106 = vst [vmem:[#allocation26_spill] sm:$0xff] %v6281_v52  ;;  %vm1977_vm5 = vcmp.eq.s32.totalorder %v6221_v37, 3  ;;  %vm1958_vm6 = vcmp.eq.s32.totalorder %v6180_v60, 2  ;;  %vm1957_vm7 = vcmp.eq.s32.totalorder %v6201_v18, 2  ;;  %vm1980_vm8 = vcmp.eq.s32.totalorder %v6226_v51, 3 }
 0x1b3   : > { %v1771_v45 = vpack.c.bf16 %v1762_v15, %v1761_v54  ;;  %2590 = vperm.xlu1 %4621, %v8086_v38   ;;  %v1862_v54 = vadd.s32 1056964608, %v1846_v19  ;;  %v1878_v15 = vshll.u32 %v6180_v60, 31  ;;  %v1847_v38 = vshll.u32 %v1831_v30, 21 }
 0x1b4   : > { %v1747_v10 = vpop.permute.xlu1 %1746  ;;  %2870 = vperm.xlu0 %4623, %v8087_v53   ;;  %v6243_v58 = vand.u32 15, %v1803_v57  ;;  %v1838_v12 = vand.u32 14, %v6228_v17  ;;  %v1880_v30 = vshll.u32 %v6215_v1, 31  ;;  %v1882_v57 = vshll.u32 %v6217_v8, 31 }
 0x1b5   : > { %1779 = vst [vmem:[%s5402_s30 + $0x190] sm:$0xff] %v1771_v45  ;;  %v1764_v48 = vmul.f32 %v1747_v10, %v1668_v61  ;;  %v6170_v49 = vpop.permute.xlu0 %2006  ;;  %v1834_v45 = vand.u32 14, %v6217_v8  ;;  %v1833_v61 = vand.u32 14, %v6221_v37  ;;  %v8103_v10 = vld [vmem:[#allocation39_spill] sm:$0xff]  ;;  %v6261_v31 = vor.u32 %v1878_v15, %v1862_v54 }
 0x1b6   : > { %v1808_v53 = vshra.s32 %v8103_v10, 12  ;;  %v1835_v20 = vand.u32 14, %v6243_v58  ;;  %v1854_v36 = vshll.u32 %v1838_v12, 21  ;;  %v6288_v54 = vand.u32 15, %v1805_v56 }
 0x1b7   : > { %v1772_v29 = vpack.c.bf16 %v1764_v48, %v1763_v63  ;;  %2600 = vperm.xlu1 %4621, %v8089_v9   ;;  %v1836_v48 = vand.u32 14, %v6226_v51  ;;  %v6256_v9 = vld [vmem:[%s5007_s2 + $0x30] sm:$0xff]  ;;  %v1850_v33 = vshll.u32 %v1834_v45, 21  ;;  %v1849_v35 = vshll.u32 %v1833_v61, 21  ;;  %v8107_v61 = vld [vmem:[#allocation35_spill] sm:$0xff] }
 0x1b8   : > { %2880 = vperm.xlu0 %4623, %v8090_v2   ;;  %v6259_v2 = vld [vmem:[%s5007_s2 + $0x78] sm:$0xff]  ;;  %v6268_v46 = vand.u32 15, %v1808_v53  ;;  %v1881_v45 = vshll.u32 %v6221_v37, 31  ;;  %v1807_v10 = vshra.s32 %v8107_v61, 12  ;;  %v1886_v12 = vshll.u32 %v6228_v17, 31  ;;  %v8108_v61 = vld [vmem:[#allocation44_spill] sm:$0xff] }
 0x1b9   : > { %1780 = vst [vmem:[%s5402_s30 + $0x1d0] sm:$0xff] %v1772_v29  ;;  %v6176_v22 = vpop.permute.xlu1 %1996  ;;  %v6178_v47 = vpop.permute.xlu0 %2016  ;;  %8104 = vst [vmem:[#allocation23_spill] sm:$0xff] %v6259_v2  ;;  %v1852_v25 = vshll.u32 %v1836_v48, 21  ;;  %v1866_v26 = vadd.s32 1056964608, %v1850_v33  ;;  %v1865_v15 = vadd.s32 1056964608, %v1849_v35  ;;  %v1870_v48 = vadd.s32 1056964608, %v1854_v36 }
 0x1ba   : > { %v1837_v36 = vand.u32 14, %v6288_v54  ;;  %vm1979_vm9 = vcmp.eq.s32.totalorder %v6243_v58, 3  ;;  %vm1960_vm10 = vcmp.eq.s32.totalorder %v6215_v1, 2  ;;  %vm1959_vm11 = vcmp.eq.s32.totalorder %v6196_v0, 2 }
 0x1bb   : > { %2610 = vperm.xlu1 %4621, %v8091_v40   ;;  %v1848_v40 = vshll.u32 %v1832_v14, 21  ;;  %v1851_v14 = vshll.u32 %v1835_v20, 21  ;;  %v1868_v53 = vadd.s32 1056964608, %v1852_v25  ;;  %v6305_v56 = vor.u32 %v1882_v57, %v1866_v26 }
 0x1bc   : > { %2890 = vperm.xlu0 %4623, %v8093_v4   ;;  %v1863_v4 = vadd.s32 1056964608, %v1847_v38  ;;  %v1840_v38 = vand.u32 14, %v6268_v46  ;;  %v1883_v25 = vshll.u32 %v6243_v58, 31  ;;  %v6322_v57 = vor.u32 %v1886_v12, %v1870_v48 }
 0x1bd   : > { %v6186_v23 = vpop.permute.xlu1 %2001  ;;  %v6188_v42 = vpop.permute.xlu0 %2026  ;;  %v1864_v19 = vadd.s32 1056964608, %v1848_v40  ;;  %v1867_v35 = vadd.s32 1056964608, %v1851_v14  ;;  %v1853_v48 = vshll.u32 %v1837_v36, 21  ;;  %v6362_v36 = vld [vmem:[%s5007_s2 + $0x70] sm:$0xff]  ;;  %vm1982_vm12 = vcmp.eq.s32.totalorder %v6228_v17, 3 }
 0x1be   : > { %vm1981_vm13 = vcmp.eq.s32.totalorder %v6288_v54, 3  ;;  %vm1962_vm14 = vcmp.eq.s32.totalorder %v6217_v8, 2  ;;  %vm1961_vm15 = vcmp.eq.s32.totalorder %v6221_v37, 2 }
 0x1bf   : > { %4624 = vset.pattern.permute.xlu1 %v4779_v32  ;;  %v1829_v32 = vand.u32 14, %v6201_v18  ;;  %v1896_v7 = vor.u32 %v1880_v30, %v1864_v19  ;;  %v8109_v19 = vld [vmem:[#allocation43_spill] sm:$0xff]  ;;  %v1869_v18 = vadd.s32 1056964608, %v1853_v48 }
 0x1c0   : > { %2860 = vperm.xlu1 %4624, %v8097_v16   ;;  %2900 = vperm.xlu0 %4623, %v6191_v41   ;;  %v1809_v30 = vshra.s32 %v8109_v19, 12 }
 0x1c1   : > { %v6204_v5 = vpop.permute.xlu1 %2011  ;;  %v6207_v43 = vpop.permute.xlu0 %2036  ;;  %v1845_v63 = vshll.u32 %v1829_v32, 21  ;;  %v6286_v32 = vor.u32 %v1879_v13, %v1863_v4  ;;  %v6300_v4 = vld [vmem:[%s5007_s2 + $0x50] sm:$0xff]  ;;  %v6303_v13 = vld [vmem:[%s5002_s8 + $0x18] sm:$0xff] }
 0x1c2   : > { %v6353_v60 = vand.u32 15, %v1809_v30 }
 0x1c3   : > { %v1861_v16 = vadd.s32 1056964608, %v1845_v63  ;;  %v1884_v63 = vshll.u32 %v6226_v51, 31  ;;  %v2071_v19 = vsel %vm1975_vm3, %v6186_v23, %v6286_v32  ;;  %vm1966_vm3 = vcmp.eq.s32.totalorder %v6228_v17, 2 }
 0x1c4   : > { %2865 = vperm.xlu1 %4624, %v6210_v59   ;;  %2910 = vperm.xlu0 %4623, %v6213_v24   ;;  %v2087_v48 = vsel %vm1959_vm11, 0.0, %v2071_v19  ;;  %vm1969_vm11 = vcmp.eq.s32.totalorder %v6353_v60, 2 }
 0x1c5   : > { %v6230_v3 = vpop.permute.xlu1 %2021  ;;  %v6232_v55 = vpop.permute.xlu0 %2046  ;;  %v1893_v20 = vor.u32 %v1877_v27, %v1861_v16  ;;  %v1856_v27 = vshll.u32 %v1840_v38, 21  ;;  %v6315_v16 = vand.u32 15, %v1807_v10  ;;  %v6320_v26 = vor.u32 %v1884_v63, %v1868_v53  ;;  %v6332_v38 = vld [vmem:[%s5002_s8 + $0x28] sm:$0xff] }
 0x1c6   : > { %8110 = vst [vmem:[#allocation24_spill] sm:$0xff] %v6332_v38  ;;  %v2070_v53 = vsel %vm1974_vm1, %v6176_v22, %v6261_v31  ;;  %v6344_v63 = vor.u32 %v1883_v25, %v1867_v35  ;;  %v1811_v31 = vshra.s32 %v6013_v6, 12  ;;  %v2072_v6 = vsel %vm1976_vm2, %v6170_v49, %v1896_v7 }
 0x1c7   : > { %v2069_v10 = vsel %vm1973_vm0, %v6165_v21, %v1893_v20  ;;  %v1812_v21 = vshra.s32 %v6024_v34, 12  ;;  %v6350_v20 = vadd.s32 1056964608, %v1856_v27  ;;  %v1839_v22 = vand.u32 14, %v6315_v16  ;;  %v6365_v27 = vld [vmem:[%s5002_s8 + $0x38] sm:$0xff] }
 0x1c8   : > { %2875 = vperm.xlu1 %4624, %v6235_v44   ;;  %2920 = vperm.xlu0 %4623, %v6238_v28   ;;  %v1885_v28 = vshll.u32 %v6288_v54, 31  ;;  %v2086_v35 = vsel %vm1958_vm6, 0.0, %v2070_v53  ;;  %8111 = vst [vmem:[#allocation31_spill] sm:$0xff] %v6365_v27  ;;  %v1841_v7 = vand.u32 14, %v6353_v60  ;;  %v6382_v23 = vand.u32 15, %v1811_v31 }
 0x1c9   : > { %v6251_v11 = vpop.permute.xlu1 %2031  ;;  %v6253_v29 = vpop.permute.xlu0 %2056  ;;  %v1855_v49 = vshll.u32 %v1839_v22, 21  ;;  %v2074_v31 = vsel %vm1978_vm4, %v6178_v47, %v6305_v56  ;;  %vm1984_vm0 = vcmp.eq.s32.totalorder %v6268_v46, 3  ;;  %vm1964_vm1 = vcmp.eq.s32.totalorder %v6226_v51, 2 }
 0x1ca   : > { %v1857_v47 = vshll.u32 %v1841_v7, 21  ;;  %v1843_v56 = vand.u32 14, %v6382_v23  ;;  %vm1963_vm2 = vcmp.eq.s32.totalorder %v6243_v58, 2  ;;  %v2075_v8 = vsel %vm1979_vm9, %v6230_v3, %v6344_v63 }
 0x1cb   : > { %v1871_v14 = vadd.s32 1056964608, %v1855_v49  ;;  %v2076_v49 = vsel %vm1980_vm8, %v6188_v42, %v6320_v26  ;;  %v2091_v63 = vsel %vm1963_vm2, 0.0, %v2075_v8  ;;  %vm1965_vm4 = vcmp.eq.s32.totalorder %v6288_v54, 2  ;;  %v6476_v8 = vld [vmem:[%s5002_s8 + $0x78] sm:$0xff] }
 0x1cc   : > { %2885 = vperm.xlu1 %4624, %v6256_v9   ;;  %2930 = vperm.xlu0 %4623, %v6259_v2   ;;  %v6313_v2 = vor.u32 %v1881_v45, %v1865_v15  ;;  %v6329_v45 = vld [vmem:[%s5007_s2 + $0x60] sm:$0xff]  ;;  %v1873_v42 = vadd.s32 1056964608, %v1857_v47  ;;  %v1859_v26 = vshll.u32 %v1843_v56, 21  ;;  %v2092_v3 = vsel %vm1964_vm1, 0.0, %v2076_v49  ;;  %v6473_v49 = vld [vmem:[%s5002_s8 + $0x30] sm:$0xff]  ;;  %8117 = vst [vmem:[#allocation29_spill] sm:$0xff] %v6476_v8 }
 0x1cd   : > { %v6273_v39 = vpop.permute.xlu1 %2041  ;;  %v6275_v50 = vpop.permute.xlu0 %2066  ;;  %vm1968_vm6 = vcmp.eq.s32.totalorder %v6268_v46, 2  ;;  %vm1985_vm9 = vcmp.eq.s32.totalorder %v6353_v60, 3 }
 0x1ce   : > { %v2073_v1 = vsel %vm1977_vm5, %v6204_v5, %v6313_v2  ;;  %v2090_v5 = vsel %vm1962_vm14, 0.0, %v2074_v31  ;;  %v1889_v31 = vshll.u32 %v6353_v60, 31  ;;  %vm1983_vm5 = vcmp.eq.s32.totalorder %v6315_v16, 3 }
 0x1d0   : > { %2895 = vperm.xlu1 %4624, %v6278_v62   ;;  %2972 = vperm.xlu0 %4623, %v6281_v52   ;;  %v1810_v52 = vshra.s32 %v8108_v61, 12 }
 0x1d1   : > { %v6297_v40 = vpop.permute.xlu1 %2051  ;;  %v2109_v33 = vpop.permute.xlu0 %2108 }
 0x1d2   : > { %v6347_v12 = vand.u32 15, %v1810_v52  ;;  %v2085_v52 = vsel %vm1957_vm7, 0.0, %v2069_v10  ;;  %v2182_v30 = vmul.f32 %v2109_v33, %v2086_v35  ;;  %v2088_v33 = vsel %vm1960_vm10, 0.0, %v2072_v6  ;;  %v6392_v35 = vld [vmem:[%s5002_s8] sm:$0xff] }
 0x1d3   : > { %v1901_v6 = vor.u32 %v1885_v28, %v1869_v18  ;;  %v2089_v28 = vsel %vm1961_vm15, 0.0, %v2073_v1  ;;  %v6419_v18 = vld [vmem:[%s5002_s8 + $0x10] sm:$0xff]  ;;  %vm1967_vm7 = vcmp.eq.s32.totalorder %v6315_v16, 2  ;;  %vm1971_vm15 = vcmp.eq.s32.totalorder %v6382_v23, 2 }
 0x1d4   : > { %2905 = vperm.xlu1 %4624, %v6300_v4   ;;  %2982 = vperm.xlu0 %4623, %v6303_v13   ;;  %v1842_v10 = vand.u32 14, %v6347_v12  ;;  %vm1986_vm8 = vcmp.eq.s32.totalorder %v6347_v12, 3  ;;  %vm1970_vm10 = vcmp.eq.s32.totalorder %v6347_v12, 2 }
 0x1d5   : > { %v6326_v61 = vpop.permute.xlu1 %2061  ;;  %v2119_v15 = vpop.permute.xlu0 %2118  ;;  %v2077_v51 = vsel %vm1981_vm13, %v6251_v11, %v1901_v6  ;;  %v1875_v11 = vadd.s32 1056964608, %v1859_v26  ;;  %vm1987_vm13 = vcmp.eq.s32.totalorder %v6382_v23, 3 }
 0x1d6   : > { %v2184_v0 = vmul.f32 %v2119_v15, %v2088_v33  ;;  %v1858_v19 = vshll.u32 %v1842_v10, 21  ;;  %v6422_v10 = vld [vmem:[%s5002_s8 + $0x58] sm:$0xff]  ;;  %v2093_v6 = vsel %vm1965_vm4, 0.0, %v2077_v51 }
 0x1d7   : > { %8113 = vst [vmem:[#allocation28_spill] sm:$0xff] %v6422_v10 }
 0x1d8   : > { %2915 = vperm.xlu1 %4624, %v6329_v45   ;;  %2992 = vperm.xlu0 %4623, %v6332_v38   ;;  %v6379_v38 = vand.u32 15, %v1812_v21 }
 0x1d9   : > { %v2104_v25 = vpop.permute.xlu1 %2103  ;;  %v2129_v34 = vpop.permute.xlu0 %2128 }
 0x1da   : > { %v2181_v53 = vmul.f32 %v2104_v25, %v2085_v52  ;;  %v6395_v25 = vld [vmem:[%s5002_s8 + $0x48] sm:$0xff]  ;;  %v2186_v37 = vmul.f32 %v2129_v34, %v2090_v5  ;;  %v1892_v56 = vshll.u32 %v6379_v38, 31  ;;  %v1905_v5 = vor.u32 %v1889_v31, %v1873_v42  ;;  %v6497_v31 = vld [vmem:[%s5002_s8 + $0x40] sm:$0xff] }
 0x1db   : > { %8112 = vst [vmem:[#allocation42_spill] sm:$0xff] %v6395_v25  ;;  %vm1972_vm14 = vcmp.eq.s32.totalorder %v6379_v38, 2 }
 0x1dc   : > { %v2197_v32 = vpack.c.bf16 %v2182_v30, %v2181_v53  ;;  %2925 = vperm.xlu1 %4624, %v6362_v36   ;;  %3002 = vperm.xlu0 %4623, %v6365_v27   ;;  %v1887_v30 = vshll.u32 %v6315_v16, 31  ;;  %v1844_v53 = vand.u32 14, %v6379_v38  ;;  %v2081_v42 = vsel %vm1985_vm9, %v6297_v40, %v1905_v5 }
 0x1dd   : > { %v2114_v21 = vpop.permute.xlu1 %2113  ;;  %v2139_v22 = vpop.permute.xlu0 %2138  ;;  %v4780_v16 = vmov 6   ;;  %v2097_v40 = vsel %vm1969_vm11, 0.0, %v2081_v42 }
 0x1de   : > { %2205 = vst [vmem:[%s5402_s30 + $0x18] sm:$0xff] %v2197_v32  ;;  %v2183_v52 = vmul.f32 %v2114_v21, %v2087_v48  ;;  %v8114_v32 = vshll.u32 %v6268_v46, 31  ;;  %v1874_v48 = vadd.s32 1056964608, %v1858_v19  ;;  %v1860_v21 = vshll.u32 %v1844_v53, 21 }
 0x1df   : > { %v1903_v1 = vor.u32 %v1887_v30, %v1871_v14  ;;  %v6449_v14 = vld [vmem:[%s5002_s8 + $0x68] sm:$0xff]  ;;  %v2188_v19 = vmul.f32 %v2139_v22, %v2092_v3  ;;  %v8116_v30 = vshll.u32 %v6347_v12, 31 }
 0x1e0   : > { %v2198_v27 = vpack.c.bf16 %v2184_v0, %v2183_v52  ;;  %2967 = vperm.xlu1 %4624, %v6392_v35   ;;  %3012 = vperm.xlu0 %4623, %v6395_v25   ;;  %v1904_v33 = vor.u32 %v8114_v32, %v6350_v20  ;;  %8115 = vst [vmem:[#allocation21_spill] sm:$0xff] %v6449_v14  ;;  %v1876_v47 = vadd.s32 1056964608, %v1860_v21  ;;  %v6503_v3 = vld [vmem:[%s5007_s2 + $0x8] sm:$0xff]  ;;  %v6692_v25 = vld [vmem:[%s5011_s26 + $0x68] sm:$0xff] }
 0x1e1   : > { %v2124_v2 = vpop.permute.xlu1 %2123  ;;  %v2149_v15 = vpop.permute.xlu0 %2148  ;;  %v2078_v52 = vsel %vm1982_vm12, %v6207_v43, %v6322_v57  ;;  %v1906_v53 = vor.u32 %v8116_v30, %v1874_v48  ;;  %v1891_v43 = vshll.u32 %v6382_v23, 31  ;;  %v2079_v17 = vsel %vm1983_vm5, %v6273_v39, %v1903_v1  ;;  %8118 = vst [vmem:[#allocation25_spill] sm:$0xff] %v6503_v3  ;;  %v6526_v23 = vld [vmem:[%s5002_s8 + $0x60] sm:$0xff] }
 0x1e2   : > { %2206 = vst [vmem:[%s5402_s30 + $0x58] sm:$0xff] %v2198_v27  ;;  %v2185_v7 = vmul.f32 %v2124_v2, %v2089_v28  ;;  %v6446_v27 = vld [vmem:[%s5002_s8 + $0x20] sm:$0xff]  ;;  %v2094_v22 = vsel %vm1966_vm3, 0.0, %v2078_v52  ;;  %v1908_v32 = vor.u32 %v1892_v56, %v1876_v47  ;;  %vm1988_vm12 = vcmp.eq.s32.totalorder %v6379_v38, 3  ;;  %v6532_v47 = vld [vmem:[%s5011_s26] sm:$0xff] }
 0x1e3   : > { %v2082_v1 = vsel %vm1986_vm8, %v6253_v29, %v1906_v53  ;;  %8119 = vst [vmem:[#allocation40_spill] sm:$0xff] %v6532_v47  ;;  %v2229_v5 = vshra.s32 %v6532_v47, 16 }
 0x1e4   : > { %v2199_v0 = vpack.c.bf16 %v2186_v37, %v2185_v7  ;;  %2977 = vperm.xlu1 %4624, %v6419_v18   ;;  %3022 = vperm.xlu0 %4623, %v6422_v10   ;;  %v2080_v37 = vsel %vm1984_vm0, %v6232_v55, %v1904_v33  ;;  %v2190_v7 = vmul.f32 %v2149_v15, %v2094_v22  ;;  %v2095_v15 = vsel %vm1967_vm7, 0.0, %v2079_v17  ;;  %v6551_v22 = vld [vmem:[%s5011_s26 + $0x8] sm:$0xff]  ;;  %v6566_v17 = vld [vmem:[%s5011_s26 + $0x30] sm:$0xff] }
 0x1e5   : > { %v2134_v20 = vpop.permute.xlu1 %2133  ;;  %v2159_v34 = vpop.permute.xlu0 %2158  ;;  %v1907_v55 = vor.u32 %v1891_v43, %v1875_v11  ;;  %v2096_v39 = vsel %vm1968_vm6, 0.0, %v2080_v37  ;;  %v2098_v29 = vsel %vm1970_vm10, 0.0, %v2082_v1  ;;  %v6548_v11 = vld [vmem:[%s5011_s26 + $0x10] sm:$0xff]  ;;  %8121 = vst [vmem:[#allocation18_spill] sm:$0xff] %v6551_v22  ;;  %v6563_v37 = vld [vmem:[%s5011_s26 + $0x20] sm:$0xff]  ;;  %8123 = vst [vmem:[#allocation34_spill] sm:$0xff] %v6566_v17 }
 0x1e6   : > { %2207 = vst [vmem:[%s5402_s30 + $0x98] sm:$0xff] %v2199_v0  ;;  %v2187_v58 = vmul.f32 %v2134_v20, %v2091_v63  ;;  %v2192_v26 = vmul.f32 %v2159_v34, %v2096_v39  ;;  %v6515_v20 = vld [vmem:[%s5002_s8 + $0x50] sm:$0xff]  ;;  %v2084_v34 = vsel %vm1988_vm12, %v6275_v50, %v1908_v32  ;;  %8120 = vst [vmem:[#allocation30_spill] sm:$0xff] %v6548_v11  ;;  %v6587_v1 = vld [vmem:[%s5011_s26 + $0x50] sm:$0xff] }
 0x1e7   : > { %v2083_v52 = vsel %vm1987_vm13, %v6326_v61, %v1907_v55  ;;  %8122 = vst [vmem:[#allocation37_spill] sm:$0xff] %v6563_v37  ;;  %v6574_v32 = vld [vmem:[%s5011_s26 + $0x40] sm:$0xff]  ;;  %8126 = vst [vmem:[#allocation27_spill] sm:$0xff] %v6587_v1 }
 0x1e8   : > { %v2200_v57 = vpack.c.bf16 %v2188_v19, %v2187_v58  ;;  %2987 = vperm.xlu1 %4624, %v6446_v27   ;;  %3032 = vperm.xlu0 %4623, %v6449_v14   ;;  %v2100_v19 = vsel %vm1972_vm14, 0.0, %v2084_v34  ;;  %v2099_v58 = vsel %vm1971_vm15, 0.0, %v2083_v52  ;;  %8125 = vst [vmem:[#allocation38_spill] sm:$0xff] %v6574_v32 }
 0x1e9   : > { %v2144_v28 = vpop.permute.xlu1 %2143  ;;  %v2169_v2 = vpop.permute.xlu0 %2168 }
 0x1ea   : > { %2208 = vst [vmem:[%s5402_s30 + $0xd8] sm:$0xff] %v2200_v57  ;;  %v2189_v54 = vmul.f32 %v2144_v28, %v2093_v6  ;;  %v2194_v12 = vmul.f32 %v2169_v2, %v2098_v29  ;;  %v6560_v2 = vld [vmem:[%s5007_s2] sm:$0xff] }
 0x1ec   : > { %v2201_v48 = vpack.c.bf16 %v2190_v7, %v2189_v54  ;;  %2997 = vperm.xlu1 %4624, %v6473_v49   ;;  %3042 = vperm.xlu0 %4623, %v6476_v8   ;;  %v2231_v7 = vshra.s32 %v6548_v11, 16  ;;  %v2230_v54 = vshra.s32 %v6551_v22, 16 }
 0x1ed   : > { %v2154_v33 = vpop.permute.xlu1 %2153  ;;  %v2179_v21 = vpop.permute.xlu0 %2178 }
 0x1ee   : > { %2209 = vst [vmem:[%s5402_s30 + $0x118] sm:$0xff] %v2201_v48  ;;  %v2191_v0 = vmul.f32 %v2154_v33, %v2095_v15  ;;  %v2196_v50 = vmul.f32 %v2179_v21, %v2100_v19  ;;  %v2233_v15 = vshra.s32 %v6563_v37, 16  ;;  %v2235_v33 = vshra.s32 %v6566_v17, 16  ;;  %v6621_v19 = vld [vmem:[%s5011_s26 + $0x38] sm:$0xff]  ;;  %v6654_v37 = vld [vmem:[%s5007_s2 + $0x38] sm:$0xff] }
 0x1ef   : > { %v6589_v42 = vand.u32 15, %v2231_v7  ;;  %8128 = vst [vmem:[#allocation33_spill] sm:$0xff] %v6621_v19  ;;  %8132 = vst [vmem:[#allocation20_spill] sm:$0xff] %v6654_v37 }
 0x1f0   : > { %v2202_v46 = vpack.c.bf16 %v2192_v26, %v2191_v0  ;;  %3007 = vperm.xlu1 %4624, %v6497_v31   ;;  %4626 = vset.pattern.permute.xlu0 %v4780_v16  ;;  %v2237_v26 = vshra.s32 %v6574_v32, 16  ;;  %v6607_v34 = vand.u32 15, %v2233_v15  ;;  %v6609_v52 = vand.u32 15, %v2235_v33 }
 0x1f1   : > { %v2164_v63 = vpop.permute.xlu1 %2163  ;;  %3292 = vperm.xlu0 %4626, %v6503_v3   ;;  %vm2407_vm2 = vcmp.eq.s32.totalorder %v6589_v42, 3  ;;  %vm2391_vm10 = vcmp.eq.s32.totalorder %v6589_v42, 2 }
 0x1f2   : > { %2210 = vst [vmem:[%s5402_s30 + $0x158] sm:$0xff] %v2202_v46  ;;  %v2193_v38 = vmul.f32 %v2164_v63, %v2097_v40  ;;  %v6521_v51 = vpop.permute.xlu0 %2428  ;;  %v2239_v46 = vshra.s32 %v6587_v1, 16  ;;  %v6605_v63 = vld [vmem:[%s5007_s2 + $0x18] sm:$0xff]  ;;  %v2265_v7 = vand.u32 14, %v6607_v34  ;;  %vm2409_vm4 = vcmp.eq.s32.totalorder %v6607_v34, 3 }
 0x1f3   : > { %vm2411_vm8 = vcmp.eq.s32.totalorder %v6609_v52, 3  ;;  %vm2393_vm13 = vcmp.eq.s32.totalorder %v6607_v34, 2 }
 0x1f4   : > { %v2203_v60 = vpack.c.bf16 %v2194_v12, %v2193_v38  ;;  %3017 = vperm.xlu1 %4624, %v6515_v20   ;;  %v6614_v12 = vand.u32 15, %v2237_v26 }
 0x1f5   : > { %v2174_v30 = vpop.permute.xlu1 %2173  ;;  %3307 = vperm.xlu0 %4626, %v6235_v44   ;;  %v6537_v44 = vld [vmem:[%s5002_s8 + $0x70] sm:$0xff] }
 0x1f6   : > { %2211 = vst [vmem:[%s5402_s30 + $0x198] sm:$0xff] %v2203_v60  ;;  %v2195_v61 = vmul.f32 %v2174_v30, %v2099_v58  ;;  %v6529_v53 = vpop.permute.xlu0 %2443  ;;  %v2269_v33 = vand.u32 14, %v6614_v12  ;;  %v2317_v10 = vshll.u32 %v6614_v12, 31  ;;  %vm2413_vm12 = vcmp.eq.s32.totalorder %v6614_v12, 3 }
 0x1f8   : > { %v2204_v56 = vpack.c.bf16 %v2196_v50, %v2195_v61  ;;  %3027 = vperm.xlu1 %4624, %v6526_v23   ;;  %v6624_v50 = vand.u32 15, %v2239_v46 }
 0x1f9   : > { %3317 = vperm.xlu0 %4626, %v6256_v9   ;;  %v6553_v9 = vand.u32 15, %v2229_v5  ;;  %v6631_v5 = vld [vmem:[%s5007_s2 + $0x28] sm:$0xff] }
 0x1fa   : > { %2212 = vst [vmem:[%s5402_s30 + $0x1d8] sm:$0xff] %v2204_v56  ;;  %v6541_v43 = vpop.permute.xlu1 %2423  ;;  %v6543_v57 = vpop.permute.xlu0 %2453  ;;  %8130 = vst [vmem:[#allocation32_spill] sm:$0xff] %v6631_v5  ;;  %v2271_v1 = vand.u32 14, %v6624_v50  ;;  %vm2415_vm15 = vcmp.eq.s32.totalorder %v6624_v50, 3 }
 0x1fb   : > { %v2261_v48 = vand.u32 14, %v6553_v9  ;;  %v2309_v30 = vshll.u32 %v6553_v9, 31  ;;  %vm2405_vm1 = vcmp.eq.s32.totalorder %v6553_v9, 3  ;;  %vm2389_vm6 = vcmp.eq.s32.totalorder %v6553_v9, 2 }
 0x1fc   : > { %3037 = vperm.xlu1 %4624, %v6537_v44  }
 0x1fd   : > { %3327 = vperm.xlu0 %4626, %v6278_v62   ;;  %v6570_v62 = vld [vmem:[%s5011_s26 + $0x18] sm:$0xff]  ;;  %v2277_v0 = vshll.u32 %v2261_v48, 21  ;;  %v6637_v48 = vld [vmem:[%s5011_s26 + $0x60] sm:$0xff] }
 0x1fe   : > { %v6555_v6 = vpop.permute.xlu1 %2433  ;;  %v6557_v28 = vpop.permute.xlu0 %2463  ;;  %8124 = vst [vmem:[#allocation19_spill] sm:$0xff] %v6570_v62  ;;  %v2232_v21 = vshra.s32 %v6570_v62, 16  ;;  %8131 = vst [vmem:[#allocation39_spill] sm:$0xff] %v6637_v48  ;;  %v2241_v32 = vshra.s32 %v6637_v48, 16  ;;  %v2311_v62 = vshll.u32 %v6589_v42, 31 }
 0x1ff   : > { %v2293_v58 = vadd.s32 1056964608, %v2277_v0 }
 0x200   : > { %4625 = vset.pattern.permute.xlu1 %v4780_v16  ;;  %v6598_v16 = vld [vmem:[%s5011_s26 + $0x28] sm:$0xff] }
 0x201   : > { %3287 = vperm.xlu1 %4625, %v6560_v2   ;;  %3337 = vperm.xlu0 %4626, %v6300_v4   ;;  %v6592_v4 = vand.u32 15, %v2230_v54  ;;  %8127 = vst [vmem:[#allocation36_spill] sm:$0xff] %v6598_v16  ;;  %v2234_v60 = vshra.s32 %v6598_v16, 16  ;;  %v2267_v54 = vand.u32 14, %v6609_v52  ;;  %v6645_v46 = vor.u32 %v2309_v30, %v2293_v58 }
 0x202   : > { %v6579_v55 = vpop.permute.xlu1 %2438  ;;  %v6581_v39 = vpop.permute.xlu0 %2473  ;;  %v2285_v58 = vshll.u32 %v2269_v33, 21  ;;  %v2313_v16 = vshll.u32 %v6607_v34, 31 }
 0x203   : > { %v2262_v38 = vand.u32 14, %v6592_v4  ;;  %v6641_v0 = vand.u32 15, %v2234_v60  ;;  %v2281_v60 = vshll.u32 %v2265_v7, 21  ;;  %v2283_v3 = vshll.u32 %v2267_v54, 21  ;;  %v6670_v7 = vld [vmem:[%s5011_s26 + $0x58] sm:$0xff] }
 0x204   : > { %vm2406_vm0 = vcmp.eq.s32.totalorder %v6592_v4, 3  ;;  %8134 = vst [vmem:[#allocation44_spill] sm:$0xff] %v6670_v7  ;;  %v2315_v54 = vshll.u32 %v6609_v52, 31  ;;  %vm2390_vm7 = vcmp.eq.s32.totalorder %v6592_v4, 2 }
 0x205   : > { %3297 = vperm.xlu1 %4625, %v6210_v59   ;;  %3347 = vperm.xlu0 %4626, %v6329_v45   ;;  %v6611_v59 = vand.u32 15, %v2232_v21  ;;  %v2263_v45 = vand.u32 14, %v6589_v42  ;;  %v2236_v21 = vshra.s32 %v6621_v19, 16  ;;  %v2278_v26 = vshll.u32 %v2262_v38, 21  ;;  %v6658_v19 = vld [vmem:[%s5011_s26 + $0x48] sm:$0xff] }
 0x206   : > { %v6600_v29 = vpop.permute.xlu1 %2448  ;;  %v6602_v40 = vpop.permute.xlu0 %2483  ;;  %v2310_v38 = vshll.u32 %v6592_v4, 31  ;;  %8133 = vst [vmem:[#allocation35_spill] sm:$0xff] %v6658_v19  ;;  %v2266_v8 = vand.u32 14, %v6641_v0  ;;  %v2238_v33 = vshra.s32 %v6658_v19, 16  ;;  %v2297_v22 = vadd.s32 1056964608, %v2281_v60 }
 0x207   : > { %v2279_v15 = vshll.u32 %v2263_v45, 21  ;;  %v6662_v30 = vand.u32 15, %v2236_v21  ;;  %v2294_v48 = vadd.s32 1056964608, %v2278_v26  ;;  %v2299_v47 = vadd.s32 1056964608, %v2283_v3 }
 0x208   : > { %v2282_v19 = vshll.u32 %v2266_v8, 21  ;;  %vm2408_vm3 = vcmp.eq.s32.totalorder %v6611_v59, 3  ;;  %vm2410_vm5 = vcmp.eq.s32.totalorder %v6641_v0, 3  ;;  %vm2392_vm11 = vcmp.eq.s32.totalorder %v6611_v59, 2 }
 0x209   : > { %3302 = vperm.xlu1 %4625, %v6605_v63   ;;  %3357 = vperm.xlu0 %4626, %v6362_v36   ;;  %v2264_v36 = vand.u32 14, %v6611_v59  ;;  %v6700_v8 = vor.u32 %v2315_v54, %v2299_v47  ;;  %v6712_v47 = vld [vmem:[%s5011_s26 + $0x70] sm:$0xff]  ;;  %vm2412_vm9 = vcmp.eq.s32.totalorder %v6662_v30, 3  ;;  %vm2394_vm14 = vcmp.eq.s32.totalorder %v6641_v0, 2 }
 0x20a   : > { %v6626_v61 = vpop.permute.xlu1 %2458  ;;  %v6628_v56 = vpop.permute.xlu0 %2493  ;;  %8135 = vst [vmem:[#allocation43_spill] sm:$0xff] %v6712_v47 }
 0x20b   : > { %8129 = vst [vmem:[#allocation22_spill] sm:$0xff] %v6628_v56  ;;  %v2280_v11 = vshll.u32 %v2264_v36, 21  ;;  %v2287_v36 = vshll.u32 %v2271_v1, 21  ;;  %v2268_v56 = vand.u32 14, %v6662_v30  ;;  %v2326_v1 = vor.u32 %v2310_v38, %v2294_v48 }
 0x20c   : > { %v6698_v48 = vor.u32 %v2313_v16, %v2297_v22  ;;  %v2314_v38 = vshll.u32 %v6641_v0, 31  ;;  %v2316_v16 = vshll.u32 %v6662_v30, 31 }
 0x20d   : > { %3312 = vperm.xlu1 %4625, %v6631_v5   ;;  %3399 = vperm.xlu0 %4626, %v6392_v35   ;;  %v2295_v35 = vadd.s32 1056964608, %v2279_v15  ;;  %v6673_v15 = vand.u32 15, %v2241_v32  ;;  %v2296_v14 = vadd.s32 1056964608, %v2280_v11  ;;  %v2240_v32 = vshra.s32 %v6670_v7, 16 }
 0x20e   : > { %v6649_v17 = vpop.permute.xlu1 %2468  ;;  %v6651_v45 = vpop.permute.xlu0 %2535  ;;  %v2303_v3 = vadd.s32 1056964608, %v2287_v36  ;;  %v2319_v11 = vshll.u32 %v6624_v50, 31 }
 0x20f   : > { %v2327_v5 = vor.u32 %v2311_v62, %v2295_v35  ;;  %v2273_v60 = vand.u32 14, %v6673_v15  ;;  %v2284_v35 = vshll.u32 %v2268_v56, 21  ;;  %v6707_v36 = vand.u32 15, %v2240_v32 }
 0x210   : > { %v2502_v32 = vsel %vm2406_vm0, %v6521_v51, %v2326_v1  ;;  %vm2395_vm0 = vcmp.eq.s32.totalorder %v6609_v52, 2 }
 0x211   : > { %3322 = vperm.xlu1 %4625, %v6654_v37   ;;  %3409 = vperm.xlu0 %4626, %v6419_v18   ;;  %v2312_v37 = vshll.u32 %v6611_v59, 31  ;;  %v2301_v18 = vadd.s32 1056964608, %v2285_v58  ;;  %v6689_v58 = vand.u32 15, %v2238_v33  ;;  %v2298_v33 = vadd.s32 1056964608, %v2282_v19  ;;  %v6722_v19 = vld [vmem:[%s5011_s26 + $0x78] sm:$0xff] }
 0x212   : > { %v6676_v21 = vpop.permute.xlu1 %2478  ;;  %v6678_v26 = vpop.permute.xlu0 %2545 }
 0x213   : > { %v2270_v56 = vand.u32 14, %v6689_v58 }
 0x215   : > { %3332 = vperm.xlu1 %4625, %v6191_v41   ;;  %3419 = vperm.xlu0 %4626, %v6446_v27   ;;  %v2328_v41 = vor.u32 %v2312_v37, %v2296_v14  ;;  %v6704_v27 = vor.u32 %v2317_v10, %v2301_v18  ;;  %v2242_v14 = vshra.s32 %v6692_v25, 16  ;;  %v6717_v10 = vor.u32 %v2319_v11, %v2303_v3 }
 0x216   : > { %v6694_v7 = vpop.permute.xlu1 %2488  ;;  %v6696_v62 = vpop.permute.xlu0 %2555  ;;  %v2289_v37 = vshll.u32 %v2273_v60, 21  ;;  %v2243_v3 = vshra.s32 %v6712_v47, 16  ;;  %v2272_v11 = vand.u32 14, %v6707_v36  ;;  %v2330_v60 = vor.u32 %v2314_v38, %v2298_v33 }
 0x217   : > { %v6742_v51 = vand.u32 15, %v2242_v14  ;;  %v2286_v9 = vshll.u32 %v2270_v56, 21  ;;  %v2503_v38 = vsel %vm2407_vm2, %v6555_v6, %v2327_v5  ;;  %v2504_v33 = vsel %vm2408_vm3, %v6579_v55, %v2328_v41  ;;  %v8137_v55 = vld [vmem:[#allocation23_spill] sm:$0xff] }
 0x218   : > { %v6758_v56 = vand.u32 15, %v2243_v3  ;;  %v2519_v41 = vsel %vm2391_vm10, 0.0, %v2503_v38  ;;  %v2305_v59 = vadd.s32 1056964608, %v2289_v37  ;;  %vm2414_vm2 = vcmp.eq.s32.totalorder %v6689_v58, 3 }
 0x219   : > { %3342 = vperm.xlu1 %4625, %v6213_v24   ;;  %3429 = vperm.xlu0 %4626, %v6473_v49   ;;  %v2501_v24 = vsel %vm2405_vm1, %v6541_v43, %v6645_v46  ;;  %v2300_v49 = vadd.s32 1056964608, %v2284_v35  ;;  %v2244_v43 = vshra.s32 %v6722_v19, 16  ;;  %v8136_v46 = vld [vmem:[#allocation41_spill] sm:$0xff]  ;;  %v2518_v35 = vsel %vm2390_vm7, 0.0, %v2502_v32 }
 0x21a   : > { %v6724_v54 = vpop.permute.xlu1 %2498  ;;  %v6726_v18 = vpop.permute.xlu0 %2565  ;;  %v2517_v4 = vsel %vm2389_vm6, 0.0, %v2501_v24  ;;  %v2318_v32 = vshll.u32 %v6689_v58, 31  ;;  %v2288_v24 = vshll.u32 %v2272_v11, 21  ;;  %v2274_v47 = vand.u32 14, %v6742_v51 }
 0x21b   : > { %v2613_v14 = vmul.f32 %v6651_v45, %v2517_v4  ;;  %v6763_v6 = vand.u32 15, %v2244_v43  ;;  %v2302_v45 = vadd.s32 1056964608, %v2286_v9  ;;  %v2505_v11 = vsel %vm2409_vm4, %v6529_v53, %v6698_v48 }
 0x21c   : > { %v2615_v42 = vmul.f32 %v6678_v26, %v2519_v41  ;;  %v2275_v9 = vand.u32 14, %v6758_v56  ;;  %v2304_v4 = vadd.s32 1056964608, %v2288_v24  ;;  %v2521_v37 = vsel %vm2393_vm13, 0.0, %v2505_v11 }
 0x21d   : > { %3352 = vperm.xlu1 %4625, %v8136_v46   ;;  %3439 = vperm.xlu0 %4626, %v6497_v31   ;;  %v2332_v31 = vor.u32 %v2316_v16, %v2300_v49  ;;  %v2520_v16 = vsel %vm2392_vm11, 0.0, %v2504_v33  ;;  %v2276_v53 = vand.u32 14, %v6763_v6  ;;  %v2334_v26 = vor.u32 %v2318_v32, %v2302_v45 }
 0x21e   : > { %v2541_v1 = vpop.permute.xlu1 %2540  ;;  %v6747_v22 = vpop.permute.xlu0 %2575  ;;  %vm2396_vm1 = vcmp.eq.s32.totalorder %v6662_v30, 2  ;;  %v2617_v34 = vmul.f32 %v6696_v62, %v2521_v37  ;;  %v2291_v0 = vshll.u32 %v2275_v9, 21  ;;  %v2322_v32 = vshll.u32 %v6742_v51, 31  ;;  %v8142_v37 = vld [vmem:[#allocation42_spill] sm:$0xff] }
 0x21f   : > { %v2614_v46 = vmul.f32 %v2541_v1, %v2518_v35  ;;  %v2320_v1 = vshll.u32 %v6707_v36, 31  ;;  %v2290_v35 = vshll.u32 %v2274_v47, 21  ;;  %v2507_v47 = vsel %vm2411_vm8, %v6543_v57, %v6700_v8 }
 0x220   : > { %vm2397_vm3 = vcmp.eq.s32.totalorder %v6614_v12, 2  ;;  %vm2398_vm4 = vcmp.eq.s32.totalorder %v6689_v58, 2  ;;  %v8139_v45 = vshll.u32 %v6673_v15, 31  ;;  %v2307_v41 = vadd.s32 1056964608, %v2291_v0 }
 0x221   : > { %v2629_v5 = vpack.c.bf16 %v2614_v46, %v2613_v14  ;;  %3362 = vperm.xlu1 %4625, %v8137_v55   ;;  %3449 = vperm.xlu0 %4626, %v6515_v20   ;;  %v2506_v20 = vsel %vm2410_vm5, %v6600_v29, %v2330_v60  ;;  %v8138_v29 = vld [vmem:[#allocation26_spill] sm:$0xff]  ;;  %v2336_v46 = vor.u32 %v2320_v1, %v2304_v4  ;;  %v2306_v24 = vadd.s32 1056964608, %v2290_v35 }
 0x222   : > { %v2551_v49 = vpop.permute.xlu1 %2550  ;;  %v6771_v3 = vpop.permute.xlu0 %2585  ;;  %v2522_v60 = vsel %vm2394_vm14, 0.0, %v2506_v20  ;;  %v2509_v55 = vsel %vm2413_vm12, %v6557_v28, %v6704_v27  ;;  %v2337_v30 = vor.u32 %v8139_v45, %v2305_v59  ;;  %vm2416_vm5 = vcmp.eq.s32.totalorder %v6707_v36, 3  ;;  %v8151_v45 = vld [vmem:[#allocation19_spill] sm:$0xff] }
 0x223   : > { %2637 = vst [vmem:[%s5402_s30 + $0x20] sm:$0xff] %v2629_v5  ;;  %v2616_v43 = vmul.f32 %v2551_v49, %v2520_v16  ;;  %v2292_v5 = vshll.u32 %v2276_v53, 21  ;;  %v2323_v16 = vshll.u32 %v6758_v56, 31  ;;  %v2338_v49 = vor.u32 %v2322_v32, %v2306_v24 }
 0x224   : > { %v2324_v11 = vshll.u32 %v6763_v6, 31  ;;  %vm2399_vm6 = vcmp.eq.s32.totalorder %v6624_v50, 2  ;;  %v4781_v27 = vmov 7   ;;  %v2525_v20 = vsel %vm2397_vm3, 0.0, %v2509_v55  ;;  %v8148_v55 = vld [vmem:[#allocation40_spill] sm:$0xff] }
 0x225   : > { %v2630_v48 = vpack.c.bf16 %v2616_v43, %v2615_v42  ;;  %3404 = vperm.xlu1 %4625, %v8138_v29   ;;  %3459 = vperm.xlu0 %4626, %v6526_v23   ;;  %v2508_v23 = vsel %vm2412_vm9, %v6626_v61, %v2332_v31  ;;  %v2523_v61 = vsel %vm2395_vm0, 0.0, %v2507_v47  ;;  %vm2400_vm7 = vcmp.eq.s32.totalorder %v6707_v36, 2  ;;  %v8141_v36 = vld [vmem:[#allocation31_spill] sm:$0xff] }
 0x226   : > { %v2561_v38 = vpop.permute.xlu1 %2560  ;;  %v6794_v33 = vpop.permute.xlu0 %2595  ;;  %v2524_v62 = vsel %vm2396_vm1, 0.0, %v2508_v23  ;;  %v2511_v59 = vsel %vm2415_vm15, %v6581_v39, %v6717_v10  ;;  %v2512_v9 = vsel %vm2416_vm5, %v6676_v21, %v2336_v46  ;;  %v2621_v4 = vmul.f32 %v6747_v22, %v2525_v20 }
 0x227   : > { %2638 = vst [vmem:[%s5402_s30 + $0x60] sm:$0xff] %v2630_v48  ;;  %v2618_v14 = vmul.f32 %v2561_v38, %v2522_v60  ;;  %vm2417_vm8 = vcmp.eq.s32.totalorder %v6673_v15, 3  ;;  %vm2418_vm9 = vcmp.eq.s32.totalorder %v6742_v51, 3  ;;  %vm2401_vm10 = vcmp.eq.s32.totalorder %v6673_v15, 2 }
 0x228   : > { %v2527_v21 = vsel %vm2399_vm6, 0.0, %v2511_v59  ;;  %v2528_v22 = vsel %vm2400_vm7, 0.0, %v2512_v9  ;;  %vm2402_vm11 = vcmp.eq.s32.totalorder %v6742_v51, 2  ;;  %v2513_v35 = vsel %vm2417_vm8, %v6602_v40, %v2337_v30  ;;  %v8143_v51 = vld [vmem:[#allocation32_spill] sm:$0xff]  ;;  %v8155_v9 = vld [vmem:[#allocation30_spill] sm:$0xff] }
 0x229   : > { %v2631_v57 = vpack.c.bf16 %v2618_v14, %v2617_v34  ;;  %3414 = vperm.xlu1 %4625, %v6303_v13   ;;  %3469 = vperm.xlu0 %4626, %v6537_v44   ;;  %v2510_v13 = vsel %vm2414_vm2, %v6649_v17, %v2334_v26  ;;  %v2619_v44 = vmul.f32 %v6726_v18, %v2523_v61  ;;  %v8140_v17 = vld [vmem:[#allocation24_spill] sm:$0xff]  ;;  %v2308_v18 = vadd.s32 1056964608, %v2292_v5 }
 0x22a   : > { %v2571_v8 = vpop.permute.xlu1 %2570  ;;  %v6815_v31 = vpop.permute.xlu0 %2605  ;;  %v2526_v42 = vsel %vm2398_vm4, 0.0, %v2510_v13  ;;  %v2514_v53 = vsel %vm2418_vm9, %v6694_v7, %v2338_v49  ;;  %v2623_v48 = vmul.f32 %v6771_v3, %v2527_v21  ;;  %vm2419_vm12 = vcmp.eq.s32.totalorder %v6758_v56, 3  ;;  %v8144_v3 = vld [vmem:[#allocation22_spill] sm:$0xff]  ;;  %v8145_v34 = vld [vmem:[#allocation28_spill] sm:$0xff]  ;;  %v3682_v49 = vld [vmem:[%s5007_s2 + $0x68] sm:$0xff] }
 0x22b   : > { %2639 = vst [vmem:[%s5402_s30 + $0xa0] sm:$0xff] %v2631_v57  ;;  %v2620_v52 = vmul.f32 %v2571_v8, %v2524_v62  ;;  %v2340_v39 = vor.u32 %v2324_v11, %v2308_v18  ;;  %vm2420_vm13 = vcmp.eq.s32.totalorder %v6763_v6, 3  ;;  %vm2403_vm14 = vcmp.eq.s32.totalorder %v6758_v56, 2  ;;  %v8147_v57 = vld [vmem:[#allocation21_spill] sm:$0xff] }
 0x22c   : > { %v2530_v40 = vsel %vm2402_vm11, 0.0, %v2514_v53  ;;  %vm2404_vm15 = vcmp.eq.s32.totalorder %v6763_v6, 2  ;;  %v8146_v6 = vld [vmem:[#allocation20_spill] sm:$0xff]  ;;  %v3680_v8 = vld [vmem:[%s5007_s2 + $0x58] sm:$0xff]  ;;  %v2661_v13 = vshra.s32 %v8148_v55, 20  ;;  %v2664_v30 = vshra.s32 %v8151_v45, 20 }
 0x22d   : > { %v2632_v28 = vpack.c.bf16 %v2620_v52, %v2619_v44  ;;  %3424 = vperm.xlu1 %4625, %v8140_v17   ;;  %4627 = vset.pattern.permute.xlu0 %v4781_v27  ;;  %v2516_v38 = vsel %vm2420_vm13, %v6724_v54, %v2340_v39  ;;  %v8149_v44 = vld [vmem:[#allocation18_spill] sm:$0xff]  ;;  %v8150_v52 = vld [vmem:[#allocation29_spill] sm:$0xff] }
 0x22e   : > { %v2581_v43 = vpop.permute.xlu1 %2580  ;;  %3719 = vperm.xlu0 %4627, %v6560_v2   ;;  %v2339_v2 = vor.u32 %v2323_v16, %v2307_v41  ;;  %v2532_v0 = vsel %vm2404_vm15, 0.0, %v2516_v38  ;;  %v6899_v11 = vand.u32 15, %v2661_v13  ;;  %v8153_v18 = vld [vmem:[#allocation33_spill] sm:$0xff]  ;;  %v3654_v38 = vld [vmem:[%s5002_s8 + $0x8] sm:$0xff]  ;;  %v3675_v13 = vld [vmem:[%s5007_s2 + $0x30] sm:$0xff] }
 0x22f   : > { %2640 = vst [vmem:[%s5402_s30 + $0xe0] sm:$0xff] %v2632_v28  ;;  %v2622_v12 = vmul.f32 %v2581_v43, %v2526_v42  ;;  %v6846_v1 = vpop.permute.xlu0 %2855  ;;  %v8152_v28 = vld [vmem:[#allocation36_spill] sm:$0xff]  ;;  %v2668_v20 = vshra.s32 %v8153_v18, 20  ;;  %v8154_v43 = vld [vmem:[#allocation35_spill] sm:$0xff] }
 0x230   : > { %v2515_v60 = vsel %vm2419_vm12, %v8144_v3, %v2339_v2  ;;  %v2666_v17 = vshra.s32 %v8152_v28, 20  ;;  %v2670_v59 = vshra.s32 %v8154_v43, 20  ;;  %v6909_v2 = vand.u32 15, %v2664_v30 }
 0x231   : > { %v2633_v58 = vpack.c.bf16 %v2622_v12, %v2621_v4  ;;  %3434 = vperm.xlu1 %4625, %v8141_v36   ;;  %v2531_v14 = vsel %vm2403_vm14, 0.0, %v2515_v60  ;;  %v2663_v4 = vshra.s32 %v8155_v9, 20  ;;  %v8156_v12 = vld [vmem:[#allocation25_spill] sm:$0xff]  ;;  %v3673_v60 = vld [vmem:[%s5007_s2 + $0x20] sm:$0xff]  ;;  %vm2837_vm0 = vcmp.eq.s32.totalorder %v6899_v11, 3 }
 0x232   : > { %v2591_v10 = vpop.permute.xlu1 %2590  ;;  %3734 = vperm.xlu0 %4627, %v6605_v63   ;;  %v2529_v63 = vsel %vm2401_vm10, 0.0, %v2513_v35  ;;  %v2627_v32 = vmul.f32 %v6815_v31, %v2531_v14  ;;  %v2662_v31 = vshra.s32 %v8149_v44, 20  ;;  %v2693_v35 = vand.u32 14, %v6899_v11  ;;  %v3656_v44 = vld [vmem:[%s5002_s8 + $0x18] sm:$0xff] }
 0x233   : > { %2641 = vst [vmem:[%s5402_s30 + $0x120] sm:$0xff] %v2633_v58  ;;  %v2624_v29 = vmul.f32 %v2591_v10, %v2528_v22  ;;  %v6860_v26 = vpop.permute.xlu0 %2870  ;;  %v2625_v47 = vmul.f32 %v6794_v33, %v2529_v63  ;;  %v3678_v33 = vld [vmem:[%s5007_s2 + $0x48] sm:$0xff]  ;;  %v8157_v58 = vld [vmem:[#allocation44_spill] sm:$0xff]  ;;  %v3684_v10 = vld [vmem:[%s5007_s2 + $0x78] sm:$0xff]  ;;  %v6919_v53 = vand.u32 15, %v2666_v17  ;;  %vm2840_vm1 = vcmp.eq.s32.totalorder %v6909_v2, 3 }
 0x234   : > { %v6903_v42 = vand.u32 15, %v2662_v31  ;;  %v2672_v36 = vshra.s32 %v8157_v58, 20  ;;  %v3671_v22 = vld [vmem:[%s5007_s2 + $0x10] sm:$0xff]  ;;  %vm2821_vm7 = vcmp.eq.s32.totalorder %v6899_v11, 2  ;;  %vm2824_vm9 = vcmp.eq.s32.totalorder %v6909_v2, 2 }
 0x235   : > { %v2634_v50 = vpack.c.bf16 %v2624_v29, %v2623_v48  ;;  %3444 = vperm.xlu1 %4625, %v8142_v37   ;;  %v6924_v29 = vand.u32 15, %v2670_v59  ;;  %v8158_v37 = vld [vmem:[#allocation37_spill] sm:$0xff]  ;;  %v8160_v59 = vld [vmem:[#allocation38_spill] sm:$0xff]  ;;  %vm2842_vm4 = vcmp.eq.s32.totalorder %v6919_v53, 3  ;;  %vm2826_vm12 = vcmp.eq.s32.totalorder %v6919_v53, 2 }
 0x236   : > { %v2601_v7 = vpop.permute.xlu1 %2600  ;;  %3744 = vperm.xlu0 %4627, %v8143_v51   ;;  %v2694_v48 = vand.u32 14, %v6903_v42  ;;  %v2665_v63 = vshra.s32 %v8158_v37, 20  ;;  %v2669_v9 = vshra.s32 %v8160_v59, 20  ;;  %vm2838_vm2 = vcmp.eq.s32.totalorder %v6903_v42, 3 }
 0x237   : > { %2642 = vst [vmem:[%s5402_s30 + $0x160] sm:$0xff] %v2634_v50  ;;  %v2626_v23 = vmul.f32 %v2601_v7, %v2530_v40  ;;  %v6874_v15 = vpop.permute.xlu0 %2880  ;;  %v6926_v50 = vand.u32 15, %v2663_v4  ;;  %v2696_v40 = vand.u32 14, %v6909_v2  ;;  %v6930_v7 = vand.u32 15, %v2672_v36 }
 0x238   : > { %v2702_v14 = vand.u32 14, %v6924_v29  ;;  %vm2822_vm6 = vcmp.eq.s32.totalorder %v6903_v42, 2  ;;  %vm2846_vm11 = vcmp.eq.s32.totalorder %v6924_v29, 3 }
 0x239   : > { %v2635_v56 = vpack.c.bf16 %v2626_v23, %v2625_v47  ;;  %3454 = vperm.xlu1 %4625, %v8145_v34   ;;  %v2709_v47 = vshll.u32 %v2693_v35, 21  ;;  %v2698_v23 = vand.u32 14, %v6919_v53  ;;  %v2710_v34 = vshll.u32 %v2694_v48, 21  ;;  %v3677_v35 = vld [vmem:[%s5007_s2 + $0x40] sm:$0xff]  ;;  %v3658_v48 = vld [vmem:[%s5002_s8 + $0x28] sm:$0xff] }
 0x23a   : > { %v2611_v46 = vpop.permute.xlu1 %2610  ;;  %3754 = vperm.xlu0 %4627, %v8146_v6   ;;  %v2718_v28 = vshll.u32 %v2702_v14, 21  ;;  %vm2839_vm3 = vcmp.eq.s32.totalorder %v6926_v50, 3  ;;  %vm2823_vm10 = vcmp.eq.s32.totalorder %v6926_v50, 2  ;;  %vm2848_vm14 = vcmp.eq.s32.totalorder %v6930_v7, 3 }
 0x23b   : > { %2643 = vst [vmem:[%s5402_s30 + $0x1a0] sm:$0xff] %v2635_v56  ;;  %v2628_v54 = vmul.f32 %v2611_v46, %v2532_v0  ;;  %v6880_v24 = vpop.permute.xlu0 %2890  ;;  %v2695_v0 = vand.u32 14, %v6926_v50  ;;  %v8159_v46 = vld [vmem:[#allocation34_spill] sm:$0xff]  ;;  %v2725_v31 = vadd.s32 1056964608, %v2709_v47  ;;  %v2714_v45 = vshll.u32 %v2698_v23, 21 }
 0x23c   : > { %v2667_v6 = vshra.s32 %v8159_v46, 20 }
 0x23d   : > { %v2636_v5 = vpack.c.bf16 %v2628_v54, %v2627_v32  ;;  %3464 = vperm.xlu1 %4625, %v8147_v57   ;;  %v6943_v32 = vand.u32 15, %v2665_v63  ;;  %v2741_v54 = vshll.u32 %v6899_v11, 31  ;;  %v2674_v57 = vshra.s32 %v6692_v25, 20 }
 0x23e   : > { %3764 = vperm.xlu0 %4627, %v3678_v33   ;;  %v2712_v33 = vshll.u32 %v2696_v40, 21  ;;  %v2711_v17 = vshll.u32 %v2695_v0, 21  ;;  %v6956_v18 = vand.u32 15, %v2667_v6  ;;  %v2746_v25 = vshll.u32 %v6919_v53, 31 }
 0x23f   : > { %2644 = vst [vmem:[%s5402_s30 + $0x1e0] sm:$0xff] %v2636_v5  ;;  %v6885_v61 = vpop.permute.xlu1 %2860  ;;  %v6887_v62 = vpop.permute.xlu0 %2900  ;;  %v2704_v5 = vand.u32 14, %v6930_v7  ;;  %v2697_v43 = vand.u32 14, %v6943_v32  ;;  %v6963_v36 = vand.u32 15, %v2674_v57  ;;  %v2730_v37 = vadd.s32 1056964608, %v2714_v45  ;;  %v3679_v45 = vld [vmem:[%s5007_s2 + $0x50] sm:$0xff] }
 0x240   : > { %v2728_v4 = vadd.s32 1056964608, %v2712_v33  ;;  %v2750_v40 = vshll.u32 %v6924_v29, 31  ;;  %v2727_v47 = vadd.s32 1056964608, %v2711_v17  ;;  %v2699_v23 = vand.u32 14, %v6956_v18 }
 0x241   : > { %3474 = vperm.xlu1 %4625, %v8150_v52   ;;  %v2744_v52 = vshll.u32 %v6909_v2, 31  ;;  %v2720_v58 = vshll.u32 %v2704_v5, 21  ;;  %v2757_v14 = vor.u32 %v2741_v54, %v2725_v31  ;;  %v2713_v46 = vshll.u32 %v2697_v43, 21 }
 0x242   : > { %3774 = vperm.xlu0 %4627, %v3680_v8   ;;  %v6976_v6 = vand.u32 15, %v2669_v9  ;;  %v2752_v5 = vshll.u32 %v6930_v7, 31  ;;  %v2706_v57 = vand.u32 14, %v6963_v36  ;;  %v6987_v31 = vor.u32 %v2746_v25, %v2730_v37  ;;  %v8162_v25 = vld [vmem:[#allocation39_spill] sm:$0xff] }
 0x243   : > { %v6894_v41 = vpop.permute.xlu1 %2865  ;;  %v6896_v16 = vpop.permute.xlu0 %2910  ;;  %v2736_v33 = vadd.s32 1056964608, %v2720_v58  ;;  %v2760_v54 = vor.u32 %v2744_v52, %v2728_v4  ;;  %v2729_v59 = vadd.s32 1056964608, %v2713_v46  ;;  %v2745_v9 = vshll.u32 %v6943_v32, 31 }
 0x244   : > { %v2701_v52 = vand.u32 14, %v6976_v6  ;;  %v2673_v4 = vshra.s32 %v8162_v25, 20  ;;  %vm2841_vm5 = vcmp.eq.s32.totalorder %v6943_v32, 3  ;;  %v7003_v58 = vshll.u32 %v2706_v57, 21  ;;  %v3683_v57 = vld [vmem:[%s5007_s2 + $0x70] sm:$0xff] }
 0x245   : > { %4628 = vset.pattern.permute.xlu1 %v4781_v27  ;;  %v6921_v27 = vand.u32 15, %v2668_v20  ;;  %v2742_v20 = vshll.u32 %v6903_v42, 31  ;;  %v8163_v42 = vld [vmem:[#allocation43_spill] sm:$0xff]  ;;  %v2749_v25 = vshll.u32 %v6976_v6, 31  ;;  %vm2825_vm13 = vcmp.eq.s32.totalorder %v6943_v32, 2 }
 0x246   : > { %3724 = vperm.xlu1 %4628, %v8156_v12   ;;  %3784 = vperm.xlu0 %4627, %v3682_v49   ;;  %v2726_v49 = vadd.s32 1056964608, %v2710_v34  ;;  %vm2843_vm15 = vcmp.eq.s32.totalorder %v6956_v18, 3 }
 0x247   : > { %v6912_v39 = vpop.permute.xlu1 %2875  ;;  %v6914_v21 = vpop.permute.xlu0 %2920  ;;  %v2700_v56 = vand.u32 14, %v6921_v27  ;;  %v2748_v12 = vshll.u32 %v6921_v27, 31  ;;  %vm2844_vm8 = vcmp.eq.s32.totalorder %v6921_v27, 3 }
 0x248   : > { %v2758_v0 = vor.u32 %v2742_v20, %v2726_v49  ;;  %v2715_v20 = vshll.u32 %v2699_v23, 21  ;;  %v2747_v23 = vshll.u32 %v6956_v18, 31 }
 0x249   : > { %v2716_v30 = vshll.u32 %v2700_v56, 21  ;;  %v8161_v56 = vld [vmem:[#allocation27_spill] sm:$0xff] }
 0x24a   : > { %3729 = vperm.xlu1 %4628, %v3671_v22   ;;  %3794 = vperm.xlu0 %4627, %v3684_v10   ;;  %v2671_v34 = vshra.s32 %v8161_v56, 20  ;;  %v2676_v56 = vshra.s32 %v6722_v19, 20  ;;  %v2936_v19 = vsel %vm2840_vm1, %v6860_v26, %v2760_v54  ;;  %vm2827_vm1 = vcmp.eq.s32.totalorder %v6956_v18, 2 }
 0x24b   : > { %v6932_v51 = vpop.permute.xlu1 %2885  ;;  %v6934_v3 = vpop.permute.xlu0 %2930  ;;  %v2732_v63 = vadd.s32 1056964608, %v2716_v30  ;;  %v3660_v30 = vld [vmem:[%s5002_s8 + $0x38] sm:$0xff] }
 0x24c   : > { %v6995_v43 = vand.u32 15, %v2671_v34 }
 0x24d   : > { %v6989_v49 = vor.u32 %v2748_v12, %v2732_v63  ;;  %v7000_v12 = vor.u32 %v2752_v5, %v2736_v33  ;;  %v3681_v63 = vld [vmem:[%s5007_s2 + $0x60] sm:$0xff] }
 0x24e   : > { %3739 = vperm.xlu1 %4628, %v3673_v60   ;;  %3836 = vperm.xlu0 %4627, %v3654_v38   ;;  %v2743_v60 = vshll.u32 %v6926_v50, 31  ;;  %v2734_v38 = vadd.s32 1056964608, %v2718_v28  ;;  %v2703_v34 = vand.u32 14, %v6995_v43 }
 0x24f   : > { %v6948_v8 = vpop.permute.xlu1 %2895  ;;  %v6950_v55 = vpop.permute.xlu0 %2972 }
 0x250   : > { %v6993_v28 = vor.u32 %v2750_v40, %v2734_v38  ;;  %v2759_v17 = vor.u32 %v2743_v60, %v2727_v47  ;;  %v3662_v40 = vld [vmem:[%s5002_s8 + $0x48] sm:$0xff]  ;;  %v2933_v60 = vsel %vm2837_vm0, %v6846_v1, %v2757_v14  ;;  %v2934_v38 = vsel %vm2838_vm2, %v6885_v61, %v2758_v0 }
 0x251   : > { %v2731_v47 = vadd.s32 1056964608, %v2715_v20  ;;  %v2761_v1 = vor.u32 %v2745_v9, %v2729_v59  ;;  %v2717_v14 = vshll.u32 %v2701_v52, 21  ;;  %v7025_v61 = vand.u32 15, %v2673_v4 }
 0x252   : > { %3749 = vperm.xlu1 %4628, %v3675_v13   ;;  %3846 = vperm.xlu0 %4627, %v3656_v44   ;;  %v2950_v11 = vsel %vm2822_vm6, 0.0, %v2934_v38  ;;  %v2675_v0 = vshra.s32 %v8163_v42, 20  ;;  %v2949_v33 = vsel %vm2821_vm7, 0.0, %v2933_v60  ;;  %v7041_v52 = vand.u32 15, %v2676_v56  ;;  %v3653_v38 = vld [vmem:[%s5002_s8] sm:$0xff] }
 0x253   : > { %v6965_v22 = vpop.permute.xlu1 %2905  ;;  %v6967_v10 = vpop.permute.xlu0 %2982  ;;  %v3046_v20 = vmul.f32 %v6950_v55, %v2950_v11  ;;  %v2763_v9 = vor.u32 %v2747_v23, %v2731_v47  ;;  %v2719_v4 = vshll.u32 %v2703_v34, 21  ;;  %v2705_v26 = vand.u32 14, %v7025_v61  ;;  %v3666_v47 = vld [vmem:[%s5002_s8 + $0x68] sm:$0xff] }
 0x254   : > { %v2952_v55 = vsel %vm2824_vm9, 0.0, %v2936_v19  ;;  %v7048_v54 = vand.u32 15, %v2675_v0  ;;  %v2938_v23 = vsel %vm2842_vm4, %v6874_v15, %v6987_v31  ;;  %v2937_v2 = vsel %vm2841_vm5, %v6912_v39, %v2761_v1 }
 0x255   : > { %v3048_v56 = vmul.f32 %v6967_v10, %v2952_v55  ;;  %v2708_v34 = vand.u32 14, %v7041_v52  ;;  %v2751_v11 = vshll.u32 %v6995_v43, 31  ;;  %v2721_v31 = vshll.u32 %v2705_v26, 21 }
 0x256   : > { %3759 = vperm.xlu1 %4628, %v3677_v35   ;;  %3856 = vperm.xlu0 %4627, %v3658_v48   ;;  %v2754_v35 = vshll.u32 %v6963_v36, 31  ;;  %vm2828_vm0 = vcmp.eq.s32.totalorder %v6921_v27, 2  ;;  %v2954_v10 = vsel %vm2826_vm12, 0.0, %v2938_v23  ;;  %v2707_v1 = vand.u32 14, %v7048_v54  ;;  %v3659_v23 = vld [vmem:[%s5002_s8 + $0x30] sm:$0xff] }
 0x257   : > { %v6981_v13 = vpop.permute.xlu1 %2915  ;;  %v6983_v44 = vpop.permute.xlu0 %2992  ;;  %v2953_v42 = vsel %vm2825_vm13, 0.0, %v2937_v2  ;;  %v2939_v53 = vsel %vm2843_vm15, %v6932_v51, %v2763_v9  ;;  %vm2845_vm2 = vcmp.eq.s32.totalorder %v6976_v6, 3  ;;  %vm2829_vm4 = vcmp.eq.s32.totalorder %v6976_v6, 2 }
 0x258   : > { %v3050_v19 = vmul.f32 %v6983_v44, %v2954_v10  ;;  %v2723_v51 = vshll.u32 %v2707_v1, 21  ;;  %v2942_v26 = vsel %vm2846_vm11, %v6887_v62, %v6993_v28  ;;  %vm2847_vm5 = vcmp.eq.s32.totalorder %v6995_v43, 3 }
 0x259   : > { %v2755_v62 = vshll.u32 %v7048_v54, 31  ;;  %vm2832_vm6 = vcmp.eq.s32.totalorder %v6930_v7, 2  ;;  %vm2831_vm7 = vcmp.eq.s32.totalorder %v6995_v43, 2  ;;  %v2944_v2 = vsel %vm2848_vm14, %v6896_v16, %v7000_v12 }
 0x25a   : > { %3769 = vperm.xlu1 %4628, %v3679_v45   ;;  %3866 = vperm.xlu0 %4627, %v3660_v30   ;;  %v3664_v45 = vld [vmem:[%s5002_s8 + $0x58] sm:$0xff]  ;;  %v2935_v30 = vsel %vm2839_vm3, %v6894_v41, %v2759_v17  ;;  %vm2830_vm3 = vcmp.eq.s32.totalorder %v6924_v29, 2  ;;  %v2739_v28 = vadd.s32 1056964608, %v2723_v51  ;;  %vm2849_vm9 = vcmp.eq.s32.totalorder %v7025_v61, 3 }
 0x25b   : > { %v7006_v48 = vpop.permute.xlu1 %2925  ;;  %v7008_v37 = vpop.permute.xlu0 %3002  ;;  %v2951_v17 = vsel %vm2823_vm10, 0.0, %v2935_v30  ;;  %v2738_v30 = vadd.s32 1056964608, %v7003_v58  ;;  %vm2834_vm10 = vcmp.eq.s32.totalorder %v6963_v36, 2  ;;  %vm2833_vm11 = vcmp.eq.s32.totalorder %v7025_v61, 2 }
 0x25c   : > { %v2771_v16 = vor.u32 %v2755_v62, %v2739_v28  ;;  %vm2852_vm12 = vcmp.eq.s32.totalorder %v7041_v52, 3  ;;  %vm2851_vm13 = vcmp.eq.s32.totalorder %v7048_v54, 3  ;;  %vm2836_vm14 = vcmp.eq.s32.totalorder %v7041_v52, 2  ;;  %v7211_v28 = vld [vmem:[%s5011_s26 + $0x18] sm:$0xff] }
 0x25d   : > { %v2770_v55 = vor.u32 %v2754_v35, %v2738_v30  ;;  %vm2835_vm15 = vcmp.eq.s32.totalorder %v7048_v54, 2  ;;  %v3665_v54 = vld [vmem:[%s5002_s8 + $0x60] sm:$0xff]  ;;  %v3667_v30 = vld [vmem:[%s5002_s8 + $0x70] sm:$0xff] }
 0x25e   : > { %3779 = vperm.xlu1 %4628, %v3681_v63   ;;  %3876 = vperm.xlu0 %4627, %v3662_v40   ;;  %v2733_v63 = vadd.s32 1056964608, %v2717_v14  ;;  %v2735_v14 = vadd.s32 1056964608, %v2719_v4  ;;  %v2737_v4 = vadd.s32 1056964608, %v2721_v31 }
 0x25f   : > { %v2968_v46 = vpop.permute.xlu1 %2967  ;;  %v7028_v5 = vpop.permute.xlu0 %3012 }
 0x260   : > { %v3045_v59 = vmul.f32 %v2968_v46, %v2949_v33  ;;  %v2765_v15 = vor.u32 %v2749_v25, %v2733_v63  ;;  %v3655_v33 = vld [vmem:[%s5002_s8 + $0x10] sm:$0xff]  ;;  %v2767_v25 = vor.u32 %v2751_v11, %v2735_v14  ;;  %v3657_v63 = vld [vmem:[%s5002_s8 + $0x20] sm:$0xff] }
 0x261   : > { %v3661_v14 = vld [vmem:[%s5002_s8 + $0x40] sm:$0xff] }
 0x262   : > { %v3061_v41 = vpack.c.bf16 %v3046_v20, %v3045_v59  ;;  %3789 = vperm.xlu1 %4628, %v3683_v57   ;;  %3886 = vperm.xlu0 %4627, %v3664_v45   ;;  %v3668_v57 = vld [vmem:[%s5002_s8 + $0x78] sm:$0xff]  ;;  %v2940_v45 = vsel %vm2844_vm8, %v6880_v24, %v6989_v49  ;;  %v2724_v20 = vshll.u32 %v2708_v34, 21  ;;  %v2753_v59 = vshll.u32 %v7025_v61, 31 }
 0x263   : > { %v2978_v40 = vpop.permute.xlu1 %2977  ;;  %v7052_v60 = vpop.permute.xlu0 %3022  ;;  %v2956_v44 = vsel %vm2828_vm0, 0.0, %v2940_v45  ;;  %v2955_v49 = vsel %vm2827_vm1, 0.0, %v2939_v53  ;;  %vm2850_vm8 = vcmp.eq.s32.totalorder %v6963_v36, 3 }
 0x264   : > { %3069 = vst [vmem:[%s5402_s30 + $0x28] sm:$0xff] %v3061_v41  ;;  %v3047_v50 = vmul.f32 %v2978_v40, %v2951_v17  ;;  %v2941_v41 = vsel %vm2845_vm2, %v6948_v8, %v2765_v15  ;;  %v3052_v27 = vmul.f32 %v7008_v37, %v2956_v44  ;;  %v2740_v17 = vadd.s32 1056964608, %v2724_v20  ;;  %v7169_v20 = vld [vmem:[%s5011_s26] sm:$0xff]  ;;  %v7181_v44 = vld [vmem:[%s5011_s26 + $0x30] sm:$0xff] }
 0x265   : > { %v2756_v40 = vshll.u32 %v7041_v52, 31  ;;  %v2958_v37 = vsel %vm2830_vm3, 0.0, %v2942_v26  ;;  %v2957_v35 = vsel %vm2829_vm4, 0.0, %v2941_v41  ;;  %v2946_v11 = vsel %vm2850_vm8, %v6914_v21, %v2770_v55  ;;  %8165 = vst [vmem:[#allocation23_spill] sm:$0xff] %v7181_v44  ;;  %v7191_v26 = vld [vmem:[%s5011_s26 + $0x40] sm:$0xff] }
 0x266   : > { %v3062_v39 = vpack.c.bf16 %v3048_v56, %v3047_v50  ;;  %3831 = vperm.xlu1 %4628, %v3653_v38   ;;  %3896 = vperm.xlu0 %4627, %v3666_v47   ;;  %v2769_v38 = vor.u32 %v2753_v59, %v2737_v4  ;;  %v2943_v56 = vsel %vm2847_vm5, %v6965_v22, %v2767_v25  ;;  %v2960_v22 = vsel %vm2832_vm6, 0.0, %v2944_v2  ;;  %v7219_v2 = vld [vmem:[%s5011_s26 + $0x28] sm:$0xff] }
 0x267   : > { %v2988_v0 = vpop.permute.xlu1 %2987  ;;  %v7076_v46 = vpop.permute.xlu0 %3032  ;;  %v3054_v50 = vmul.f32 %v7028_v5, %v2958_v37  ;;  %v2772_v6 = vor.u32 %v2756_v40, %v2740_v17  ;;  %v2959_v12 = vsel %vm2831_vm7, 0.0, %v2943_v56  ;;  %v3056_v31 = vmul.f32 %v7052_v60, %v2960_v22  ;;  %v3663_v60 = vld [vmem:[%s5002_s8 + $0x50] sm:$0xff]  ;;  %8166 = vst [vmem:[#allocation26_spill] sm:$0xff] %v7191_v26  ;;  %v7202_v40 = vld [vmem:[%s5011_s26 + $0x50] sm:$0xff] }
 0x268   : > { %3070 = vst [vmem:[%s5402_s30 + $0x68] sm:$0xff] %v3062_v39  ;;  %v3049_v32 = vmul.f32 %v2988_v0, %v2953_v42  ;;  %v2945_v15 = vsel %vm2849_vm9, %v6981_v13, %v2769_v38  ;;  %v2962_v61 = vsel %vm2834_vm10, 0.0, %v2946_v11  ;;  %v2947_v42 = vsel %vm2851_vm13, %v7006_v48, %v2771_v16  ;;  %8167 = vst [vmem:[#allocation24_spill] sm:$0xff] %v7202_v40  ;;  %v7205_v38 = vld [vmem:[%s5011_s26 + $0x10] sm:$0xff] }
 0x269   : > { %v2961_v21 = vsel %vm2833_vm11, 0.0, %v2945_v15  ;;  %v2948_v1 = vsel %vm2852_vm12, %v6934_v3, %v2772_v6  ;;  %v3058_v0 = vmul.f32 %v7076_v46, %v2962_v61  ;;  %v2963_v45 = vsel %vm2835_vm15, 0.0, %v2947_v42  ;;  %8168 = vst [vmem:[#allocation31_spill] sm:$0xff] %v7205_v38  ;;  %v7244_v61 = vld [vmem:[%s5011_s26 + $0x60] sm:$0xff] }
 0x26a   : > { %v3063_v24 = vpack.c.bf16 %v3050_v19, %v3049_v32  ;;  %3841 = vperm.xlu1 %4628, %v3655_v33   ;;  %3906 = vperm.xlu0 %4627, %v3668_v57   ;;  %v2964_v57 = vsel %vm2836_vm14, 0.0, %v2948_v1  ;;  %v7164_v32 = vld [vmem:[%s5011_s26 + $0x8] sm:$0xff]  ;;  %v3093_v51 = vshra.s32 %v7169_v20, 24  ;;  %v3099_v41 = vshra.s32 %v7181_v44, 24  ;;  %8170 = vst [vmem:[#allocation32_spill] sm:$0xff] %v7244_v61 }
 0x26b   : > { %v2998_v58 = vpop.permute.xlu1 %2997  ;;  %v7098_v9 = vpop.permute.xlu0 %3042  ;;  %v3094_v4 = vshra.s32 %v7164_v32, 24  ;;  %v3101_v17 = vshra.s32 %v7191_v26, 24  ;;  %v3096_v6 = vshra.s32 %v7211_v28, 24 }
 0x26c   : > { %3071 = vst [vmem:[%s5402_s30 + $0xa8] sm:$0xff] %v3063_v24  ;;  %v3051_v18 = vmul.f32 %v2998_v58, %v2955_v49  ;;  %v3060_v3 = vmul.f32 %v7098_v9, %v2964_v57  ;;  %v7177_v24 = vld [vmem:[%s5011_s26 + $0x20] sm:$0xff]  ;;  %v7213_v37 = vand.u32 15, %v3099_v41 }
 0x26d   : > { %8164 = vst [vmem:[#allocation41_spill] sm:$0xff] %v7177_v24  ;;  %v7187_v9 = vand.u32 15, %v3094_v4 }
 0x26e   : > { %v3064_v8 = vpack.c.bf16 %v3052_v27, %v3051_v18  ;;  %3851 = vperm.xlu1 %4628, %v3657_v63   ;;  %v3097_v63 = vshra.s32 %v7177_v24, 24  ;;  %v7194_v27 = vand.u32 15, %v3093_v51  ;;  %v3131_v22 = vand.u32 14, %v7213_v37 }
 0x26f   : > { %v3008_v47 = vpop.permute.xlu1 %3007  ;;  %v3126_v62 = vand.u32 14, %v7187_v9  ;;  %vm3270_vm0 = vcmp.eq.s32.totalorder %v7187_v9, 3  ;;  %vm3254_vm5 = vcmp.eq.s32.totalorder %v7187_v9, 2  ;;  %vm3275_vm6 = vcmp.eq.s32.totalorder %v7213_v37, 3 }
 0x270   : > { %3072 = vst [vmem:[%s5402_s30 + $0xe8] sm:$0xff] %v3064_v8  ;;  %v3053_v29 = vmul.f32 %v3008_v47, %v2957_v35  ;;  %v7130_v34 = vpop.permute.xlu0 %3292  ;;  %v7208_v8 = vand.u32 15, %v3097_v63  ;;  %v3125_v35 = vand.u32 14, %v7194_v27  ;;  %v3103_v47 = vshra.s32 %v7202_v40, 24 }
 0x271   : > { %v3173_v57 = vshll.u32 %v7194_v27, 31  ;;  %vm3269_vm1 = vcmp.eq.s32.totalorder %v7194_v27, 3  ;;  %vm3253_vm4 = vcmp.eq.s32.totalorder %v7194_v27, 2 }
 0x272   : > { %v3065_v43 = vpack.c.bf16 %v3054_v50, %v3053_v29  ;;  %3861 = vperm.xlu1 %4628, %v3659_v23   ;;  %v3095_v23 = vshra.s32 %v7205_v38, 24  ;;  %v7225_v29 = vand.u32 15, %v3101_v17  ;;  %v3129_v16 = vand.u32 14, %v7208_v8 }
 0x273   : > { %v3018_v5 = vpop.permute.xlu1 %3017  ;;  %v7234_v11 = vand.u32 15, %v3103_v47  ;;  %v3177_v41 = vshll.u32 %v7208_v8, 31  ;;  %v7270_v47 = vld [vmem:[%s5011_s26 + $0x70] sm:$0xff]  ;;  %vm3273_vm3 = vcmp.eq.s32.totalorder %v7208_v8, 3  ;;  %vm3257_vm12 = vcmp.eq.s32.totalorder %v7208_v8, 2 }
 0x274   : > { %3073 = vst [vmem:[%s5402_s30 + $0x128] sm:$0xff] %v3065_v43  ;;  %v3055_v39 = vmul.f32 %v3018_v5, %v2959_v12  ;;  %v7143_v10 = vpop.permute.xlu0 %3307  ;;  %v3142_v43 = vshll.u32 %v3126_v62, 21  ;;  %v3141_v12 = vshll.u32 %v3125_v35, 21  ;;  %v3098_v5 = vshra.s32 %v7219_v2, 24  ;;  %8172 = vst [vmem:[#allocation28_spill] sm:$0xff] %v7270_v47 }
 0x275   : > { %v7236_v15 = vand.u32 15, %v3095_v23  ;;  %v3145_v1 = vshll.u32 %v3129_v16, 21  ;;  %v3179_v35 = vshll.u32 %v7213_v37, 31  ;;  %vm3277_vm10 = vcmp.eq.s32.totalorder %v7225_v29, 3 }
 0x276   : > { %v3066_v7 = vpack.c.bf16 %v3056_v31, %v3055_v39  ;;  %3871 = vperm.xlu1 %4628, %v3661_v14   ;;  %v7232_v14 = vld [vmem:[%s5011_s26 + $0x38] sm:$0xff]  ;;  %vm3279_vm14 = vcmp.eq.s32.totalorder %v7234_v11, 3 }
 0x277   : > { %v3028_v13 = vpop.permute.xlu1 %3027  ;;  %8169 = vst [vmem:[#allocation42_spill] sm:$0xff] %v7232_v14  ;;  %v3100_v42 = vshra.s32 %v7232_v14, 24  ;;  %v3161_v63 = vadd.s32 1056964608, %v3145_v1  ;;  %v3181_v1 = vshll.u32 %v7225_v29, 31  ;;  %v3175_v44 = vshll.u32 %v7236_v15, 31 }
 0x278   : > { %3074 = vst [vmem:[%s5402_s30 + $0x168] sm:$0xff] %v3066_v7  ;;  %v3057_v36 = vmul.f32 %v3028_v13, %v2961_v21  ;;  %v7156_v33 = vpop.permute.xlu0 %3317  ;;  %v3133_v7 = vand.u32 14, %v7225_v29  ;;  %v7246_v21 = vand.u32 15, %v3096_v6  ;;  %v3158_v13 = vadd.s32 1056964608, %v3142_v43 }
 0x279   : > { %v7266_v17 = vand.u32 15, %v3100_v42  ;;  %vm3271_vm2 = vcmp.eq.s32.totalorder %v7236_v15, 3  ;;  %vm3255_vm8 = vcmp.eq.s32.totalorder %v7236_v15, 2 }
 0x27a   : > { %v3067_v52 = vpack.c.bf16 %v3058_v0, %v3057_v36  ;;  %3881 = vperm.xlu1 %4628, %v3663_v60   ;;  %v3174_v60 = vshll.u32 %v7187_v9, 31  ;;  %v3147_v0 = vshll.u32 %v3131_v22, 21  ;;  %v3157_v36 = vadd.s32 1056964608, %v3141_v12 }
 0x27b   : > { %v3038_v53 = vpop.permute.xlu1 %3037  ;;  %v3128_v4 = vand.u32 14, %v7246_v21  ;;  %vm3272_vm7 = vcmp.eq.s32.totalorder %v7246_v21, 3  ;;  %vm3256_vm9 = vcmp.eq.s32.totalorder %v7246_v21, 2  ;;  %vm3276_vm15 = vcmp.eq.s32.totalorder %v7266_v17, 3 }
 0x27c   : > { %3075 = vst [vmem:[%s5402_s30 + $0x1a8] sm:$0xff] %v3067_v52  ;;  %v3059_v48 = vmul.f32 %v3038_v53, %v2963_v45  ;;  %v7161_v46 = vpop.permute.xlu0 %3327  ;;  %v7250_v52 = vand.u32 15, %v3098_v5  ;;  %v3135_v45 = vand.u32 14, %v7234_v11  ;;  %v3127_v53 = vand.u32 14, %v7236_v15  ;;  %v7277_v5 = vld [vmem:[%s5011_s26 + $0x58] sm:$0xff] }
 0x27d   : > { %v3190_v51 = vor.u32 %v3174_v60, %v3158_v13  ;;  %v3163_v62 = vadd.s32 1056964608, %v3147_v0  ;;  %v3189_v43 = vor.u32 %v3173_v57, %v3157_v36  ;;  %8173 = vst [vmem:[#allocation20_spill] sm:$0xff] %v7277_v5  ;;  %v3144_v42 = vshll.u32 %v3128_v4, 21 }
 0x27e   : > { %v3068_v19 = vpack.c.bf16 %v3060_v3, %v3059_v48  ;;  %3891 = vperm.xlu1 %4628, %v3665_v54   ;;  %v3105_v54 = vshra.s32 %v7244_v61, 24  ;;  %v7257_v3 = vld [vmem:[%s5011_s26 + $0x48] sm:$0xff]  ;;  %v3130_v23 = vand.u32 14, %v7250_v52  ;;  %v3151_v16 = vshll.u32 %v3135_v45, 21 }
 0x27f   : > { %8171 = vst [vmem:[#allocation22_spill] sm:$0xff] %v7257_v3  ;;  %v3102_v6 = vshra.s32 %v7257_v3, 24  ;;  %v3143_v22 = vshll.u32 %v3127_v53, 21  ;;  %v7285_v0 = vor.u32 %v3177_v41, %v3161_v63  ;;  %v3183_v36 = vshll.u32 %v7234_v11, 31  ;;  %v7298_v63 = vld [vmem:[%s5011_s26 + $0x68] sm:$0xff] }
 0x280   : > { %3076 = vst [vmem:[%s5402_s30 + $0x1e8] sm:$0xff] %v3068_v19  ;;  %v7171_v59 = vpop.permute.xlu1 %3287  ;;  %v7173_v25 = vpop.permute.xlu0 %3337  ;;  %v7274_v12 = vand.u32 15, %v3105_v54  ;;  %v3107_v57 = vshra.s32 %v7270_v47, 24  ;;  %v3132_v45 = vand.u32 14, %v7266_v17  ;;  %v7290_v53 = vor.u32 %v3179_v35, %v3163_v62 }
 0x281   : > { %v3146_v54 = vshll.u32 %v3130_v23, 21  ;;  %v7292_v61 = vand.u32 15, %v3102_v6  ;;  %v3167_v40 = vadd.s32 1056964608, %v3151_v16  ;;  %v3159_v26 = vadd.s32 1056964608, %v3143_v22 }
 0x282   : > { %3901 = vperm.xlu1 %4628, %v3667_v30   ;;  %v3149_v30 = vshll.u32 %v3133_v7, 21  ;;  %v3137_v4 = vand.u32 14, %v7274_v12  ;;  %v3160_v62 = vadd.s32 1056964608, %v3144_v42  ;;  %v3176_v35 = vshll.u32 %v7246_v21, 31 }
 0x283   : > { %v7310_v6 = vand.u32 15, %v3107_v57  ;;  %v3178_v16 = vshll.u32 %v7250_v52, 31  ;;  %v3148_v22 = vshll.u32 %v3132_v45, 21  ;;  %v3162_v38 = vadd.s32 1056964608, %v3146_v54 }
 0x284   : > { %v7183_v49 = vpop.permute.xlu1 %3297  ;;  %v7185_v58 = vpop.permute.xlu0 %3347  ;;  %v3165_v60 = vadd.s32 1056964608, %v3149_v30  ;;  %v3104_v30 = vshra.s32 %v7277_v5, 24  ;;  %v3134_v5 = vand.u32 14, %v7292_v61  ;;  %v7317_v42 = vor.u32 %v3183_v36, %v3167_v40  ;;  %v7333_v40 = vld [vmem:[%s5011_s26 + $0x78] sm:$0xff] }
 0x285   : > { %v3191_v3 = vor.u32 %v3175_v44, %v3159_v26  ;;  %v7319_v14 = vshll.u32 %v3137_v4, 21  ;;  %v3366_v45 = vsel %vm3270_vm0, %v7130_v34, %v3190_v51  ;;  %v3365_v54 = vsel %vm3269_vm1, %v7171_v59, %v3189_v43  ;;  %8174 = vst [vmem:[#allocation21_spill] sm:$0xff] %v7333_v40 }
 0x286   : > { %v7304_v24 = vor.u32 %v3181_v1, %v3165_v60  ;;  %v7314_v60 = vand.u32 15, %v3104_v30  ;;  %v3106_v1 = vshra.s32 %v7298_v63, 24  ;;  %v3192_v30 = vor.u32 %v3176_v35, %v3160_v62 }
 0x287   : > { %v3164_v44 = vadd.s32 1056964608, %v3148_v22  ;;  %v3180_v26 = vshll.u32 %v7266_v17, 31  ;;  %v3194_v36 = vor.u32 %v3178_v16, %v3162_v38  ;;  %v3150_v34 = vshll.u32 %v3134_v5, 21 }
 0x288   : > { %v7196_v18 = vpop.permute.xlu1 %3302  ;;  %v7198_v55 = vpop.permute.xlu0 %3357  ;;  %v3136_v51 = vand.u32 14, %v7314_v60  ;;  %v7341_v4 = vand.u32 15, %v3106_v1  ;;  %v3381_v59 = vsel %vm3253_vm4, 0.0, %v3365_v54  ;;  %v3108_v9 = vshra.s32 %v7333_v40, 24 }
 0x289   : > { %v3382_v62 = vsel %vm3254_vm5, 0.0, %v3366_v45  ;;  %v3367_v38 = vsel %vm3271_vm2, %v7183_v49, %v3191_v3  ;;  %v3368_v5 = vsel %vm3272_vm7, %v7196_v18, %v3192_v30  ;;  %vm3274_vm11 = vcmp.eq.s32.totalorder %v7250_v52, 3 }
 0x28a   : > { %v3196_v27 = vor.u32 %v3180_v26, %v3164_v44  ;;  %v3182_v1 = vshll.u32 %v7292_v61, 31  ;;  %v3166_v45 = vadd.s32 1056964608, %v3150_v34  ;;  %v3152_v54 = vshll.u32 %v3136_v51, 21 }
 0x28b   : > { %v3138_v40 = vand.u32 14, %v7341_v4  ;;  %v3383_v18 = vsel %vm3255_vm8, 0.0, %v3367_v38  ;;  %v3384_v3 = vsel %vm3256_vm9, 0.0, %v3368_v5  ;;  %vm3258_vm13 = vcmp.eq.s32.totalorder %v7250_v52, 2 }
 0x28c   : > { %v7221_v56 = vpop.permute.xlu1 %3312  ;;  %v7223_v50 = vpop.permute.xlu0 %3399  ;;  %v3369_v26 = vsel %vm3273_vm3, %v7143_v10, %v7285_v0  ;;  %v3139_v21 = vand.u32 14, %v7310_v6  ;;  %vm3259_vm0 = vcmp.eq.s32.totalorder %v7213_v37, 2  ;;  %vm3260_vm1 = vcmp.eq.s32.totalorder %v7266_v17, 2 }
 0x28d   : > { %v3477_v16 = vmul.f32 %v7223_v50, %v3381_v59  ;;  %v7361_v50 = vand.u32 15, %v3108_v9  ;;  %v3370_v34 = vsel %vm3274_vm11, %v7221_v56, %v3194_v36  ;;  %v3184_v59 = vshll.u32 %v7314_v60, 31 }
 0x28e   : > { %v3198_v9 = vor.u32 %v3182_v1, %v3166_v45  ;;  %v3154_v10 = vshll.u32 %v3138_v40, 21  ;;  %v3385_v56 = vsel %vm3257_vm12, 0.0, %v3369_v26  ;;  %v3386_v36 = vsel %vm3258_vm13, 0.0, %v3370_v34 }
 0x28f   : > { %v3371_v38 = vsel %vm3275_vm6, %v7156_v33, %v7290_v53  ;;  %v3155_v52 = vshll.u32 %v3139_v21, 21  ;;  %vm3278_vm2 = vcmp.eq.s32.totalorder %v7292_v61, 3  ;;  %vm3261_vm3 = vcmp.eq.s32.totalorder %v7225_v29, 2 }
 0x290   : > { %v7238_v31 = vpop.permute.xlu1 %3322  ;;  %v7240_v39 = vpop.permute.xlu0 %3409  ;;  %v3170_v45 = vadd.s32 1056964608, %v3154_v10  ;;  %v3186_v33 = vshll.u32 %v7341_v4, 31  ;;  %vm3262_vm4 = vcmp.eq.s32.totalorder %v7292_v61, 2  ;;  %v3187_v34 = vshll.u32 %v7310_v6, 31 }
 0x291   : > { %v3479_v15 = vmul.f32 %v7240_v39, %v3383_v18  ;;  %v3140_v39 = vand.u32 14, %v7361_v50  ;;  %v3372_v5 = vsel %vm3276_vm15, %v7238_v31, %v3196_v27  ;;  %v3387_v31 = vsel %vm3259_vm0, 0.0, %v3371_v38 }
 0x292   : > { %v3388_v27 = vsel %vm3260_vm1, 0.0, %v3372_v5  ;;  %v3171_v26 = vadd.s32 1056964608, %v3155_v52  ;;  %vm3280_vm5 = vcmp.eq.s32.totalorder %v7314_v60, 3  ;;  %vm3263_vm6 = vcmp.eq.s32.totalorder %v7234_v11, 2 }
 0x293   : > { %vm3264_vm7 = vcmp.eq.s32.totalorder %v7314_v60, 2  ;;  %vm3281_vm8 = vcmp.eq.s32.totalorder %v7274_v12, 3  ;;  %vm3282_vm9 = vcmp.eq.s32.totalorder %v7341_v4, 3  ;;  %vm3266_vm11 = vcmp.eq.s32.totalorder %v7341_v4, 2 }
 0x294   : > { %v7259_v48 = vpop.permute.xlu1 %3332  ;;  %v7261_v19 = vpop.permute.xlu0 %3419  ;;  %v3203_v29 = vor.u32 %v3187_v34, %v3171_v26  ;;  %vm3283_vm12 = vcmp.eq.s32.totalorder %v7310_v6, 3  ;;  %vm3284_vm13 = vcmp.eq.s32.totalorder %v7361_v50, 3  ;;  %vm3268_vm15 = vcmp.eq.s32.totalorder %v7361_v50, 2  ;;  %v8179_v34 = vld [vmem:[#allocation31_spill] sm:$0xff] }
 0x295   : > { %v3481_v40 = vmul.f32 %v7261_v19, %v3385_v56  ;;  %v3156_v19 = vshll.u32 %v3140_v39, 21 }
 0x298   : > { %v7279_v7 = vpop.permute.xlu1 %3342  ;;  %v7281_v13 = vpop.permute.xlu0 %3429 }
 0x299   : > { %v3483_v18 = vmul.f32 %v7281_v13, %v3387_v31  ;;  %v3172_v13 = vadd.s32 1056964608, %v3156_v19  ;;  %v7474_v31 = vshrl.u32 %v7211_v28, 28 }
 0x29b   : > { %v3560_v28 = vand.u32 14, %v7474_v31  ;;  %vm3704_vm1 = vcmp.eq.s32.totalorder %v7474_v31, 3 }
 0x29c   : > { %v7300_v41 = vpop.permute.xlu1 %3352  ;;  %v7302_v47 = vpop.permute.xlu0 %3439 }
 0x2a0   : > { %v7322_v57 = vpop.permute.xlu1 %3362  ;;  %v7324_v23 = vpop.permute.xlu0 %3449 }
 0x2a4   : > { %v3405_v43 = vpop.permute.xlu1 %3404  ;;  %v7346_v35 = vpop.permute.xlu0 %3459 }
 0x2a5   : > { %v3478_v22 = vmul.f32 %v3405_v43, %v3382_v62  ;;  %v3168_v43 = vadd.s32 1056964608, %v3152_v54 }
 0x2a7   : > { %v3493_v49 = vpack.c.bf16 %v3478_v22, %v3477_v16  ;;  %v3169_v22 = vadd.s32 1056964608, %v7319_v14  ;;  %v3200_v1 = vor.u32 %v3184_v59, %v3168_v43  ;;  %v3373_v14 = vsel %vm3277_vm10, %v7161_v46, %v7304_v24 }
 0x2a8   : > { %v3415_v30 = vpop.permute.xlu1 %3414  ;;  %v7365_v44 = vpop.permute.xlu0 %3469  ;;  %v3202_v24 = vor.u32 %v3186_v33, %v3170_v45  ;;  %v3375_v59 = vsel %vm3279_vm14, %v7173_v25, %v7317_v42  ;;  %vm3265_vm10 = vcmp.eq.s32.totalorder %v7274_v12, 2  ;;  %vm3267_vm14 = vcmp.eq.s32.totalorder %v7310_v6, 2 }
 0x2a9   : > { %3501 = vst [vmem:[%s5402_s30 + $0x30] sm:$0xff] %v3493_v49  ;;  %v3480_v51 = vmul.f32 %v3415_v30, %v3384_v3  ;;  %v3374_v49 = vsel %vm3278_vm2, %v7259_v48, %v3198_v9  ;;  %v8175_v30 = vshll.u32 %v7274_v12, 31  ;;  %v3389_v48 = vsel %vm3261_vm3, 0.0, %v3373_v14 }
 0x2aa   : > { %v3376_v9 = vsel %vm3280_vm5, %v7279_v7, %v3200_v1  ;;  %v3485_v43 = vmul.f32 %v7302_v47, %v3389_v48  ;;  %v3391_v25 = vsel %vm3263_vm6, 0.0, %v3375_v59  ;;  %v3378_v39 = vsel %vm3282_vm9, %v7300_v41, %v3202_v24 }
 0x2ab   : > { %v3494_v0 = vpack.c.bf16 %v3480_v51, %v3479_v15  ;;  %v3201_v17 = vor.u32 %v8175_v30, %v3169_v22  ;;  %v3188_v15 = vshll.u32 %v7361_v50, 31  ;;  %v3390_v51 = vsel %vm3262_vm4, 0.0, %v3374_v49  ;;  %v8177_v49 = vld [vmem:[#allocation22_spill] sm:$0xff]  ;;  %v8178_v30 = vld [vmem:[#allocation20_spill] sm:$0xff] }
 0x2ac   : > { %v3425_v62 = vpop.permute.xlu1 %3424  ;;  %v3392_v47 = vsel %vm3264_vm7, 0.0, %v3376_v9 }
 0x2ad   : > { %3502 = vst [vmem:[%s5402_s30 + $0x70] sm:$0xff] %v3494_v0  ;;  %v3482_v8 = vmul.f32 %v3425_v62, %v3386_v36  ;;  %v7393_v16 = vpop.permute.xlu0 %3719  ;;  %v3204_v56 = vor.u32 %v3188_v15, %v3172_v13  ;;  %v3377_v42 = vsel %vm3281_vm8, %v7185_v58, %v3201_v17  ;;  %v3487_v36 = vmul.f32 %v7324_v23, %v3391_v25 }
 0x2ae   : > { %v3393_v60 = vsel %vm3265_vm10, 0.0, %v3377_v42  ;;  %v3394_v58 = vsel %vm3266_vm11, 0.0, %v3378_v39  ;;  %v3379_v23 = vsel %vm3283_vm12, %v7198_v55, %v3203_v29  ;;  %v7495_v17 = vshrl.u32 %v8178_v30, 28 }
 0x2af   : > { %v3495_v53 = vpack.c.bf16 %v3482_v8, %v3481_v40  ;;  %v3380_v4 = vsel %vm3284_vm13, %v7322_v57, %v3204_v56  ;;  %v3489_v5 = vmul.f32 %v7346_v35, %v3393_v60  ;;  %v3395_v22 = vsel %vm3267_vm14, 0.0, %v3379_v23 }
 0x2b0   : > { %v3435_v54 = vpop.permute.xlu1 %3434  ;;  %v3396_v52 = vsel %vm3268_vm15, 0.0, %v3380_v4  ;;  %v3491_v6 = vmul.f32 %v7365_v44, %v3395_v22  ;;  %v7479_v44 = vshrl.u32 %v7219_v2, 28  ;;  %v7502_v15 = vshrl.u32 %v8179_v34, 28 }
 0x2b1   : > { %3503 = vst [vmem:[%s5402_s30 + $0xb0] sm:$0xff] %v3495_v53  ;;  %v3484_v3 = vmul.f32 %v3435_v54, %v3388_v27  ;;  %v7411_v37 = vpop.permute.xlu0 %3734  ;;  %v7471_v53 = vshrl.u32 %v7169_v20, 28  ;;  %v7482_v27 = vshrl.u32 %v7164_v32, 28  ;;  %v8176_v54 = vld [vmem:[#allocation42_spill] sm:$0xff]  ;;  %v3576_v13 = vshll.u32 %v3560_v28, 21 }
 0x2b2   : > { %v7485_v14 = vshrl.u32 %v8176_v54, 28  ;;  %v3562_v32 = vand.u32 14, %v7479_v44  ;;  %v3559_v56 = vand.u32 14, %v7502_v15  ;;  %v3610_v60 = vshll.u32 %v7479_v44, 31 }
 0x2b3   : > { %v3496_v46 = vpack.c.bf16 %v3484_v3, %v3483_v18  ;;  %v7488_v18 = vshrl.u32 %v8177_v49, 28  ;;  %v3557_v20 = vand.u32 14, %v7471_v53  ;;  %v3558_v26 = vand.u32 14, %v7482_v27  ;;  %v8182_v49 = vld [vmem:[#allocation26_spill] sm:$0xff] }
 0x2b4   : > { %v3445_v21 = vpop.permute.xlu1 %3444  ;;  %v3578_v29 = vshll.u32 %v3562_v32, 21  ;;  %vm3701_vm0 = vcmp.eq.s32.totalorder %v7471_v53, 3  ;;  %v3575_v22 = vshll.u32 %v3559_v56, 21  ;;  %v3616_v54 = vshll.u32 %v7495_v17, 31 }
 0x2b5   : > { %3504 = vst [vmem:[%s5402_s30 + $0xf0] sm:$0xff] %v3496_v46  ;;  %v3486_v10 = vmul.f32 %v3445_v21, %v3390_v51  ;;  %v7431_v0 = vpop.permute.xlu0 %3744  ;;  %v3564_v46 = vand.u32 14, %v7485_v14  ;;  %v3566_v24 = vand.u32 14, %v7488_v18  ;;  %v3573_v48 = vshll.u32 %v3557_v20, 21  ;;  %v8180_v21 = vld [vmem:[#allocation41_spill] sm:$0xff] }
 0x2b6   : > { %v3568_v51 = vand.u32 14, %v7495_v17  ;;  %v7508_v59 = vshrl.u32 %v8180_v21, 28  ;;  %v7537_v20 = vshrl.u32 %v8182_v49, 28  ;;  %vm3706_vm2 = vcmp.eq.s32.totalorder %v7479_v44, 3 }
 0x2b7   : > { %v3497_v61 = vpack.c.bf16 %v3486_v10, %v3485_v43  ;;  %v3605_v10 = vshll.u32 %v7471_v53, 31  ;;  %v3580_v25 = vshll.u32 %v3564_v46, 21  ;;  %v3589_v39 = vadd.s32 1056964608, %v3573_v48 }
 0x2b8   : > { %v3455_v7 = vpop.permute.xlu1 %3454  ;;  %v3561_v23 = vand.u32 14, %v7508_v59  ;;  %v3591_v48 = vadd.s32 1056964608, %v3575_v22  ;;  %vm3702_vm3 = vcmp.eq.s32.totalorder %v7482_v27, 3  ;;  %v3565_v56 = vand.u32 14, %v7537_v20 }
 0x2b9   : > { %3505 = vst [vmem:[%s5402_s30 + $0x130] sm:$0xff] %v3497_v61  ;;  %v3488_v62 = vmul.f32 %v3455_v7, %v3392_v47  ;;  %v7445_v38 = vpop.permute.xlu0 %3754  ;;  %v3574_v61 = vshll.u32 %v3558_v26, 21  ;;  %v3582_v47 = vshll.u32 %v3566_v24, 21  ;;  %v8181_v7 = vld [vmem:[#allocation23_spill] sm:$0xff]  ;;  %v3621_v28 = vor.u32 %v3605_v10, %v3589_v39 }
 0x2ba   : > { %v7518_v42 = vshrl.u32 %v8181_v7, 28  ;;  %v3577_v26 = vshll.u32 %v3561_v23, 21  ;;  %vm3686_vm4 = vcmp.eq.s32.totalorder %v7482_v27, 2  ;;  %vm3685_vm5 = vcmp.eq.s32.totalorder %v7471_v53, 2 }
 0x2bb   : > { %v3498_v11 = vpack.c.bf16 %v3488_v62, %v3487_v36  ;;  %v3592_v36 = vadd.s32 1056964608, %v3576_v13  ;;  %v3608_v62 = vshll.u32 %v7474_v31, 31  ;;  %v3607_v13 = vshll.u32 %v7502_v15, 31 }
 0x2bc   : > { %v3465_v41 = vpop.permute.xlu1 %3464  ;;  %v3593_v39 = vadd.s32 1056964608, %v3577_v26  ;;  %vm3708_vm6 = vcmp.eq.s32.totalorder %v7485_v14, 3  ;;  %vm3703_vm7 = vcmp.eq.s32.totalorder %v7502_v15, 3  ;;  %v3611_v22 = vshll.u32 %v7518_v42, 31 }
 0x2bd   : > { %3506 = vst [vmem:[%s5402_s30 + $0x170] sm:$0xff] %v3498_v11  ;;  %v3490_v40 = vmul.f32 %v3465_v41, %v3394_v58  ;;  %v7457_v8 = vpop.permute.xlu0 %3764  ;;  %v3584_v11 = vshll.u32 %v3568_v51, 21  ;;  %v3612_v58 = vshll.u32 %v7485_v14, 31  ;;  %v7524_v41 = vshrl.u32 %v7298_v63, 28 }
 0x2be   : > { %v3624_v30 = vor.u32 %v3608_v62, %v3592_v36  ;;  %v3609_v36 = vshll.u32 %v7508_v59, 31  ;;  %v3623_v23 = vor.u32 %v3607_v13, %v3591_v48  ;;  %vm3688_vm8 = vcmp.eq.s32.totalorder %v7474_v31, 2 }
 0x2bf   : > { %v3499_v12 = vpack.c.bf16 %v3490_v40, %v3489_v5  ;;  %v3594_v5 = vadd.s32 1056964608, %v3578_v29  ;;  %v3590_v40 = vadd.s32 1056964608, %v3574_v61  ;;  %v3600_v63 = vadd.s32 1056964608, %v3584_v11 }
 0x2c0   : > { %v3475_v1 = vpop.permute.xlu1 %3474  ;;  %v3570_v32 = vand.u32 14, %v7524_v41  ;;  %v3618_v61 = vshll.u32 %v7524_v41, 31  ;;  %vm3687_vm9 = vcmp.eq.s32.totalorder %v7502_v15, 2  ;;  %vm3710_vm10 = vcmp.eq.s32.totalorder %v7488_v18, 3 }
 0x2c1   : > { %3507 = vst [vmem:[%s5402_s30 + $0x1b0] sm:$0xff] %v3499_v12  ;;  %v3492_v45 = vmul.f32 %v3475_v1, %v3396_v52  ;;  %v7461_v33 = vpop.permute.xlu0 %3774  ;;  %v3606_v12 = vshll.u32 %v7482_v27, 31  ;;  %v3596_v52 = vadd.s32 1056964608, %v3580_v25  ;;  %v3598_v1 = vadd.s32 1056964608, %v3582_v47  ;;  %v8183_v25 = vld [vmem:[#allocation24_spill] sm:$0xff] }
 0x2c2   : > { %v3626_v46 = vor.u32 %v3610_v60, %v3594_v5  ;;  %v7549_v29 = vor.u32 %v3616_v54, %v3600_v63  ;;  %v7554_v47 = vshrl.u32 %v8183_v25, 28  ;;  %v7556_v7 = vshll.u32 %v3570_v32, 21  ;;  %v8184_v5 = vld [vmem:[#allocation21_spill] sm:$0xff] }
 0x2c3   : > { %v3500_v50 = vpack.c.bf16 %v3492_v45, %v3491_v6  ;;  %v3614_v6 = vshll.u32 %v7488_v18, 31  ;;  %v3563_v45 = vand.u32 14, %v7518_v42  ;;  %v3622_v24 = vor.u32 %v3606_v12, %v3590_v40 }
 0x2c4   : > { %v7544_v51 = vor.u32 %v3612_v58, %v3596_v52  ;;  %v3797_v60 = vsel %vm3701_vm0, %v7393_v16, %v3621_v28  ;;  %v7570_v40 = vshrl.u32 %v8184_v5, 28  ;;  %v3581_v52 = vshll.u32 %v3565_v56, 21 }
 0x2c5   : > { %3508 = vst [vmem:[%s5402_s30 + $0x1f0] sm:$0xff] %v3500_v50  ;;  %v7464_v55 = vpop.permute.xlu1 %3724  ;;  %v7466_v57 = vpop.permute.xlu0 %3784  ;;  %v7546_v21 = vor.u32 %v3614_v6, %v3598_v1  ;;  %v3579_v10 = vshll.u32 %v3563_v45, 21  ;;  %v3567_v16 = vand.u32 14, %v7554_v47  ;;  %v8185_v1 = vld [vmem:[#allocation32_spill] sm:$0xff]  ;;  %v3625_v6 = vor.u32 %v3609_v36, %v3593_v39 }
 0x2c6   : > { %v3798_v58 = vsel %vm3702_vm3, %v7464_v55, %v3622_v24  ;;  %v7576_v55 = vshrl.u32 %v8185_v1, 28  ;;  %v3813_v63 = vsel %vm3685_vm5, 0.0, %v3797_v60  ;;  %v3800_v54 = vsel %vm3704_vm1, %v7411_v37, %v3624_v30 }
 0x2c7   : > { %v3595_v12 = vadd.s32 1056964608, %v3579_v10  ;;  %v3814_v53 = vsel %vm3686_vm4, 0.0, %v3798_v58  ;;  %vm3705_vm11 = vcmp.eq.s32.totalorder %v7508_v59, 3  ;;  %v3613_v27 = vshll.u32 %v7537_v20, 31 }
 0x2c8   : > { %vm3690_vm12 = vcmp.eq.s32.totalorder %v7479_v44, 2  ;;  %v3597_v48 = vadd.s32 1056964608, %v3581_v52  ;;  %v3583_v13 = vshll.u32 %v3567_v16, 21  ;;  %v3569_v37 = vand.u32 14, %v7576_v55 }
 0x2c9   : > { %v7468_v35 = vpop.permute.xlu1 %3729  ;;  %v7490_v3 = vpop.permute.xlu0 %3794  ;;  %v3627_v26 = vor.u32 %v3611_v22, %v3595_v12  ;;  %vm3689_vm13 = vcmp.eq.s32.totalorder %v7508_v59, 2  ;;  %v3802_v39 = vsel %vm3706_vm2, %v7431_v0, %v3626_v46  ;;  %vm3712_vm14 = vcmp.eq.s32.totalorder %v7495_v17, 3 }
 0x2ca   : > { %v3799_v49 = vsel %vm3703_vm7, %v7468_v35, %v3623_v23  ;;  %v3816_v35 = vsel %vm3688_vm8, 0.0, %v3800_v54  ;;  %v3572_v58 = vand.u32 14, %v7570_v40  ;;  %vm3707_vm15 = vcmp.eq.s32.totalorder %v7518_v42, 3 }
 0x2cb   : > { %v3815_v56 = vsel %vm3687_vm9, 0.0, %v3799_v49  ;;  %v3615_v15 = vshll.u32 %v7554_v47, 31  ;;  %vm3692_vm0 = vcmp.eq.s32.totalorder %v7485_v14, 2  ;;  %v3629_v23 = vor.u32 %v3613_v27, %v3597_v48 }
 0x2cc   : > { %v3599_v5 = vadd.s32 1056964608, %v3583_v13  ;;  %v3585_v0 = vshll.u32 %v3569_v37, 21  ;;  %vm3691_vm1 = vcmp.eq.s32.totalorder %v7518_v42, 2  ;;  %v3804_v16 = vsel %vm3708_vm6, %v7445_v38, %v7544_v51 }
 0x2cd   : > { %v7476_v19 = vpop.permute.xlu1 %3739  ;;  %v7510_v9 = vpop.permute.xlu0 %3836  ;;  %vm3709_vm2 = vcmp.eq.s32.totalorder %v7537_v20, 3  ;;  %vm3694_vm3 = vcmp.eq.s32.totalorder %v7488_v18, 2  ;;  %v3617_v54 = vshll.u32 %v7576_v55, 31  ;;  %v3820_v38 = vsel %vm3692_vm0, 0.0, %v3804_v16 }
 0x2ce   : > { %v3910_v28 = vmul.f32 %v7510_v9, %v3814_v53  ;;  %v8186_v9 = vld [vmem:[#allocation28_spill] sm:$0xff]  ;;  %v3801_v36 = vsel %vm3705_vm11, %v7476_v19, %v3625_v6  ;;  %v3818_v19 = vsel %vm3690_vm12, 0.0, %v3802_v39  ;;  %v3602_v53 = vadd.s32 1056964608, %v7556_v7 }
 0x2cf   : > { %v7594_v10 = vshrl.u32 %v8186_v9, 28  ;;  %v3817_v22 = vsel %vm3689_vm13, 0.0, %v3801_v36  ;;  %v3631_v59 = vor.u32 %v3615_v15, %v3599_v5  ;;  %vm3693_vm4 = vcmp.eq.s32.totalorder %v7537_v20, 2 }
 0x2d0   : > { %v3806_v7 = vsel %vm3710_vm10, %v7457_v8, %v7546_v21  ;;  %v3634_v14 = vor.u32 %v3618_v61, %v3602_v53  ;;  %v3620_v42 = vshll.u32 %v7570_v40, 31  ;;  %vm3711_vm5 = vcmp.eq.s32.totalorder %v7554_v47, 3 }
 0x2d1   : > { %v7497_v2 = vpop.permute.xlu1 %3749  ;;  %v7532_v50 = vpop.permute.xlu0 %3846  ;;  %v3571_v12 = vand.u32 14, %v7594_v10  ;;  %v3619_v13 = vshll.u32 %v7594_v10, 31  ;;  %vm3696_vm6 = vcmp.eq.s32.totalorder %v7495_v17, 2  ;;  %vm3695_vm7 = vcmp.eq.s32.totalorder %v7554_v47, 2 }
 0x2d2   : > { %v3912_v60 = vmul.f32 %v7532_v50, %v3816_v35  ;;  %v3803_v1 = vsel %vm3707_vm15, %v7497_v2, %v3627_v26  ;;  %v3822_v21 = vsel %vm3694_vm3, 0.0, %v3806_v7  ;;  %vm3714_vm8 = vcmp.eq.s32.totalorder %v7524_v41, 3 }
 0x2d3   : > { %v3587_v2 = vshll.u32 %v3571_v12, 21  ;;  %v3819_v51 = vsel %vm3691_vm1, 0.0, %v3803_v1  ;;  %vm3713_vm9 = vcmp.eq.s32.totalorder %v7576_v55, 3  ;;  %vm3698_vm10 = vcmp.eq.s32.totalorder %v7524_v41, 2 }
 0x2d4   : > { %vm3697_vm11 = vcmp.eq.s32.totalorder %v7576_v55, 2  ;;  %vm3716_vm12 = vcmp.eq.s32.totalorder %v7570_v40, 3  ;;  %vm3715_vm13 = vcmp.eq.s32.totalorder %v7594_v10, 3  ;;  %vm3699_vm15 = vcmp.eq.s32.totalorder %v7594_v10, 2 }
 0x2d5   : > { %v7512_v43 = vpop.permute.xlu1 %3759  ;;  %v3857_v62 = vpop.permute.xlu0 %3856 }
 0x2d6   : > { %v3914_v6 = vmul.f32 %v3857_v62, %v3818_v19 }
 0x2d9   : > { %v7527_v4 = vpop.permute.xlu1 %3769  ;;  %v3867_v24 = vpop.permute.xlu0 %3866 }
 0x2da   : > { %v3807_v35 = vsel %vm3711_vm5, %v7527_v4, %v3631_v59 }
 0x2dd   : > { %v7540_v34 = vpop.permute.xlu1 %3779  ;;  %v3877_v50 = vpop.permute.xlu0 %3876 }
 0x2de   : > { %v3918_v9 = vmul.f32 %v3877_v50, %v3822_v21 }
 0x2e1   : > { %v7560_v11 = vpop.permute.xlu1 %3789  ;;  %v3887_v48 = vpop.permute.xlu0 %3886 }
 0x2e5   : > { %v3832_v45 = vpop.permute.xlu1 %3831  ;;  %v3897_v36 = vpop.permute.xlu0 %3896 }
 0x2e6   : > { %v3909_v32 = vmul.f32 %v3832_v45, %v3813_v63  ;;  %v3588_v45 = vshll.u32 %v3572_v58, 21  ;;  %v3601_v63 = vadd.s32 1056964608, %v3585_v0 }
 0x2e8   : > { %v3925_v30 = vpack.c.bf16 %v3910_v28, %v3909_v32  ;;  %v3805_v28 = vsel %vm3709_vm2, %v7512_v43, %v3629_v23  ;;  %v3916_v32 = vmul.f32 %v3867_v24, %v3820_v38  ;;  %v3604_v27 = vadd.s32 1056964608, %v3588_v45 }
 0x2e9   : > { %v3842_v25 = vpop.permute.xlu1 %3841  ;;  %v3633_v43 = vor.u32 %v3617_v54, %v3601_v63  ;;  %v3603_v24 = vadd.s32 1056964608, %v3587_v2  ;;  %v3821_v61 = vsel %vm3693_vm4, 0.0, %v3805_v28  ;;  %v3907_v0 = vpop.permute.xlu0 %3906 }
 0x2ea   : > { %3933 = vst [vmem:[%s5402_s30 + $0x38] sm:$0xff] %v3925_v30  ;;  %v3911_v31 = vmul.f32 %v3842_v25, %v3815_v56  ;;  %v3808_v30 = vsel %vm3712_vm14, %v7461_v33, %v7549_v29  ;;  %v3636_v18 = vor.u32 %v3620_v42, %v3604_v27  ;;  %v3823_v33 = vsel %vm3695_vm7, 0.0, %v3807_v35 }
 0x2eb   : > { %v3635_v25 = vor.u32 %v3619_v13, %v3603_v24  ;;  %v3824_v39 = vsel %vm3696_vm6, 0.0, %v3808_v30  ;;  %v3810_v29 = vsel %vm3714_vm8, %v7466_v57, %v3634_v14  ;;  %vm3700_vm14 = vcmp.eq.s32.totalorder %v7570_v40, 2 }
 0x2ec   : > { %v3926_v46 = vpack.c.bf16 %v3912_v60, %v3911_v31  ;;  %v3809_v60 = vsel %vm3713_vm9, %v7540_v34, %v3633_v43  ;;  %v3920_v31 = vmul.f32 %v3887_v48, %v3824_v39  ;;  %v3826_v47 = vsel %vm3698_vm10, 0.0, %v3810_v29 }
 0x2ed   : > { %v3852_v52 = vpop.permute.xlu1 %3851  ;;  %v3825_v55 = vsel %vm3697_vm11, 0.0, %v3809_v60  ;;  %v3812_v57 = vsel %vm3716_vm12, %v7490_v3, %v3636_v18  ;;  %v3811_v34 = vsel %vm3715_vm13, %v7560_v11, %v3635_v25  ;;  %v3922_v23 = vmul.f32 %v3897_v36, %v3826_v47 }
 0x2ee   : > { %3934 = vst [vmem:[%s5402_s30 + $0x78] sm:$0xff] %v3926_v46  ;;  %v3913_v44 = vmul.f32 %v3852_v52, %v3817_v22  ;;  %v3828_v19 = vsel %vm3700_vm14, 0.0, %v3812_v57  ;;  %v3827_v41 = vsel %vm3699_vm15, 0.0, %v3811_v34 }
 0x2ef   : > { %v3924_v12 = vmul.f32 %v3907_v0, %v3828_v19 }
 0x2f0   : > { %v3927_v49 = vpack.c.bf16 %v3914_v6, %v3913_v44 }
 0x2f1   : > { %v3862_v62 = vpop.permute.xlu1 %3861 }
 0x2f2   : > { %3935 = vst [vmem:[%s5402_s30 + $0xb8] sm:$0xff] %v3927_v49  ;;  %v3915_v26 = vmul.f32 %v3862_v62, %v3819_v51 }
 0x2f4   : > { %v3928_v8 = vpack.c.bf16 %v3916_v32, %v3915_v26 }
 0x2f5   : > { %v3872_v37 = vpop.permute.xlu1 %3871 }
 0x2f6   : > { %3936 = vst [vmem:[%s5402_s30 + $0xf8] sm:$0xff] %v3928_v8  ;;  %v3917_v56 = vmul.f32 %v3872_v37, %v3821_v61 }
 0x2f8   : > { %v3929_v20 = vpack.c.bf16 %v3918_v9, %v3917_v56 }
 0x2f9   : > { %v3882_v4 = vpop.permute.xlu1 %3881 }
 0x2fa   : > { %3937 = vst [vmem:[%s5402_s30 + $0x138] sm:$0xff] %v3929_v20  ;;  %v3919_v58 = vmul.f32 %v3882_v4, %v3823_v33 }
 0x2fc   : > { %v3930_v17 = vpack.c.bf16 %v3920_v31, %v3919_v58 }
 0x2fd   : > { %v3892_v15 = vpop.permute.xlu1 %3891 }
 0x2fe   : > { %3938 = vst [vmem:[%s5402_s30 + $0x178] sm:$0xff] %v3930_v17  ;;  %v3921_v5 = vmul.f32 %v3892_v15, %v3825_v55 }
 0x300   : > { %v3931_v46 = vpack.c.bf16 %v3922_v23, %v3921_v5 }
 0x301   : > { %v3902_v50 = vpop.permute.xlu1 %3901 }
 0x302   : > { %3939 = vst [vmem:[%s5402_s30 + $0x1b8] sm:$0xff] %v3931_v46  ;;  %v3923_v40 = vmul.f32 %v3902_v50, %v3827_v41 }
 0x304   : > { %v3932_v22 = vpack.c.bf16 %v3924_v12, %v3923_v40 }
 0x306   : > { %3940 = vst [vmem:[%s5402_s30 + $0x1f8] sm:$0xff] %v3932_v22 }
 0x307 PF: > { %s8187_s26 = sld [smem:[#allocation9_spill]]  ;;  %v7678_v3 = vld [vmem:[%s5009_s27] sm:$0xff]  ;;  %v7684_v10 = vld [vmem:[%s5009_s27 + $0x8] sm:$0xff]  ;;  %v7730_v39 = vld [vmem:[%s5009_s27 + $0x10] sm:$0xff] }
 0x308   : > { %v7681_v11 = vld [vmem:[%s5009_s27 + $0x20] sm:$0xff]  ;;  %v7687_v52 = vld [vmem:[%s5009_s27 + $0x28] sm:$0xff]  ;;  %v7737_v4 = vld [vmem:[%s5009_s27 + $0x30] sm:$0xff] }
 0x309   : > { %v4454_v44 = vcombine.high %v7678_v3, %v7681_v11  ;;  %v4456_v53 = vcombine.high %v7684_v10, %v7687_v52  ;;  %v4453_v36 = vcombine.low %v7678_v3, %v7681_v11  ;;  %v4455_v33 = vcombine.low %v7684_v10, %v7687_v52  ;;  %v7740_v29 = vld [vmem:[%s5009_s27 + $0x18] sm:$0xff] }
 0x30a   : > { %v7743_v60 = vld [vmem:[%s5009_s27 + $0x38] sm:$0xff]  ;;  %v4458_v55 = vcombine.high %v7730_v39, %v7737_v4 }
 0x30b   : > { %4090 = vmatprep.mubr.bf16.mxu0 %v4454_v44  ;;  %4131 = vmatprep.mubr.bf16.mxu1 %v4456_v53  ;;  %v4460_v15 = vcombine.high %v7740_v29, %v7743_v60 }
 0x30d   : > { %s4473_s13 = sshll.u32 %s8187_s26, 9  ;;  %p4461_p0 = scmp.ne.s32.totalorder %s8187_s26, 1 }
 0x30e   : > { %s7689_s10 = scalar_lea.vmem [#allocation3], %s4473_s13 }
 0x30f   : > { %v3955_v16 = vld [vmem:[%s7689_s10 + $0x8] sm:$0xff]  ;;  %v3957_v1 = vld [vmem:[%s7689_s10 + $0x18] sm:$0xff]  ;;  %v3954_v6 = vld [vmem:[%s7689_s10] sm:$0xff] }
 0x310   : > { %4058 = vmatprep.subr.bf16.mxu0 %v3955_v16  ;;  %4099 = vmatprep.subr.bf16.mxu1 %v3957_v1  ;;  %v3956_v45 = vld [vmem:[%s7689_s10 + $0x10] sm:$0xff]  ;;  %v3963_v59 = vld [vmem:[%s7689_s10 + $0x48] sm:$0xff]  ;;  %v3965_v63 = vld [vmem:[%s7689_s10 + $0x58] sm:$0xff] }
 0x311   : > { %4059 = vmatpush1.bf16.xpose.msra.mxu0 %v3954_v6  ;;  %4100 = vmatpush1.bf16.xpose.msra.mxu1 %v3956_v45  ;;  %v3962_v54 = vld [vmem:[%s7689_s10 + $0x40] sm:$0xff]  ;;  %v3964_v49 = vld [vmem:[%s7689_s10 + $0x50] sm:$0xff]  ;;  %v3971_v38 = vld [vmem:[%s7689_s10 + $0x88] sm:$0xff] }
 0x312   : > { %4060 = vmatprep.subr.bf16.mxu0 %v3963_v59  ;;  %4101 = vmatprep.subr.bf16.mxu1 %v3965_v63  ;;  %v3973_v2 = vld [vmem:[%s7689_s10 + $0x98] sm:$0xff]  ;;  %v3970_v51 = vld [vmem:[%s7689_s10 + $0x80] sm:$0xff]  ;;  %v3972_v62 = vld [vmem:[%s7689_s10 + $0x90] sm:$0xff] }
 0x313   : > { %v3979_v7 = vld [vmem:[%s7689_s10 + $0xc8] sm:$0xff]  ;;  %v3981_v28 = vld [vmem:[%s7689_s10 + $0xd8] sm:$0xff]  ;;  %v3978_v32 = vld [vmem:[%s7689_s10 + $0xc0] sm:$0xff] }
 0x314   : > { %v3980_v26 = vld [vmem:[%s7689_s10 + $0xd0] sm:$0xff]  ;;  %v3987_v14 = vld [vmem:[%s7689_s10 + $0x108] sm:$0xff]  ;;  %v3989_v27 = vld [vmem:[%s7689_s10 + $0x118] sm:$0xff] }
 0x315   : > { %v3986_v42 = vld [vmem:[%s7689_s10 + $0x100] sm:$0xff]  ;;  %v3988_v48 = vld [vmem:[%s7689_s10 + $0x110] sm:$0xff]  ;;  %v3995_v13 = vld [vmem:[%s7689_s10 + $0x148] sm:$0xff] }
 0x316   : > { %v3997_v8 = vld [vmem:[%s7689_s10 + $0x158] sm:$0xff]  ;;  %v3994_v43 = vld [vmem:[%s7689_s10 + $0x140] sm:$0xff]  ;;  %v3996_v21 = vld [vmem:[%s7689_s10 + $0x150] sm:$0xff] }
 0x317   : > { %v4003_v24 = vld [vmem:[%s7689_s10 + $0x188] sm:$0xff]  ;;  %v4005_v61 = vld [vmem:[%s7689_s10 + $0x198] sm:$0xff]  ;;  %v4002_v37 = vld [vmem:[%s7689_s10 + $0x180] sm:$0xff] }
 0x318   : > { %v4004_v30 = vld [vmem:[%s7689_s10 + $0x190] sm:$0xff]  ;;  %v4011_v35 = vld [vmem:[%s7689_s10 + $0x1c8] sm:$0xff]  ;;  %v4013_v9 = vld [vmem:[%s7689_s10 + $0x1d8] sm:$0xff] }
 0x319   : > { %4061 = vmatpush1.bf16.xpose.msra.mxu0 %v3962_v54  ;;  %4102 = vmatpush1.bf16.xpose.msra.mxu1 %v3964_v49  ;;  %v4010_v56 = vld [vmem:[%s7689_s10 + $0x1c0] sm:$0xff]  ;;  %v4012_v18 = vld [vmem:[%s7689_s10 + $0x1d0] sm:$0xff]  ;;  %v3959_v20 = vld [vmem:[%s7689_s10 + $0x28] sm:$0xff] }
 0x31a   : > { %4062 = vmatprep.subr.bf16.mxu0 %v3971_v38  ;;  %4103 = vmatprep.subr.bf16.mxu1 %v3973_v2  ;;  %v3961_v25 = vld [vmem:[%s7689_s10 + $0x38] sm:$0xff]  ;;  %v3958_v31 = vld [vmem:[%s7689_s10 + $0x20] sm:$0xff]  ;;  %v3960_v58 = vld [vmem:[%s7689_s10 + $0x30] sm:$0xff]  ;;  %v4457_v38 = vcombine.low %v7730_v39, %v7737_v4  ;;  %v4459_v2 = vcombine.low %v7740_v29, %v7743_v60 }
 0x31b   : > { %v3967_v17 = vld [vmem:[%s7689_s10 + $0x68] sm:$0xff]  ;;  %v3969_v47 = vld [vmem:[%s7689_s10 + $0x78] sm:$0xff]  ;;  %v3966_v57 = vld [vmem:[%s7689_s10 + $0x60] sm:$0xff] }
 0x31c   : > { %v3968_v34 = vld [vmem:[%s7689_s10 + $0x70] sm:$0xff]  ;;  %v3975_v23 = vld [vmem:[%s7689_s10 + $0xa8] sm:$0xff]  ;;  %v3977_v5 = vld [vmem:[%s7689_s10 + $0xb8] sm:$0xff] }
 0x31d   : > { %v3974_v0 = vld [vmem:[%s7689_s10 + $0xa0] sm:$0xff]  ;;  %v3976_v46 = vld [vmem:[%s7689_s10 + $0xb0] sm:$0xff]  ;;  %v3983_v19 = vld [vmem:[%s7689_s10 + $0xe8] sm:$0xff] }
 0x31e   : > { %v3985_v41 = vld [vmem:[%s7689_s10 + $0xf8] sm:$0xff]  ;;  %v3982_v50 = vld [vmem:[%s7689_s10 + $0xe0] sm:$0xff]  ;;  %v3984_v12 = vld [vmem:[%s7689_s10 + $0xf0] sm:$0xff] }
 0x31f   : > { %v3991_v40 = vld [vmem:[%s7689_s10 + $0x128] sm:$0xff]  ;;  %v3993_v22 = vld [vmem:[%s7689_s10 + $0x138] sm:$0xff]  ;;  %v3990_v3 = vld [vmem:[%s7689_s10 + $0x120] sm:$0xff] }
 0x320   : > { %v3992_v11 = vld [vmem:[%s7689_s10 + $0x130] sm:$0xff]  ;;  %v3999_v10 = vld [vmem:[%s7689_s10 + $0x168] sm:$0xff]  ;;  %v4001_v52 = vld [vmem:[%s7689_s10 + $0x178] sm:$0xff] }
 0x321   : > { %4063 = vmatpush1.bf16.xpose.msra.mxu0 %v3970_v51  ;;  %4104 = vmatpush1.bf16.xpose.msra.mxu1 %v3972_v62  ;;  %v3998_v16 = vld [vmem:[%s7689_s10 + $0x160] sm:$0xff]  ;;  %v4000_v1 = vld [vmem:[%s7689_s10 + $0x170] sm:$0xff]  ;;  %v4007_v6 = vld [vmem:[%s7689_s10 + $0x1a8] sm:$0xff] }
 0x322   : > { %4064 = vmatprep.subr.bf16.mxu0 %v3979_v7  ;;  %4105 = vmatprep.subr.bf16.mxu1 %v3981_v28  ;;  %v4009_v44 = vld [vmem:[%s7689_s10 + $0x1b8] sm:$0xff]  ;;  %v4006_v53 = vld [vmem:[%s7689_s10 + $0x1a0] sm:$0xff]  ;;  %v4008_v45 = vld [vmem:[%s7689_s10 + $0x1b0] sm:$0xff] }
 0x323   : > { %v4015_v59 = vld [vmem:[%s7689_s10 + $0x1e8] sm:$0xff]  ;;  %v4017_v63 = vld [vmem:[%s7689_s10 + $0x1f8] sm:$0xff]  ;;  %v4014_v54 = vld [vmem:[%s7689_s10 + $0x1e0] sm:$0xff] }
 0x324   : > { %v4016_v49 = vld [vmem:[%s7689_s10 + $0x1f0] sm:$0xff] }
 0x329   : > { %4065 = vmatpush1.bf16.xpose.msra.mxu0 %v3978_v32  ;;  %4106 = vmatpush1.bf16.xpose.msra.mxu1 %v3980_v26 }
 0x32a   : > { %4066 = vmatprep.subr.bf16.mxu0 %v3987_v14  ;;  %4107 = vmatprep.subr.bf16.mxu1 %v3989_v27 }
 0x331   : > { %4067 = vmatpush1.bf16.xpose.msra.mxu0 %v3986_v42  ;;  %4108 = vmatpush1.bf16.xpose.msra.mxu1 %v3988_v48 }
 0x332   : > { %4068 = vmatprep.subr.bf16.mxu0 %v3995_v13  ;;  %4109 = vmatprep.subr.bf16.mxu1 %v3997_v8 }
 0x339   : > { %4069 = vmatpush1.bf16.xpose.msra.mxu0 %v3994_v43  ;;  %4110 = vmatpush1.bf16.xpose.msra.mxu1 %v3996_v21 }
 0x33a   : > { %4070 = vmatprep.subr.bf16.mxu0 %v4003_v24  ;;  %4111 = vmatprep.subr.bf16.mxu1 %v4005_v61  ;;  %v3941_v61 = vld [vmem:[#allocation2] sm:$0xff] }
 0x341   : > { %4071 = vmatpush1.bf16.xpose.msra.mxu0 %v4002_v37  ;;  %4112 = vmatpush1.bf16.xpose.msra.mxu1 %v4004_v30 }
 0x342   : > { %4072 = vmatprep.subr.bf16.mxu0 %v4011_v35  ;;  %4113 = vmatprep.subr.bf16.mxu1 %v4013_v9 }
 0x349   : > { %4073 = vmatpush1.bf16.xpose.msra.mxu0 %v4010_v56  ;;  %4114 = vmatpush1.bf16.xpose.msra.mxu1 %v4012_v18 }
 0x34a   : > { %4140 = vmatprep.subr.bf16.mxu0 %v3959_v20  ;;  %4181 = vmatprep.subr.bf16.mxu1 %v3961_v25  ;;  %v3942_v20 = vld [vmem:[#allocation2 + $0x8] sm:$0xff] }
 0x350   : > { %4091 = vmatmul.mubr.bf16.vlgmr.msra.gmra.mrb[0].mxu0 %v4453_v36  ;;  %4132 = vmatmul.mubr.bf16.vlgmr.msra.gmra.mrb[0].mxu1 %v4455_v33 }
 0x351   : > { %4141 = vmatpush1.bf16.xpose.msra.mxu0 %v3958_v31  ;;  %4182 = vmatpush1.bf16.xpose.msra.mxu1 %v3960_v58 }
 0x352   : > { %4142 = vmatprep.subr.bf16.mxu0 %v3967_v17  ;;  %4183 = vmatprep.subr.bf16.mxu1 %v3969_v47 }
 0x353   : > { %4172 = vmatprep.mubr.bf16.mxu0 %v4458_v55  ;;  %4213 = vmatprep.mubr.bf16.mxu1 %v4460_v15 }
 0x359   : > { %4143 = vmatpush1.bf16.xpose.msra.mxu0 %v3966_v57  ;;  %4184 = vmatpush1.bf16.xpose.msra.mxu1 %v3968_v34 }
 0x35a   : > { %4144 = vmatprep.subr.bf16.mxu0 %v3975_v23  ;;  %4185 = vmatprep.subr.bf16.mxu1 %v3977_v5 }
 0x361   : > { %4145 = vmatpush1.bf16.xpose.msra.mxu0 %v3974_v0  ;;  %4186 = vmatpush1.bf16.xpose.msra.mxu1 %v3976_v46 }
 0x362   : > { %4146 = vmatprep.subr.bf16.mxu0 %v3983_v19  ;;  %4187 = vmatprep.subr.bf16.mxu1 %v3985_v41 }
 0x369   : > { %4147 = vmatpush1.bf16.xpose.msra.mxu0 %v3982_v50  ;;  %4188 = vmatpush1.bf16.xpose.msra.mxu1 %v3984_v12 }
 0x36a   : > { %4148 = vmatprep.subr.bf16.mxu0 %v3991_v40  ;;  %4189 = vmatprep.subr.bf16.mxu1 %v3993_v22 }
 0x371   : > { %4149 = vmatpush1.bf16.xpose.msra.mxu0 %v3990_v3  ;;  %4190 = vmatpush1.bf16.xpose.msra.mxu1 %v3992_v11 }
 0x372   : > { %4150 = vmatprep.subr.bf16.mxu0 %v3999_v10  ;;  %4191 = vmatprep.subr.bf16.mxu1 %v4001_v52 }
 0x379   : > { %4151 = vmatpush1.bf16.xpose.msra.mxu0 %v3998_v16  ;;  %4192 = vmatpush1.bf16.xpose.msra.mxu1 %v4000_v1 }
 0x37a   : > { %4152 = vmatprep.subr.bf16.mxu0 %v4007_v6  ;;  %4193 = vmatprep.subr.bf16.mxu1 %v4009_v44 }
 0x381   : > { %4153 = vmatpush1.bf16.xpose.msra.mxu0 %v4006_v53  ;;  %4194 = vmatpush1.bf16.xpose.msra.mxu1 %v4008_v45 }
 0x382   : > { %4154 = vmatprep.subr.bf16.mxu0 %v4015_v59  ;;  %4195 = vmatprep.subr.bf16.mxu1 %v4017_v63 }
 0x389   : > { %4155 = vmatpush1.bf16.xpose.msra.mxu0 %v4014_v54  ;;  %4196 = vmatpush1.bf16.xpose.msra.mxu1 %v4016_v49 }
 0x390   : > { %4173 = vmatmul.mubr.bf16.vlgmr.msra.gmra.mrb[4].mxu0 %v4457_v38  ;;  %4214 = vmatmul.mubr.bf16.vlgmr.msra.gmra.mrb[4].mxu1 %v4459_v2 }
 0x423   : > { %v4092_v51 = vpop.f32.mrb[0].mxu0  ;;  %v4133_v62 = vpop.f32.mrb[0].mxu1 }
 0x424   : > { %v4134_v7 = vadd.f32 %v4133_v62, %v4092_v51  ;;  %v4094_v28 = vpop.f32.mrb[1].mxu0  ;;  %v4135_v32 = vpop.f32.mrb[1].mxu1 }
 0x425   : > { %v4095_v26 = vpop.f32.mrb[2].mxu0  ;;  %v4136_v14 = vpop.f32.mrb[2].mxu1 }
 0x426   : > { %v4137_v27 = vadd.f32 %v4136_v14, %v4095_v26  ;;  %v4097_v42 = vpop.f32.mrb[3].mxu0  ;;  %v4138_v48 = vpop.f32.mrb[3].mxu1 }
 0x463   : > { %v4174_v13 = vpop.f32.mrb[4].mxu0  ;;  %v4215_v8 = vpop.f32.mrb[4].mxu1 }
 0x464   : > { %v4175_v43 = vadd.f32 %v4174_v13, %v4134_v7  ;;  %v4176_v21 = vpop.f32.mrb[5].mxu0  ;;  %v4217_v24 = vpop.f32.mrb[5].mxu1 }
 0x465   : > { %v4177_v37 = vpop.f32.mrb[6].mxu0  ;;  %v4218_v30 = vpop.f32.mrb[6].mxu1 }
 0x466   : > { %v4216_v35 = vadd.f32 %v4215_v8, %v4175_v43  ;;  %v4178_v9 = vadd.f32 %v4177_v37, %v4137_v27  ;;  %v4179_v56 = vpop.f32.mrb[7].mxu0  ;;  %v4220_v18 = vpop.f32.mrb[7].mxu1  ;;  %4229 = sbr.rel (%p4461_p0) target bundleno = 1143 (0x477), region = 109 }
 0x468   : > { %v4222_v25 = vadd.f32 %v4216_v35, %v3941_v61  ;;  %v4219_v39 = vadd.f32 %v4218_v30, %v4178_v9 }
 0x46a   : > { %4224 = vst [vmem:[#allocation2] sm:$0xff] %v4222_v25  ;;  %v4223_v36 = vadd.f32 %v4219_v39, %v3942_v20 }
 0x46c   : > { %4225 = vst [vmem:[#allocation2 + $0x8] sm:$0xff] %v4223_v36 }
 0x471   : > { %v4230_v33 = vld [vmem:[#allocation2] sm:$0xff] }
 0x473   : > { %v4231_v4 = vld [vmem:[#allocation2 + $0x8] sm:$0xff] }
 0x474   : > { %v4480_v29 = vpack.c.bf16 %v4231_v4, %v4230_v33 }
 0x476   : > { %4481 = vst [vmem:[%s452_s25] sm:$0xff] %v4480_v29  }
 0x477 PF: > { %s4476_s27 = sshll.u32 %s4751_s23, 2  ;;  %s4258_s4 = sshll.u32 %s452_s25, 4  ;;  %s7790_s4 = int_to_ptr.vmem [resolvable:$true] %s4258_s4 }
 0x478   : > { %s4255_s2 = sadd.s32 %s4755_s24, %s4476_s27  ;;  %s8188_s12 = sld [smem:[#allocation49_spill]] }
 0x479   : > { %s4467_s6 = sshll.u32 %s4255_s2, 6  ;;  %s8189_s20 = sand.u32 1, %s4723_s16  }
 0x47a   : > { %s7799_s18 = scalar_lea.sflag [#allocation7], %s8189_s20  ;;  %s4629_s8 = scalar_lea.vmem %s7790_s4, 128 }
 0x47b   : > { %p4630_p1 = scmp.ne.s32.totalorder %s7790_s4, %s4629_s8  ;;  %s4782_s23 = smov [#allocation6]  }
 0x47c   : > { %s4633_s24 = sshll.u32 %s4782_s23, 4  ;;  %s4634_s24 = int_to_ptr.vmem [resolvable:$false] %s4633_s24 }
 0x47d   : > { %p4631_p3 = pnand %p4630_p1, %p4944_p2  ;;  %s4635_s25 = scalar_lea.vmem %s4634_s24, 256 }
 0x47e   : > { %s7795_s9 = scalar_lea.hbm %s8188_s12, %s4467_s6  ;;  %p4636_p5 = scmp.lt.s32.totalorder %s7790_s4, %s4634_s24 }
 0x47f   : > { %p4632_p6 = pneg %p4631_p3  ;;  %p4637_p7 = scmp.lt.s32.totalorder %s4635_s25, %s4629_s8 }
 0x481   : > { %p4638_p8 = por %p4637_p7, %p4636_p5 }
 0x483   : > { %p4639_p9 = pnand %p4638_p8, %p4632_p6 }
 0x485   : > { %4642 = shalt.err (!%p4639_p9)
}
 0x486   : > { %s4643_s3 = scalar_lea.hbm %s7795_s9, 128  ;;  %s4647_s1 = scalar_lea.hbm %s8188_s12, 768 }
 0x487   : > { %p4644_p10 = scmp.ne.s32.totalorder %s7795_s9, %s4643_s3  ;;  %p4648_p13 = scmp.lt.u32.totalorder %s7795_s9, %s8188_s12 }
 0x488   : > { %p4649_p0 = scmp.lt.u32.totalorder %s4647_s1, %s4643_s3  ;;  %p4651_p3 = scmp.lt.u32.totalorder %s4643_s3, %s7795_s9 }
 0x489   : > { %p4645_p11 = pnand %p4644_p10, %p4944_p2 }
 0x48a   : > { %p4650_p1 = por %p4649_p0, %p4648_p13 }
 0x48b   : > { %p4646_p12 = pneg %p4645_p11 }
 0x48c   : > { %p4652_p6 = por %p4651_p3, %p4650_p1 }
 0x48e   : > { %p4653_p5 = pnand %p4652_p6, %p4646_p12 }
 0x490   : > { %4656 = shalt.err (!%p4653_p5)
}
 0x491   : > { %s4783_s13 = smov 64   ;;  %s4784_s10 = smov 128  }
 0x492   : > { %s4785_s27 = smov 4  }
 0x493   : > { %4482 = dma.vmem_to_hbm [thread:$0]  (%p4944_p2), %s7790_s4, 128, %s7795_s9, %s7799_s18, %s4783_s13, %s4784_s10, %s4785_s27  }
 0x494 PF: > { %p4488_p7 = scmp.ge.s32.totalorder %s4771_s28, 2  ;;  %s4273_s2 = sand.u32 1, %s4719_s15  }
 0x495   : > { %s4274_s6 = scalar_lea.sflag [#allocation7], %s4273_s2 }
 0x496   : > { %p4485_p8 = pnand %p4488_p7, %p4948_p4 }
 0x498   : > { %4714 = dma.done.wait (!%p4485_p8), %s4274_s6, 128  }
 0x499   : > { %4716 = vsyncadd (!%p4485_p8), %s4274_s6, 4294967168  ;;  %s17_s28 = sadd.s32 1, %s4771_s28   ;;  %s8191_s5 = sld [smem:[#allocation17_spill]] }
 0x49a   : > { %p7828_p9 = scmp.ge.s32.totalorder %s17_s28, 14   ;;  %s8192_s4 = sld [smem:[#allocation16_spill]] }
 0x49b   : > { %s8193_s11 = sld [smem:[#allocation10_spill]]  ;;  %s8194_s23 = sld [smem:[#allocation11_spill]] }
 0x49c   : > { %s8195_s24 = sld [smem:[#allocation12_spill]]  ;;  %s8196_s25 = sld [smem:[#allocation13_spill]] }
 0x49d   : > { %s8197_s26 = sld [smem:[#allocation14_spill]]  ;;  %s8198_s27 = sld [smem:[#allocation15_spill]] }
 0x49e   : > { %s8199_s15 = smov %s4723_s16  ;;  %s8200_s16 = smov %s4727_s17 }
 0x49f   : > { %s8201_s17 = smov %s4931_s22  ;;  %s8202_s18 = smov %s4735_s19 }
 0x4a0   : > { %s8203_s19 = smov %s8191_s5  ;;  %s8204_s20 = smov %s4743_s21 }
 0x4a1   : > { %s8205_s21 = smov %s8192_s4  ;;  %s8206_s22 = smov %s8193_s11 }
 0x4a2   :  { %16 = sbr.rel (!%p7828_p9) target bundleno = 14 (0xe), region = 165 }
 0x4a9   :  { %4279 = vsyncpa [#allocation7], 1 }
 0x4aa   :  { %4281 = vsyncpa [#allocation7 + $0x1], 1 }

</bundles_post_ra>
